<compile_context>
chip_gen: v7x
topology: tpu7x:2x2x1
jax: 0.10.0
libtpu: 0.0.40
codegen_flags: <defaults>
</compile_context>

<pallas_src>
import jax
import jax.numpy as jnp
from jax import lax
from jax.experimental import pallas as pl
from jax.experimental.pallas import tpu as pltpu


def _lstm_cell(gates, c_prev, H):
    """gates: (rows, 4H) fused pre-activations in PyTorch (i, f, g, o) order.

    Two full-tile EUP passes (sigmoid over all gates, tanh over all gates) + one
    tanh(c_new); the i/f/g/o lane groups are picked out of the shared results.
    """
    sg = jax.nn.sigmoid(gates)
    tg = jnp.tanh(gates)
    i = sg[:, 0 * H:1 * H]
    f = sg[:, 1 * H:2 * H]
    g = tg[:, 2 * H:3 * H]
    o = sg[:, 3 * H:4 * H]
    c_new = f * c_prev + i * g
    h_new = o * jnp.tanh(c_new)
    return h_new, c_new


# -----------------------------------------------------------------------------
# Fused kernel: layer-1 bidir LSTM -> layer-2 (fwd recurrence + bwd single step)
# -> MLP head -> sigmoid.  x is time-major flattened: (T*Bp, D).
# -----------------------------------------------------------------------------
def _discriminator_kernel(x_ref,
                          wih0_ref, whh0_ref, b0_ref,        # layer 1, fwd|bwd fused
                          wihf1_ref, whhf1_ref, bf1_ref,     # layer 2 forward
                          wihb1_ref, bb1_ref,                # layer 2 backward (1 step)
                          w1_ref, b1_ref, w2_ref, b2_ref,
                          w3_ref, b3_ref, w4_ref, b4_ref,
                          out_ref,
                          xp0, h1, xp2):
    TB, _ = x_ref.shape
    H = whhf1_ref.shape[0]
    Bp = out_ref.shape[0]
    T = TB // Bp

    # ---------------- Layer 1: bidirectional LSTM ----------------
    # Hoisted input projection for BOTH directions in one whole-sequence GEMM.
    xp0[...] = jnp.dot(x_ref[...], wih0_ref[...],
                       preferred_element_type=jnp.float32) + b0_ref[...]

    whh0 = whh0_ref[...]                                  # (H, 8H) = [Whh_f | Whh_b]

    def step0(t, carry):
        h_st, c_st = carry                                # stacked (2Bp, H): [fwd ; bwd]
        rf = pl.multiple_of(t * Bp, Bp)                   # fwd time index t
        rb = pl.multiple_of((T - 1 - t) * Bp, Bp)         # bwd time index T-1-t
        # One MXU op for both directions: (2Bp, H) @ (H, 8H).
        g_all = jnp.dot(h_st, whh0, preferred_element_type=jnp.float32)
        gf = g_all[0:Bp, 0:4 * H] + xp0[pl.ds(rf, Bp), pl.ds(0, 4 * H)]
        gb = g_all[Bp:2 * Bp, 4 * H:8 * H] + xp0[pl.ds(rb, Bp), pl.ds(4 * H, 4 * H)]
        gates = jnp.concatenate([gf, gb], axis=0)         # (2Bp, 4H)
        h_new, c_new = _lstm_cell(gates, c_st, H)
        # Direct per-step stores into the layer-1 output (no epilogue concatenate).
        h1[pl.ds(rf, Bp), pl.ds(0, H)] = h_new[0:Bp, :]
        h1[pl.ds(rb, Bp), pl.ds(H, H)] = h_new[Bp:2 * Bp, :]
        return h_new, c_new

    z2 = jnp.zeros((2 * Bp, H), jnp.float32)
    lax.fori_loop(0, T, step0, (z2, z2), unroll=True)

    # ---------------- Layer 2: only lstm_out[:, -1] is needed ----------------
    # Forward direction: full recurrence, keep only the final h.
    xp2[...] = jnp.dot(h1[...], wihf1_ref[...],
                       preferred_element_type=jnp.float32) + bf1_ref[...]
    whhf1 = whhf1_ref[...]

    def step1(t, carry):
        h, c = carry
        r = pl.multiple_of(t * Bp, Bp)
        g = xp2[pl.ds(r, Bp), :] + jnp.dot(h, whhf1, preferred_element_type=jnp.float32)
        return _lstm_cell(g, c, H)

    z1 = jnp.zeros((Bp, H), jnp.float32)
    hf_last, _ = lax.fori_loop(0, T, step1, (z1, z1), unroll=True)

    # Backward direction output at t = T-1: one step from zero state on h1[T-1]
    # (zero initial state => the h @ Whh term vanishes).
    x_last = h1[pl.ds((T - 1) * Bp, Bp), :]
    gb = jnp.dot(x_last, wihb1_ref[...], preferred_element_type=jnp.float32) + bb1_ref[...]
    hb_last, _ = _lstm_cell(gb, jnp.zeros((Bp, H), jnp.float32), H)

    last_hidden = jnp.concatenate([hf_last, hb_last], axis=-1)    # (Bp, 2H)

    # ---------------- MLP head (dropout == identity at inference) + Sigmoid ----------------
    z = jnp.dot(last_hidden, w1_ref[...], preferred_element_type=jnp.float32) + b1_ref[...]
    z = jnp.dot(z, w2_ref[...], preferred_element_type=jnp.float32) + b2_ref[...]
    z = jnp.dot(z, w3_ref[...], preferred_element_type=jnp.float32) + b3_ref[...]
    z = jnp.dot(z, w4_ref[...], preferred_element_type=jnp.float32) + b4_ref[...]
    out_ref[...] = jax.nn.sigmoid(z)


# -----------------------------------------------------------------------------
# Parameter construction (deterministic, PyTorch-style uniform init, fused gate layout).
# -----------------------------------------------------------------------------
def _make_lstm_dir_params(key, d_in, hidden):
    k = 1.0 / (hidden ** 0.5)
    k0, k1, k2, k3 = jax.random.split(key, 4)
    wih = jax.random.uniform(k0, (d_in, 4 * hidden), jnp.float32, -k, k)
    whh = jax.random.uniform(k1, (hidden, 4 * hidden), jnp.float32, -k, k)
    b_ih = jax.random.uniform(k2, (1, 4 * hidden), jnp.float32, -k, k)
    b_hh = jax.random.uniform(k3, (1, 4 * hidden), jnp.float32, -k, k)
    return wih, whh, b_ih + b_hh          # combined bias, as in PyTorch b_ih + b_hh


def _make_linear_params(key, d_in, d_out):
    k = 1.0 / (d_in ** 0.5)
    k0, k1 = jax.random.split(key)
    w = jax.random.uniform(k0, (d_in, d_out), jnp.float32, -k, k)
    b = jax.random.uniform(k1, (1, d_out), jnp.float32, -k, k)
    return w, b


def make_discriminator_params(key, in_size, hidden_size, out_size=1):
    keys = jax.random.split(key, 8)
    return {
        "l0_fwd": _make_lstm_dir_params(keys[0], in_size, hidden_size),
        "l0_bwd": _make_lstm_dir_params(keys[1], in_size, hidden_size),
        "l1_fwd": _make_lstm_dir_params(keys[2], 2 * hidden_size, hidden_size),
        "l1_bwd": _make_lstm_dir_params(keys[3], 2 * hidden_size, hidden_size),
        "mlp": (
            _make_linear_params(keys[4], 2 * hidden_size, 800),
            _make_linear_params(keys[5], 800, 600),
            _make_linear_params(keys[6], 600, 100),
            _make_linear_params(keys[7], 100, out_size),
        ),
    }


# -----------------------------------------------------------------------------
# Full forward pass: layout plumbing in plain JAX, all compute in ONE fused kernel.
# -----------------------------------------------------------------------------
def _round_up(n, m):
    return ((n + m - 1) // m) * m


def _pad2d(a, rows, cols):
    return jnp.pad(a, ((0, rows - a.shape[0]), (0, cols - a.shape[1])))


@jax.jit
def discriminator_forward(x_btd, params):
    B, T, D = x_btd.shape
    Bp = max(8, _round_up(B, 8))                    # pad batch to a sublane multiple

    x = jnp.transpose(x_btd, (1, 0, 2)).astype(jnp.float32)     # (T, B, D)
    x = jnp.pad(x, ((0, 0), (0, Bp - B), (0, 0)))               # (T, Bp, D)
    x2d = x.reshape(T * Bp, D)                                  # time-major flattened

    # Layer-1 fwd/bwd weights fused along the output (lane) dimension: (.., 8H).
    wihf0, whhf0, bf0 = params["l0_fwd"]
    wihb0, whhb0, bb0 = params["l0_bwd"]
    wih0 = jnp.concatenate([wihf0, wihb0], axis=1)              # (D, 8H)
    whh0 = jnp.concatenate([whhf0, whhb0], axis=1)              # (H, 8H)
    b0 = jnp.concatenate([bf0, bb0], axis=1)                    # (1, 8H)

    wihf1, whhf1, bf1 = params["l1_fwd"]
    wihb1, _whhb1_unused, bb1 = params["l1_bwd"]                # bwd runs 1 step from zero state
    H = whhf1.shape[0]

    # Zero-pad MLP weights to lane-dense multiples of 128 (numerically identical).
    (w1, b1), (w2, b2), (w3, b3), (w4, b4) = params["mlp"]
    d1 = _round_up(w1.shape[1], 128)       # 800 -> 896
    d2 = _round_up(w2.shape[1], 128)       # 600 -> 640
    d3 = _round_up(w3.shape[1], 128)       # 100 -> 128
    w1p, b1p = _pad2d(w1, w1.shape[0], d1), _pad2d(b1, 1, d1)
    w2p, b2p = _pad2d(w2, d1, d2), _pad2d(b2, 1, d2)
    w3p, b3p = _pad2d(w3, d2, d3), _pad2d(b3, 1, d3)
    w4p, b4p = _pad2d(w4, d3, w4.shape[1]), b4

    scores = pl.pallas_call(
        _discriminator_kernel,
        out_shape=jax.ShapeDtypeStruct((Bp, w4.shape[1]), jnp.float32),
        scratch_shapes=[
            pltpu.VMEM((T * Bp, 8 * H), jnp.float32),   # xp0: layer-1 fused input projections
            pltpu.VMEM((T * Bp, 2 * H), jnp.float32),   # h1:  layer-1 bidir output (stays in VMEM)
            pltpu.VMEM((T * Bp, 4 * H), jnp.float32),   # xp2: layer-2 fwd input projections
        ],
    )(x2d, wih0, whh0, b0,
      wihf1, whhf1, bf1, wihb1, bb1,
      w1p, b1p, w2p, b2p, w3p, b3p, w4p, b4p)
    return scores[:B]                                           # (B, 1)


# -----------------------------------------------------------------------------
# Pure-JAX reference (full bidirectional 2-layer LSTM, for correctness check).
# -----------------------------------------------------------------------------
def _ref_lstm_dir(x_tbd, wih, whh, b, reverse):
    T, B, _ = x_tbd.shape
    H = whh.shape[0]
    xs = x_tbd[::-1] if reverse else x_tbd

    def step(carry, xt):
        h, c = carry
        gates = xt @ wih + h @ whh + b
        i = jax.nn.sigmoid(gates[:, 0 * H:1 * H])
        f = jax.nn.sigmoid(gates[:, 1 * H:2 * H])
        g = jnp.tanh(gates[:, 2 * H:3 * H])
        o = jax.nn.sigmoid(gates[:, 3 * H:4 * H])
        c = f * c + i * g
        h = o * jnp.tanh(c)
        return (h, c), h

    init = (jnp.zeros((B, H), jnp.float32), jnp.zeros((B, H), jnp.float32))
    _, ys = jax.lax.scan(step, init, xs)
    return ys[::-1] if reverse else ys


def _ref_forward(x_btd, params):
    x = jnp.transpose(x_btd, (1, 0, 2)).astype(jnp.float32)
    h1 = jnp.concatenate(
        [_ref_lstm_dir(x, *params["l0_fwd"], reverse=False),
         _ref_lstm_dir(x, *params["l0_bwd"], reverse=True)], axis=-1)
    h2 = jnp.concatenate(
        [_ref_lstm_dir(h1, *params["l1_fwd"], reverse=False),
         _ref_lstm_dir(h1, *params["l1_bwd"], reverse=True)], axis=-1)
    h = h2[-1]
    for (w, b) in params["mlp"]:
        h = h @ w + b
    return jax.nn.sigmoid(h)


if __name__ == "__main__":
    # Small, module-consistent shapes: batch=2, seq=8, in_size=16, hidden_size=32.
    # MLP dims 800/600/100/1 are hardcoded in the module and kept as-is.
    B, T, IN_SIZE, HIDDEN = 2, 8, 16, 32

    key = jax.random.PRNGKey(0)
    k_x, k_p = jax.random.split(key)
    x = jax.random.normal(k_x, (B, T, IN_SIZE), jnp.float32)
    params = make_discriminator_params(k_p, IN_SIZE, HIDDEN, out_size=1)

    scores = discriminator_forward(x, params)
    scores = jax.block_until_ready(scores)

    assert scores.shape == (B, 1), scores.shape
    ref = _ref_forward(x, params)
    assert jnp.allclose(scores, ref, rtol=1e-4, atol=1e-4), (scores, ref)
    assert bool(jnp.all((scores >= 0.0) & (scores <= 1.0)))

    print("KERNEL_OK")
</pallas_src>

<mosaic_0001>
module attributes {stable_mosaic.version = 11 : i64} {
  func.func @_discriminator_kernel(%arg0: memref<64x16xf32, #tpu.memory_space<vmem>>, %arg1: memref<16x256xf32, #tpu.memory_space<vmem>>, %arg2: memref<32x256xf32, #tpu.memory_space<vmem>>, %arg3: memref<1x256xf32, #tpu.memory_space<vmem>>, %arg4: memref<64x128xf32, #tpu.memory_space<vmem>>, %arg5: memref<32x128xf32, #tpu.memory_space<vmem>>, %arg6: memref<1x128xf32, #tpu.memory_space<vmem>>, %arg7: memref<64x128xf32, #tpu.memory_space<vmem>>, %arg8: memref<1x128xf32, #tpu.memory_space<vmem>>, %arg9: memref<64x896xf32, #tpu.memory_space<vmem>>, %arg10: memref<1x896xf32, #tpu.memory_space<vmem>>, %arg11: memref<896x640xf32, #tpu.memory_space<vmem>>, %arg12: memref<1x640xf32, #tpu.memory_space<vmem>>, %arg13: memref<640x128xf32, #tpu.memory_space<vmem>>, %arg14: memref<1x128xf32, #tpu.memory_space<vmem>>, %arg15: memref<128x1xf32, #tpu.memory_space<vmem>>, %arg16: memref<1x1xf32, #tpu.memory_space<vmem>>, %arg17: memref<8x1xf32, #tpu.memory_space<vmem>>, %arg18: memref<64x256xf32, #tpu.memory_space<vmem>>, %arg19: memref<64x64xf32, #tpu.memory_space<vmem>>, %arg20: memref<64x128xf32, #tpu.memory_space<vmem>>) attributes {dimension_semantics = [], scalar_prefetch = 0 : i64, scratch_operands = 3 : i64, tpu.core_type = #tpu.core_type<tc>} {
    %c0 = arith.constant 0 : index
    %c0_0 = arith.constant 0 : index
    %0 = vector.load %arg0[%c0, %c0_0] : memref<64x16xf32, #tpu.memory_space<vmem>>, vector<64x16xf32>
    %c0_1 = arith.constant 0 : index
    %c0_2 = arith.constant 0 : index
    %1 = vector.load %arg1[%c0_1, %c0_2] : memref<16x256xf32, #tpu.memory_space<vmem>>, vector<16x256xf32>
    %cst = arith.constant dense<0.000000e+00> : vector<64x256xf32>
    %2 = tpu.matmul %0, %1, %cst {dimension_numbers = #tpu.dot_dimension_numbers<[1], [0], [0], [1], [0, 0, 1, 1], [], []>} : vector<64x16xf32>, vector<16x256xf32>, vector<64x256xf32> -> vector<64x256xf32>
    %c0_3 = arith.constant 0 : index
    %c0_4 = arith.constant 0 : index
    %3 = vector.load %arg3[%c0_3, %c0_4] : memref<1x256xf32, #tpu.memory_space<vmem>>, vector<1x256xf32>
    %4 = vector.broadcast %3 : vector<1x256xf32> to vector<64x256xf32>
    %5 = arith.addf %2, %4 : vector<64x256xf32>
    %c0_5 = arith.constant 0 : index
    %c0_6 = arith.constant 0 : index
    %6 = vector.load %arg18[%c0_5, %c0_6] : memref<64x256xf32, #tpu.memory_space<vmem>>, vector<64x256xf32>
    tpu.vector_store %arg18[%c0_5, %c0_6], %5 {strides = array<i32>} : memref<64x256xf32, #tpu.memory_space<vmem>>, vector<64x256xf32>,
    %c0_7 = arith.constant 0 : index
    %c0_8 = arith.constant 0 : index
    %7 = vector.load %arg2[%c0_7, %c0_8] : memref<32x256xf32, #tpu.memory_space<vmem>>, vector<32x256xf32>
    %cst_9 = arith.constant 0.000000e+00 : f32
    %8 = vector.broadcast %cst_9 : f32 to vector<16x32xf32>
    %c0_i32 = arith.constant 0 : i32
    %c8_i32 = arith.constant 8 : i32
    %9 = arith.muli %c0_i32, %c8_i32 : i32
    %10 = tpu.assume_multiple %9, 8 : i32
    %c7_i32 = arith.constant 7 : i32
    %11 = arith.subi %c7_i32, %c0_i32 : i32
    %c8_i32_10 = arith.constant 8 : i32
    %12 = arith.muli %11, %c8_i32_10 : i32
    %13 = tpu.assume_multiple %12, 8 : i32
    %cst_11 = arith.constant dense<0.000000e+00> : vector<16x256xf32>
    %14 = tpu.matmul %8, %7, %cst_11 {dimension_numbers = #tpu.dot_dimension_numbers<[1], [0], [0], [1], [0, 0, 1, 1], [], []>} : vector<16x32xf32>, vector<32x256xf32>, vector<16x256xf32> -> vector<16x256xf32>
    %15 = vector.extract_strided_slice %14 {offsets = [0, 0], sizes = [8, 128], strides = [1, 1]} : vector<16x256xf32> to vector<8x128xf32>
    %16 = arith.index_cast %10 : i32 to index
    %c0_12 = arith.constant 0 : index
    %17 = vector.load %arg18[%16, %c0_12] : memref<64x256xf32, #tpu.memory_space<vmem>>, vector<8x128xf32>
    %18 = arith.addf %15, %17 : vector<8x128xf32>
    %19 = vector.extract_strided_slice %14 {offsets = [8, 128], sizes = [8, 128], strides = [1, 1]} : vector<16x256xf32> to vector<8x128xf32>
    %20 = arith.index_cast %13 : i32 to index
    %c128 = arith.constant 128 : index
    %21 = vector.load %arg18[%20, %c128] : memref<64x256xf32, #tpu.memory_space<vmem>>, vector<8x128xf32>
    %22 = arith.addf %19, %21 : vector<8x128xf32>
    %23 = tpu.concatenate %18, %22 in 0 : vector<8x128xf32>, vector<8x128xf32> -> vector<16x128xf32>
    %24 = arith.negf %23 : vector<16x128xf32>
    %25 = math.exp %24 : vector<16x128xf32>
    %cst_13 = arith.constant 1.000000e+00 : f32
    %26 = vector.broadcast %cst_13 : f32 to vector<16x128xf32>
    %27 = arith.addf %26, %25 : vector<16x128xf32>
    %28 = arith.divf %26, %27 : vector<16x128xf32>
    %29 = math.tanh %23 : vector<16x128xf32>
    %30 = vector.extract_strided_slice %28 {offsets = [0, 0], sizes = [16, 32], strides = [1, 1]} : vector<16x128xf32> to vector<16x32xf32>
    %31 = vector.extract_strided_slice %28 {offsets = [0, 32], sizes = [16, 32], strides = [1, 1]} : vector<16x128xf32> to vector<16x32xf32>
    %32 = vector.extract_strided_slice %29 {offsets = [0, 64], sizes = [16, 32], strides = [1, 1]} : vector<16x128xf32> to vector<16x32xf32>
    %33 = vector.extract_strided_slice %28 {offsets = [0, 96], sizes = [16, 32], strides = [1, 1]} : vector<16x128xf32> to vector<16x32xf32>
    %34 = arith.mulf %31, %8 : vector<16x32xf32>
    %35 = arith.mulf %30, %32 : vector<16x32xf32>
    %36 = arith.addf %34, %35 : vector<16x32xf32>
    %37 = math.tanh %36 : vector<16x32xf32>
    %38 = arith.mulf %33, %37 : vector<16x32xf32>
    %39 = vector.extract_strided_slice %38 {offsets = [0, 0], sizes = [8, 32], strides = [1, 1]} : vector<16x32xf32> to vector<8x32xf32>
    %40 = arith.index_cast %10 : i32 to index
    %c0_14 = arith.constant 0 : index
    %41 = vector.load %arg19[%40, %c0_14] : memref<64x64xf32, #tpu.memory_space<vmem>>, vector<8x32xf32>
    tpu.vector_store %arg19[%40, %c0_14], %39 {strides = array<i32>} : memref<64x64xf32, #tpu.memory_space<vmem>>, vector<8x32xf32>,
    %42 = vector.extract_strided_slice %38 {offsets = [8, 0], sizes = [8, 32], strides = [1, 1]} : vector<16x32xf32> to vector<8x32xf32>
    %43 = arith.index_cast %13 : i32 to index
    %c32 = arith.constant 32 : index
    %44 = vector.load %arg19[%43, %c32] : memref<64x64xf32, #tpu.memory_space<vmem>>, vector<8x32xf32>
    tpu.vector_store %arg19[%43, %c32], %42 {strides = array<i32>} : memref<64x64xf32, #tpu.memory_space<vmem>>, vector<8x32xf32>,
    %c1_i32 = arith.constant 1 : i32
    %c8_i32_15 = arith.constant 8 : i32
    %45 = arith.muli %c1_i32, %c8_i32_15 : i32
    %46 = tpu.assume_multiple %45, 8 : i32
    %c7_i32_16 = arith.constant 7 : i32
    %47 = arith.subi %c7_i32_16, %c1_i32 : i32
    %c8_i32_17 = arith.constant 8 : i32
    %48 = arith.muli %47, %c8_i32_17 : i32
    %49 = tpu.assume_multiple %48, 8 : i32
    %cst_18 = arith.constant dense<0.000000e+00> : vector<16x256xf32>
    %50 = tpu.matmul %38, %7, %cst_18 {dimension_numbers = #tpu.dot_dimension_numbers<[1], [0], [0], [1], [0, 0, 1, 1], [], []>} : vector<16x32xf32>, vector<32x256xf32>, vector<16x256xf32> -> vector<16x256xf32>
    %51 = vector.extract_strided_slice %50 {offsets = [0, 0], sizes = [8, 128], strides = [1, 1]} : vector<16x256xf32> to vector<8x128xf32>
    %52 = arith.index_cast %46 : i32 to index
    %c0_19 = arith.constant 0 : index
    %53 = vector.load %arg18[%52, %c0_19] : memref<64x256xf32, #tpu.memory_space<vmem>>, vector<8x128xf32>
    %54 = arith.addf %51, %53 : vector<8x128xf32>
    %55 = vector.extract_strided_slice %50 {offsets = [8, 128], sizes = [8, 128], strides = [1, 1]} : vector<16x256xf32> to vector<8x128xf32>
    %56 = arith.index_cast %49 : i32 to index
    %c128_20 = arith.constant 128 : index
    %57 = vector.load %arg18[%56, %c128_20] : memref<64x256xf32, #tpu.memory_space<vmem>>, vector<8x128xf32>
    %58 = arith.addf %55, %57 : vector<8x128xf32>
    %59 = tpu.concatenate %54, %58 in 0 : vector<8x128xf32>, vector<8x128xf32> -> vector<16x128xf32>
    %60 = arith.negf %59 : vector<16x128xf32>
    %61 = math.exp %60 : vector<16x128xf32>
    %cst_21 = arith.constant 1.000000e+00 : f32
    %62 = vector.broadcast %cst_21 : f32 to vector<16x128xf32>
    %63 = arith.addf %62, %61 : vector<16x128xf32>
    %64 = arith.divf %62, %63 : vector<16x128xf32>
    %65 = math.tanh %59 : vector<16x128xf32>
    %66 = vector.extract_strided_slice %64 {offsets = [0, 0], sizes = [16, 32], strides = [1, 1]} : vector<16x128xf32> to vector<16x32xf32>
    %67 = vector.extract_strided_slice %64 {offsets = [0, 32], sizes = [16, 32], strides = [1, 1]} : vector<16x128xf32> to vector<16x32xf32>
    %68 = vector.extract_strided_slice %65 {offsets = [0, 64], sizes = [16, 32], strides = [1, 1]} : vector<16x128xf32> to vector<16x32xf32>
    %69 = vector.extract_strided_slice %64 {offsets = [0, 96], sizes = [16, 32], strides = [1, 1]} : vector<16x128xf32> to vector<16x32xf32>
    %70 = arith.mulf %67, %36 : vector<16x32xf32>
    %71 = arith.mulf %66, %68 : vector<16x32xf32>
    %72 = arith.addf %70, %71 : vector<16x32xf32>
    %73 = math.tanh %72 : vector<16x32xf32>
    %74 = arith.mulf %69, %73 : vector<16x32xf32>
    %75 = vector.extract_strided_slice %74 {offsets = [0, 0], sizes = [8, 32], strides = [1, 1]} : vector<16x32xf32> to vector<8x32xf32>
    %76 = arith.index_cast %46 : i32 to index
    %c0_22 = arith.constant 0 : index
    %77 = vector.load %arg19[%76, %c0_22] : memref<64x64xf32, #tpu.memory_space<vmem>>, vector<8x32xf32>
    tpu.vector_store %arg19[%76, %c0_22], %75 {strides = array<i32>} : memref<64x64xf32, #tpu.memory_space<vmem>>, vector<8x32xf32>,
    %78 = vector.extract_strided_slice %74 {offsets = [8, 0], sizes = [8, 32], strides = [1, 1]} : vector<16x32xf32> to vector<8x32xf32>
    %79 = arith.index_cast %49 : i32 to index
    %c32_23 = arith.constant 32 : index
    %80 = vector.load %arg19[%79, %c32_23] : memref<64x64xf32, #tpu.memory_space<vmem>>, vector<8x32xf32>
    tpu.vector_store %arg19[%79, %c32_23], %78 {strides = array<i32>} : memref<64x64xf32, #tpu.memory_space<vmem>>, vector<8x32xf32>,
    %c2_i32 = arith.constant 2 : i32
    %c8_i32_24 = arith.constant 8 : i32
    %81 = arith.muli %c2_i32, %c8_i32_24 : i32
    %82 = tpu.assume_multiple %81, 8 : i32
    %c7_i32_25 = arith.constant 7 : i32
    %83 = arith.subi %c7_i32_25, %c2_i32 : i32
    %c8_i32_26 = arith.constant 8 : i32
    %84 = arith.muli %83, %c8_i32_26 : i32
    %85 = tpu.assume_multiple %84, 8 : i32
    %cst_27 = arith.constant dense<0.000000e+00> : vector<16x256xf32>
    %86 = tpu.matmul %74, %7, %cst_27 {dimension_numbers = #tpu.dot_dimension_numbers<[1], [0], [0], [1], [0, 0, 1, 1], [], []>} : vector<16x32xf32>, vector<32x256xf32>, vector<16x256xf32> -> vector<16x256xf32>
    %87 = vector.extract_strided_slice %86 {offsets = [0, 0], sizes = [8, 128], strides = [1, 1]} : vector<16x256xf32> to vector<8x128xf32>
    %88 = arith.index_cast %82 : i32 to index
    %c0_28 = arith.constant 0 : index
    %89 = vector.load %arg18[%88, %c0_28] : memref<64x256xf32, #tpu.memory_space<vmem>>, vector<8x128xf32>
    %90 = arith.addf %87, %89 : vector<8x128xf32>
    %91 = vector.extract_strided_slice %86 {offsets = [8, 128], sizes = [8, 128], strides = [1, 1]} : vector<16x256xf32> to vector<8x128xf32>
    %92 = arith.index_cast %85 : i32 to index
    %c128_29 = arith.constant 128 : index
    %93 = vector.load %arg18[%92, %c128_29] : memref<64x256xf32, #tpu.memory_space<vmem>>, vector<8x128xf32>
    %94 = arith.addf %91, %93 : vector<8x128xf32>
    %95 = tpu.concatenate %90, %94 in 0 : vector<8x128xf32>, vector<8x128xf32> -> vector<16x128xf32>
    %96 = arith.negf %95 : vector<16x128xf32>
    %97 = math.exp %96 : vector<16x128xf32>
    %cst_30 = arith.constant 1.000000e+00 : f32
    %98 = vector.broadcast %cst_30 : f32 to vector<16x128xf32>
    %99 = arith.addf %98, %97 : vector<16x128xf32>
    %100 = arith.divf %98, %99 : vector<16x128xf32>
    %101 = math.tanh %95 : vector<16x128xf32>
    %102 = vector.extract_strided_slice %100 {offsets = [0, 0], sizes = [16, 32], strides = [1, 1]} : vector<16x128xf32> to vector<16x32xf32>
    %103 = vector.extract_strided_slice %100 {offsets = [0, 32], sizes = [16, 32], strides = [1, 1]} : vector<16x128xf32> to vector<16x32xf32>
    %104 = vector.extract_strided_slice %101 {offsets = [0, 64], sizes = [16, 32], strides = [1, 1]} : vector<16x128xf32> to vector<16x32xf32>
    %105 = vector.extract_strided_slice %100 {offsets = [0, 96], sizes = [16, 32], strides = [1, 1]} : vector<16x128xf32> to vector<16x32xf32>
    %106 = arith.mulf %103, %72 : vector<16x32xf32>
    %107 = arith.mulf %102, %104 : vector<16x32xf32>
    %108 = arith.addf %106, %107 : vector<16x32xf32>
    %109 = math.tanh %108 : vector<16x32xf32>
    %110 = arith.mulf %105, %109 : vector<16x32xf32>
    %111 = vector.extract_strided_slice %110 {offsets = [0, 0], sizes = [8, 32], strides = [1, 1]} : vector<16x32xf32> to vector<8x32xf32>
    %112 = arith.index_cast %82 : i32 to index
    %c0_31 = arith.constant 0 : index
    %113 = vector.load %arg19[%112, %c0_31] : memref<64x64xf32, #tpu.memory_space<vmem>>, vector<8x32xf32>
    tpu.vector_store %arg19[%112, %c0_31], %111 {strides = array<i32>} : memref<64x64xf32, #tpu.memory_space<vmem>>, vector<8x32xf32>,
    %114 = vector.extract_strided_slice %110 {offsets = [8, 0], sizes = [8, 32], strides = [1, 1]} : vector<16x32xf32> to vector<8x32xf32>
    %115 = arith.index_cast %85 : i32 to index
    %c32_32 = arith.constant 32 : index
    %116 = vector.load %arg19[%115, %c32_32] : memref<64x64xf32, #tpu.memory_space<vmem>>, vector<8x32xf32>
    tpu.vector_store %arg19[%115, %c32_32], %114 {strides = array<i32>} : memref<64x64xf32, #tpu.memory_space<vmem>>, vector<8x32xf32>,
    %c3_i32 = arith.constant 3 : i32
    %c8_i32_33 = arith.constant 8 : i32
    %117 = arith.muli %c3_i32, %c8_i32_33 : i32
    %118 = tpu.assume_multiple %117, 8 : i32
    %c7_i32_34 = arith.constant 7 : i32
    %119 = arith.subi %c7_i32_34, %c3_i32 : i32
    %c8_i32_35 = arith.constant 8 : i32
    %120 = arith.muli %119, %c8_i32_35 : i32
    %121 = tpu.assume_multiple %120, 8 : i32
    %cst_36 = arith.constant dense<0.000000e+00> : vector<16x256xf32>
    %122 = tpu.matmul %110, %7, %cst_36 {dimension_numbers = #tpu.dot_dimension_numbers<[1], [0], [0], [1], [0, 0, 1, 1], [], []>} : vector<16x32xf32>, vector<32x256xf32>, vector<16x256xf32> -> vector<16x256xf32>
    %123 = vector.extract_strided_slice %122 {offsets = [0, 0], sizes = [8, 128], strides = [1, 1]} : vector<16x256xf32> to vector<8x128xf32>
    %124 = arith.index_cast %118 : i32 to index
    %c0_37 = arith.constant 0 : index
    %125 = vector.load %arg18[%124, %c0_37] : memref<64x256xf32, #tpu.memory_space<vmem>>, vector<8x128xf32>
    %126 = arith.addf %123, %125 : vector<8x128xf32>
    %127 = vector.extract_strided_slice %122 {offsets = [8, 128], sizes = [8, 128], strides = [1, 1]} : vector<16x256xf32> to vector<8x128xf32>
    %128 = arith.index_cast %121 : i32 to index
    %c128_38 = arith.constant 128 : index
    %129 = vector.load %arg18[%128, %c128_38] : memref<64x256xf32, #tpu.memory_space<vmem>>, vector<8x128xf32>
    %130 = arith.addf %127, %129 : vector<8x128xf32>
    %131 = tpu.concatenate %126, %130 in 0 : vector<8x128xf32>, vector<8x128xf32> -> vector<16x128xf32>
    %132 = arith.negf %131 : vector<16x128xf32>
    %133 = math.exp %132 : vector<16x128xf32>
    %cst_39 = arith.constant 1.000000e+00 : f32
    %134 = vector.broadcast %cst_39 : f32 to vector<16x128xf32>
    %135 = arith.addf %134, %133 : vector<16x128xf32>
    %136 = arith.divf %134, %135 : vector<16x128xf32>
    %137 = math.tanh %131 : vector<16x128xf32>
    %138 = vector.extract_strided_slice %136 {offsets = [0, 0], sizes = [16, 32], strides = [1, 1]} : vector<16x128xf32> to vector<16x32xf32>
    %139 = vector.extract_strided_slice %136 {offsets = [0, 32], sizes = [16, 32], strides = [1, 1]} : vector<16x128xf32> to vector<16x32xf32>
    %140 = vector.extract_strided_slice %137 {offsets = [0, 64], sizes = [16, 32], strides = [1, 1]} : vector<16x128xf32> to vector<16x32xf32>
    %141 = vector.extract_strided_slice %136 {offsets = [0, 96], sizes = [16, 32], strides = [1, 1]} : vector<16x128xf32> to vector<16x32xf32>
    %142 = arith.mulf %139, %108 : vector<16x32xf32>
    %143 = arith.mulf %138, %140 : vector<16x32xf32>
    %144 = arith.addf %142, %143 : vector<16x32xf32>
    %145 = math.tanh %144 : vector<16x32xf32>
    %146 = arith.mulf %141, %145 : vector<16x32xf32>
    %147 = vector.extract_strided_slice %146 {offsets = [0, 0], sizes = [8, 32], strides = [1, 1]} : vector<16x32xf32> to vector<8x32xf32>
    %148 = arith.index_cast %118 : i32 to index
    %c0_40 = arith.constant 0 : index
    %149 = vector.load %arg19[%148, %c0_40] : memref<64x64xf32, #tpu.memory_space<vmem>>, vector<8x32xf32>
    tpu.vector_store %arg19[%148, %c0_40], %147 {strides = array<i32>} : memref<64x64xf32, #tpu.memory_space<vmem>>, vector<8x32xf32>,
    %150 = vector.extract_strided_slice %146 {offsets = [8, 0], sizes = [8, 32], strides = [1, 1]} : vector<16x32xf32> to vector<8x32xf32>
    %151 = arith.index_cast %121 : i32 to index
    %c32_41 = arith.constant 32 : index
    %152 = vector.load %arg19[%151, %c32_41] : memref<64x64xf32, #tpu.memory_space<vmem>>, vector<8x32xf32>
    tpu.vector_store %arg19[%151, %c32_41], %150 {strides = array<i32>} : memref<64x64xf32, #tpu.memory_space<vmem>>, vector<8x32xf32>,
    %c4_i32 = arith.constant 4 : i32
    %c8_i32_42 = arith.constant 8 : i32
    %153 = arith.muli %c4_i32, %c8_i32_42 : i32
    %154 = tpu.assume_multiple %153, 8 : i32
    %c7_i32_43 = arith.constant 7 : i32
    %155 = arith.subi %c7_i32_43, %c4_i32 : i32
    %c8_i32_44 = arith.constant 8 : i32
    %156 = arith.muli %155, %c8_i32_44 : i32
    %157 = tpu.assume_multiple %156, 8 : i32
    %cst_45 = arith.constant dense<0.000000e+00> : vector<16x256xf32>
    %158 = tpu.matmul %146, %7, %cst_45 {dimension_numbers = #tpu.dot_dimension_numbers<[1], [0], [0], [1], [0, 0, 1, 1], [], []>} : vector<16x32xf32>, vector<32x256xf32>, vector<16x256xf32> -> vector<16x256xf32>
    %159 = vector.extract_strided_slice %158 {offsets = [0, 0], sizes = [8, 128], strides = [1, 1]} : vector<16x256xf32> to vector<8x128xf32>
    %160 = arith.index_cast %154 : i32 to index
    %c0_46 = arith.constant 0 : index
    %161 = vector.load %arg18[%160, %c0_46] : memref<64x256xf32, #tpu.memory_space<vmem>>, vector<8x128xf32>
    %162 = arith.addf %159, %161 : vector<8x128xf32>
    %163 = vector.extract_strided_slice %158 {offsets = [8, 128], sizes = [8, 128], strides = [1, 1]} : vector<16x256xf32> to vector<8x128xf32>
    %164 = arith.index_cast %157 : i32 to index
    %c128_47 = arith.constant 128 : index
    %165 = vector.load %arg18[%164, %c128_47] : memref<64x256xf32, #tpu.memory_space<vmem>>, vector<8x128xf32>
    %166 = arith.addf %163, %165 : vector<8x128xf32>
    %167 = tpu.concatenate %162, %166 in 0 : vector<8x128xf32>, vector<8x128xf32> -> vector<16x128xf32>
    %168 = arith.negf %167 : vector<16x128xf32>
    %169 = math.exp %168 : vector<16x128xf32>
    %cst_48 = arith.constant 1.000000e+00 : f32
    %170 = vector.broadcast %cst_48 : f32 to vector<16x128xf32>
    %171 = arith.addf %170, %169 : vector<16x128xf32>
    %172 = arith.divf %170, %171 : vector<16x128xf32>
    %173 = math.tanh %167 : vector<16x128xf32>
    %174 = vector.extract_strided_slice %172 {offsets = [0, 0], sizes = [16, 32], strides = [1, 1]} : vector<16x128xf32> to vector<16x32xf32>
    %175 = vector.extract_strided_slice %172 {offsets = [0, 32], sizes = [16, 32], strides = [1, 1]} : vector<16x128xf32> to vector<16x32xf32>
    %176 = vector.extract_strided_slice %173 {offsets = [0, 64], sizes = [16, 32], strides = [1, 1]} : vector<16x128xf32> to vector<16x32xf32>
    %177 = vector.extract_strided_slice %172 {offsets = [0, 96], sizes = [16, 32], strides = [1, 1]} : vector<16x128xf32> to vector<16x32xf32>
    %178 = arith.mulf %175, %144 : vector<16x32xf32>
    %179 = arith.mulf %174, %176 : vector<16x32xf32>
    %180 = arith.addf %178, %179 : vector<16x32xf32>
    %181 = math.tanh %180 : vector<16x32xf32>
    %182 = arith.mulf %177, %181 : vector<16x32xf32>
    %183 = vector.extract_strided_slice %182 {offsets = [0, 0], sizes = [8, 32], strides = [1, 1]} : vector<16x32xf32> to vector<8x32xf32>
    %184 = arith.index_cast %154 : i32 to index
    %c0_49 = arith.constant 0 : index
    %185 = vector.load %arg19[%184, %c0_49] : memref<64x64xf32, #tpu.memory_space<vmem>>, vector<8x32xf32>
    tpu.vector_store %arg19[%184, %c0_49], %183 {strides = array<i32>} : memref<64x64xf32, #tpu.memory_space<vmem>>, vector<8x32xf32>,
    %186 = vector.extract_strided_slice %182 {offsets = [8, 0], sizes = [8, 32], strides = [1, 1]} : vector<16x32xf32> to vector<8x32xf32>
    %187 = arith.index_cast %157 : i32 to index
    %c32_50 = arith.constant 32 : index
    %188 = vector.load %arg19[%187, %c32_50] : memref<64x64xf32, #tpu.memory_space<vmem>>, vector<8x32xf32>
    tpu.vector_store %arg19[%187, %c32_50], %186 {strides = array<i32>} : memref<64x64xf32, #tpu.memory_space<vmem>>, vector<8x32xf32>,
    %c5_i32 = arith.constant 5 : i32
    %c8_i32_51 = arith.constant 8 : i32
    %189 = arith.muli %c5_i32, %c8_i32_51 : i32
    %190 = tpu.assume_multiple %189, 8 : i32
    %c7_i32_52 = arith.constant 7 : i32
    %191 = arith.subi %c7_i32_52, %c5_i32 : i32
    %c8_i32_53 = arith.constant 8 : i32
    %192 = arith.muli %191, %c8_i32_53 : i32
    %193 = tpu.assume_multiple %192, 8 : i32
    %cst_54 = arith.constant dense<0.000000e+00> : vector<16x256xf32>
    %194 = tpu.matmul %182, %7, %cst_54 {dimension_numbers = #tpu.dot_dimension_numbers<[1], [0], [0], [1], [0, 0, 1, 1], [], []>} : vector<16x32xf32>, vector<32x256xf32>, vector<16x256xf32> -> vector<16x256xf32>
    %195 = vector.extract_strided_slice %194 {offsets = [0, 0], sizes = [8, 128], strides = [1, 1]} : vector<16x256xf32> to vector<8x128xf32>
    %196 = arith.index_cast %190 : i32 to index
    %c0_55 = arith.constant 0 : index
    %197 = vector.load %arg18[%196, %c0_55] : memref<64x256xf32, #tpu.memory_space<vmem>>, vector<8x128xf32>
    %198 = arith.addf %195, %197 : vector<8x128xf32>
    %199 = vector.extract_strided_slice %194 {offsets = [8, 128], sizes = [8, 128], strides = [1, 1]} : vector<16x256xf32> to vector<8x128xf32>
    %200 = arith.index_cast %193 : i32 to index
    %c128_56 = arith.constant 128 : index
    %201 = vector.load %arg18[%200, %c128_56] : memref<64x256xf32, #tpu.memory_space<vmem>>, vector<8x128xf32>
    %202 = arith.addf %199, %201 : vector<8x128xf32>
    %203 = tpu.concatenate %198, %202 in 0 : vector<8x128xf32>, vector<8x128xf32> -> vector<16x128xf32>
    %204 = arith.negf %203 : vector<16x128xf32>
    %205 = math.exp %204 : vector<16x128xf32>
    %cst_57 = arith.constant 1.000000e+00 : f32
    %206 = vector.broadcast %cst_57 : f32 to vector<16x128xf32>
    %207 = arith.addf %206, %205 : vector<16x128xf32>
    %208 = arith.divf %206, %207 : vector<16x128xf32>
    %209 = math.tanh %203 : vector<16x128xf32>
    %210 = vector.extract_strided_slice %208 {offsets = [0, 0], sizes = [16, 32], strides = [1, 1]} : vector<16x128xf32> to vector<16x32xf32>
    %211 = vector.extract_strided_slice %208 {offsets = [0, 32], sizes = [16, 32], strides = [1, 1]} : vector<16x128xf32> to vector<16x32xf32>
    %212 = vector.extract_strided_slice %209 {offsets = [0, 64], sizes = [16, 32], strides = [1, 1]} : vector<16x128xf32> to vector<16x32xf32>
    %213 = vector.extract_strided_slice %208 {offsets = [0, 96], sizes = [16, 32], strides = [1, 1]} : vector<16x128xf32> to vector<16x32xf32>
    %214 = arith.mulf %211, %180 : vector<16x32xf32>
    %215 = arith.mulf %210, %212 : vector<16x32xf32>
    %216 = arith.addf %214, %215 : vector<16x32xf32>
    %217 = math.tanh %216 : vector<16x32xf32>
    %218 = arith.mulf %213, %217 : vector<16x32xf32>
    %219 = vector.extract_strided_slice %218 {offsets = [0, 0], sizes = [8, 32], strides = [1, 1]} : vector<16x32xf32> to vector<8x32xf32>
    %220 = arith.index_cast %190 : i32 to index
    %c0_58 = arith.constant 0 : index
    %221 = vector.load %arg19[%220, %c0_58] : memref<64x64xf32, #tpu.memory_space<vmem>>, vector<8x32xf32>
    tpu.vector_store %arg19[%220, %c0_58], %219 {strides = array<i32>} : memref<64x64xf32, #tpu.memory_space<vmem>>, vector<8x32xf32>,
    %222 = vector.extract_strided_slice %218 {offsets = [8, 0], sizes = [8, 32], strides = [1, 1]} : vector<16x32xf32> to vector<8x32xf32>
    %223 = arith.index_cast %193 : i32 to index
    %c32_59 = arith.constant 32 : index
    %224 = vector.load %arg19[%223, %c32_59] : memref<64x64xf32, #tpu.memory_space<vmem>>, vector<8x32xf32>
    tpu.vector_store %arg19[%223, %c32_59], %222 {strides = array<i32>} : memref<64x64xf32, #tpu.memory_space<vmem>>, vector<8x32xf32>,
    %c6_i32 = arith.constant 6 : i32
    %c8_i32_60 = arith.constant 8 : i32
    %225 = arith.muli %c6_i32, %c8_i32_60 : i32
    %226 = tpu.assume_multiple %225, 8 : i32
    %c7_i32_61 = arith.constant 7 : i32
    %227 = arith.subi %c7_i32_61, %c6_i32 : i32
    %c8_i32_62 = arith.constant 8 : i32
    %228 = arith.muli %227, %c8_i32_62 : i32
    %229 = tpu.assume_multiple %228, 8 : i32
    %cst_63 = arith.constant dense<0.000000e+00> : vector<16x256xf32>
    %230 = tpu.matmul %218, %7, %cst_63 {dimension_numbers = #tpu.dot_dimension_numbers<[1], [0], [0], [1], [0, 0, 1, 1], [], []>} : vector<16x32xf32>, vector<32x256xf32>, vector<16x256xf32> -> vector<16x256xf32>
    %231 = vector.extract_strided_slice %230 {offsets = [0, 0], sizes = [8, 128], strides = [1, 1]} : vector<16x256xf32> to vector<8x128xf32>
    %232 = arith.index_cast %226 : i32 to index
    %c0_64 = arith.constant 0 : index
    %233 = vector.load %arg18[%232, %c0_64] : memref<64x256xf32, #tpu.memory_space<vmem>>, vector<8x128xf32>
    %234 = arith.addf %231, %233 : vector<8x128xf32>
    %235 = vector.extract_strided_slice %230 {offsets = [8, 128], sizes = [8, 128], strides = [1, 1]} : vector<16x256xf32> to vector<8x128xf32>
    %236 = arith.index_cast %229 : i32 to index
    %c128_65 = arith.constant 128 : index
    %237 = vector.load %arg18[%236, %c128_65] : memref<64x256xf32, #tpu.memory_space<vmem>>, vector<8x128xf32>
    %238 = arith.addf %235, %237 : vector<8x128xf32>
    %239 = tpu.concatenate %234, %238 in 0 : vector<8x128xf32>, vector<8x128xf32> -> vector<16x128xf32>
    %240 = arith.negf %239 : vector<16x128xf32>
    %241 = math.exp %240 : vector<16x128xf32>
    %cst_66 = arith.constant 1.000000e+00 : f32
    %242 = vector.broadcast %cst_66 : f32 to vector<16x128xf32>
    %243 = arith.addf %242, %241 : vector<16x128xf32>
    %244 = arith.divf %242, %243 : vector<16x128xf32>
    %245 = math.tanh %239 : vector<16x128xf32>
    %246 = vector.extract_strided_slice %244 {offsets = [0, 0], sizes = [16, 32], strides = [1, 1]} : vector<16x128xf32> to vector<16x32xf32>
    %247 = vector.extract_strided_slice %244 {offsets = [0, 32], sizes = [16, 32], strides = [1, 1]} : vector<16x128xf32> to vector<16x32xf32>
    %248 = vector.extract_strided_slice %245 {offsets = [0, 64], sizes = [16, 32], strides = [1, 1]} : vector<16x128xf32> to vector<16x32xf32>
    %249 = vector.extract_strided_slice %244 {offsets = [0, 96], sizes = [16, 32], strides = [1, 1]} : vector<16x128xf32> to vector<16x32xf32>
    %250 = arith.mulf %247, %216 : vector<16x32xf32>
    %251 = arith.mulf %246, %248 : vector<16x32xf32>
    %252 = arith.addf %250, %251 : vector<16x32xf32>
    %253 = math.tanh %252 : vector<16x32xf32>
    %254 = arith.mulf %249, %253 : vector<16x32xf32>
    %255 = vector.extract_strided_slice %254 {offsets = [0, 0], sizes = [8, 32], strides = [1, 1]} : vector<16x32xf32> to vector<8x32xf32>
    %256 = arith.index_cast %226 : i32 to index
    %c0_67 = arith.constant 0 : index
    %257 = vector.load %arg19[%256, %c0_67] : memref<64x64xf32, #tpu.memory_space<vmem>>, vector<8x32xf32>
    tpu.vector_store %arg19[%256, %c0_67], %255 {strides = array<i32>} : memref<64x64xf32, #tpu.memory_space<vmem>>, vector<8x32xf32>,
    %258 = vector.extract_strided_slice %254 {offsets = [8, 0], sizes = [8, 32], strides = [1, 1]} : vector<16x32xf32> to vector<8x32xf32>
    %259 = arith.index_cast %229 : i32 to index
    %c32_68 = arith.constant 32 : index
    %260 = vector.load %arg19[%259, %c32_68] : memref<64x64xf32, #tpu.memory_space<vmem>>, vector<8x32xf32>
    tpu.vector_store %arg19[%259, %c32_68], %258 {strides = array<i32>} : memref<64x64xf32, #tpu.memory_space<vmem>>, vector<8x32xf32>,
    %c7_i32_69 = arith.constant 7 : i32
    %c8_i32_70 = arith.constant 8 : i32
    %261 = arith.muli %c7_i32_69, %c8_i32_70 : i32
    %262 = tpu.assume_multiple %261, 8 : i32
    %c7_i32_71 = arith.constant 7 : i32
    %263 = arith.subi %c7_i32_71, %c7_i32_69 : i32
    %c8_i32_72 = arith.constant 8 : i32
    %264 = arith.muli %263, %c8_i32_72 : i32
    %265 = tpu.assume_multiple %264, 8 : i32
    %cst_73 = arith.constant dense<0.000000e+00> : vector<16x256xf32>
    %266 = tpu.matmul %254, %7, %cst_73 {dimension_numbers = #tpu.dot_dimension_numbers<[1], [0], [0], [1], [0, 0, 1, 1], [], []>} : vector<16x32xf32>, vector<32x256xf32>, vector<16x256xf32> -> vector<16x256xf32>
    %267 = vector.extract_strided_slice %266 {offsets = [0, 0], sizes = [8, 128], strides = [1, 1]} : vector<16x256xf32> to vector<8x128xf32>
    %268 = arith.index_cast %262 : i32 to index
    %c0_74 = arith.constant 0 : index
    %269 = vector.load %arg18[%268, %c0_74] : memref<64x256xf32, #tpu.memory_space<vmem>>, vector<8x128xf32>
    %270 = arith.addf %267, %269 : vector<8x128xf32>
    %271 = vector.extract_strided_slice %266 {offsets = [8, 128], sizes = [8, 128], strides = [1, 1]} : vector<16x256xf32> to vector<8x128xf32>
    %272 = arith.index_cast %265 : i32 to index
    %c128_75 = arith.constant 128 : index
    %273 = vector.load %arg18[%272, %c128_75] : memref<64x256xf32, #tpu.memory_space<vmem>>, vector<8x128xf32>
    %274 = arith.addf %271, %273 : vector<8x128xf32>
    %275 = tpu.concatenate %270, %274 in 0 : vector<8x128xf32>, vector<8x128xf32> -> vector<16x128xf32>
    %276 = arith.negf %275 : vector<16x128xf32>
    %277 = math.exp %276 : vector<16x128xf32>
    %cst_76 = arith.constant 1.000000e+00 : f32
    %278 = vector.broadcast %cst_76 : f32 to vector<16x128xf32>
    %279 = arith.addf %278, %277 : vector<16x128xf32>
    %280 = arith.divf %278, %279 : vector<16x128xf32>
    %281 = math.tanh %275 : vector<16x128xf32>
    %282 = vector.extract_strided_slice %280 {offsets = [0, 0], sizes = [16, 32], strides = [1, 1]} : vector<16x128xf32> to vector<16x32xf32>
    %283 = vector.extract_strided_slice %280 {offsets = [0, 32], sizes = [16, 32], strides = [1, 1]} : vector<16x128xf32> to vector<16x32xf32>
    %284 = vector.extract_strided_slice %281 {offsets = [0, 64], sizes = [16, 32], strides = [1, 1]} : vector<16x128xf32> to vector<16x32xf32>
    %285 = vector.extract_strided_slice %280 {offsets = [0, 96], sizes = [16, 32], strides = [1, 1]} : vector<16x128xf32> to vector<16x32xf32>
    %286 = arith.mulf %283, %252 : vector<16x32xf32>
    %287 = arith.mulf %282, %284 : vector<16x32xf32>
    %288 = arith.addf %286, %287 : vector<16x32xf32>
    %289 = math.tanh %288 : vector<16x32xf32>
    %290 = arith.mulf %285, %289 : vector<16x32xf32>
    %291 = vector.extract_strided_slice %290 {offsets = [0, 0], sizes = [8, 32], strides = [1, 1]} : vector<16x32xf32> to vector<8x32xf32>
    %292 = arith.index_cast %262 : i32 to index
    %c0_77 = arith.constant 0 : index
    %293 = vector.load %arg19[%292, %c0_77] : memref<64x64xf32, #tpu.memory_space<vmem>>, vector<8x32xf32>
    tpu.vector_store %arg19[%292, %c0_77], %291 {strides = array<i32>} : memref<64x64xf32, #tpu.memory_space<vmem>>, vector<8x32xf32>,
    %294 = vector.extract_strided_slice %290 {offsets = [8, 0], sizes = [8, 32], strides = [1, 1]} : vector<16x32xf32> to vector<8x32xf32>
    %295 = arith.index_cast %265 : i32 to index
    %c32_78 = arith.constant 32 : index
    %296 = vector.load %arg19[%295, %c32_78] : memref<64x64xf32, #tpu.memory_space<vmem>>, vector<8x32xf32>
    tpu.vector_store %arg19[%295, %c32_78], %294 {strides = array<i32>} : memref<64x64xf32, #tpu.memory_space<vmem>>, vector<8x32xf32>,
    %c8_i32_79 = arith.constant 8 : i32
    %c0_80 = arith.constant 0 : index
    %c0_81 = arith.constant 0 : index
    %297 = vector.load %arg19[%c0_80, %c0_81] : memref<64x64xf32, #tpu.memory_space<vmem>>, vector<64x64xf32>
    %c0_82 = arith.constant 0 : index
    %c0_83 = arith.constant 0 : index
    %298 = vector.load %arg4[%c0_82, %c0_83] : memref<64x128xf32, #tpu.memory_space<vmem>>, vector<64x128xf32>
    %cst_84 = arith.constant dense<0.000000e+00> : vector<64x128xf32>
    %299 = tpu.matmul %297, %298, %cst_84 {dimension_numbers = #tpu.dot_dimension_numbers<[1], [0], [0], [1], [0, 0, 1, 1], [], []>} : vector<64x64xf32>, vector<64x128xf32>, vector<64x128xf32> -> vector<64x128xf32>
    %c0_85 = arith.constant 0 : index
    %c0_86 = arith.constant 0 : index
    %300 = vector.load %arg6[%c0_85, %c0_86] : memref<1x128xf32, #tpu.memory_space<vmem>>, vector<1x128xf32>
    %301 = vector.broadcast %300 : vector<1x128xf32> to vector<64x128xf32>
    %302 = arith.addf %299, %301 : vector<64x128xf32>
    %c0_87 = arith.constant 0 : index
    %c0_88 = arith.constant 0 : index
    %303 = vector.load %arg20[%c0_87, %c0_88] : memref<64x128xf32, #tpu.memory_space<vmem>>, vector<64x128xf32>
    tpu.vector_store %arg20[%c0_87, %c0_88], %302 {strides = array<i32>} : memref<64x128xf32, #tpu.memory_space<vmem>>, vector<64x128xf32>,
    %c0_89 = arith.constant 0 : index
    %c0_90 = arith.constant 0 : index
    %304 = vector.load %arg5[%c0_89, %c0_90] : memref<32x128xf32, #tpu.memory_space<vmem>>, vector<32x128xf32>
    %cst_91 = arith.constant 0.000000e+00 : f32
    %305 = vector.broadcast %cst_91 : f32 to vector<8x32xf32>
    %c0_i32_92 = arith.constant 0 : i32
    %c8_i32_93 = arith.constant 8 : i32
    %306 = arith.muli %c0_i32_92, %c8_i32_93 : i32
    %307 = tpu.assume_multiple %306, 8 : i32
    %308 = arith.index_cast %307 : i32 to index
    %c0_94 = arith.constant 0 : index
    %309 = vector.load %arg20[%308, %c0_94] : memref<64x128xf32, #tpu.memory_space<vmem>>, vector<8x128xf32>
    %cst_95 = arith.constant dense<0.000000e+00> : vector<8x128xf32>
    %310 = tpu.matmul %305, %304, %cst_95 {dimension_numbers = #tpu.dot_dimension_numbers<[1], [0], [0], [1], [0, 0, 1, 1], [], []>} : vector<8x32xf32>, vector<32x128xf32>, vector<8x128xf32> -> vector<8x128xf32>
    %311 = arith.addf %309, %310 : vector<8x128xf32>
    %312 = arith.negf %311 : vector<8x128xf32>
    %313 = math.exp %312 : vector<8x128xf32>
    %cst_96 = arith.constant 1.000000e+00 : f32
    %314 = vector.broadcast %cst_96 : f32 to vector<8x128xf32>
    %315 = arith.addf %314, %313 : vector<8x128xf32>
    %316 = arith.divf %314, %315 : vector<8x128xf32>
    %317 = math.tanh %311 : vector<8x128xf32>
    %318 = vector.extract_strided_slice %316 {offsets = [0, 0], sizes = [8, 32], strides = [1, 1]} : vector<8x128xf32> to vector<8x32xf32>
    %319 = vector.extract_strided_slice %316 {offsets = [0, 32], sizes = [8, 32], strides = [1, 1]} : vector<8x128xf32> to vector<8x32xf32>
    %320 = vector.extract_strided_slice %317 {offsets = [0, 64], sizes = [8, 32], strides = [1, 1]} : vector<8x128xf32> to vector<8x32xf32>
    %321 = vector.extract_strided_slice %316 {offsets = [0, 96], sizes = [8, 32], strides = [1, 1]} : vector<8x128xf32> to vector<8x32xf32>
    %322 = arith.mulf %319, %305 : vector<8x32xf32>
    %323 = arith.mulf %318, %320 : vector<8x32xf32>
    %324 = arith.addf %322, %323 : vector<8x32xf32>
    %325 = math.tanh %324 : vector<8x32xf32>
    %326 = arith.mulf %321, %325 : vector<8x32xf32>
    %c1_i32_97 = arith.constant 1 : i32
    %c8_i32_98 = arith.constant 8 : i32
    %327 = arith.muli %c1_i32_97, %c8_i32_98 : i32
    %328 = tpu.assume_multiple %327, 8 : i32
    %329 = arith.index_cast %328 : i32 to index
    %c0_99 = arith.constant 0 : index
    %330 = vector.load %arg20[%329, %c0_99] : memref<64x128xf32, #tpu.memory_space<vmem>>, vector<8x128xf32>
    %cst_100 = arith.constant dense<0.000000e+00> : vector<8x128xf32>
    %331 = tpu.matmul %326, %304, %cst_100 {dimension_numbers = #tpu.dot_dimension_numbers<[1], [0], [0], [1], [0, 0, 1, 1], [], []>} : vector<8x32xf32>, vector<32x128xf32>, vector<8x128xf32> -> vector<8x128xf32>
    %332 = arith.addf %330, %331 : vector<8x128xf32>
    %333 = arith.negf %332 : vector<8x128xf32>
    %334 = math.exp %333 : vector<8x128xf32>
    %cst_101 = arith.constant 1.000000e+00 : f32
    %335 = vector.broadcast %cst_101 : f32 to vector<8x128xf32>
    %336 = arith.addf %335, %334 : vector<8x128xf32>
    %337 = arith.divf %335, %336 : vector<8x128xf32>
    %338 = math.tanh %332 : vector<8x128xf32>
    %339 = vector.extract_strided_slice %337 {offsets = [0, 0], sizes = [8, 32], strides = [1, 1]} : vector<8x128xf32> to vector<8x32xf32>
    %340 = vector.extract_strided_slice %337 {offsets = [0, 32], sizes = [8, 32], strides = [1, 1]} : vector<8x128xf32> to vector<8x32xf32>
    %341 = vector.extract_strided_slice %338 {offsets = [0, 64], sizes = [8, 32], strides = [1, 1]} : vector<8x128xf32> to vector<8x32xf32>
    %342 = vector.extract_strided_slice %337 {offsets = [0, 96], sizes = [8, 32], strides = [1, 1]} : vector<8x128xf32> to vector<8x32xf32>
    %343 = arith.mulf %340, %324 : vector<8x32xf32>
    %344 = arith.mulf %339, %341 : vector<8x32xf32>
    %345 = arith.addf %343, %344 : vector<8x32xf32>
    %346 = math.tanh %345 : vector<8x32xf32>
    %347 = arith.mulf %342, %346 : vector<8x32xf32>
    %c2_i32_102 = arith.constant 2 : i32
    %c8_i32_103 = arith.constant 8 : i32
    %348 = arith.muli %c2_i32_102, %c8_i32_103 : i32
    %349 = tpu.assume_multiple %348, 8 : i32
    %350 = arith.index_cast %349 : i32 to index
    %c0_104 = arith.constant 0 : index
    %351 = vector.load %arg20[%350, %c0_104] : memref<64x128xf32, #tpu.memory_space<vmem>>, vector<8x128xf32>
    %cst_105 = arith.constant dense<0.000000e+00> : vector<8x128xf32>
    %352 = tpu.matmul %347, %304, %cst_105 {dimension_numbers = #tpu.dot_dimension_numbers<[1], [0], [0], [1], [0, 0, 1, 1], [], []>} : vector<8x32xf32>, vector<32x128xf32>, vector<8x128xf32> -> vector<8x128xf32>
    %353 = arith.addf %351, %352 : vector<8x128xf32>
    %354 = arith.negf %353 : vector<8x128xf32>
    %355 = math.exp %354 : vector<8x128xf32>
    %cst_106 = arith.constant 1.000000e+00 : f32
    %356 = vector.broadcast %cst_106 : f32 to vector<8x128xf32>
    %357 = arith.addf %356, %355 : vector<8x128xf32>
    %358 = arith.divf %356, %357 : vector<8x128xf32>
    %359 = math.tanh %353 : vector<8x128xf32>
    %360 = vector.extract_strided_slice %358 {offsets = [0, 0], sizes = [8, 32], strides = [1, 1]} : vector<8x128xf32> to vector<8x32xf32>
    %361 = vector.extract_strided_slice %358 {offsets = [0, 32], sizes = [8, 32], strides = [1, 1]} : vector<8x128xf32> to vector<8x32xf32>
    %362 = vector.extract_strided_slice %359 {offsets = [0, 64], sizes = [8, 32], strides = [1, 1]} : vector<8x128xf32> to vector<8x32xf32>
    %363 = vector.extract_strided_slice %358 {offsets = [0, 96], sizes = [8, 32], strides = [1, 1]} : vector<8x128xf32> to vector<8x32xf32>
    %364 = arith.mulf %361, %345 : vector<8x32xf32>
    %365 = arith.mulf %360, %362 : vector<8x32xf32>
    %366 = arith.addf %364, %365 : vector<8x32xf32>
    %367 = math.tanh %366 : vector<8x32xf32>
    %368 = arith.mulf %363, %367 : vector<8x32xf32>
    %c3_i32_107 = arith.constant 3 : i32
    %c8_i32_108 = arith.constant 8 : i32
    %369 = arith.muli %c3_i32_107, %c8_i32_108 : i32
    %370 = tpu.assume_multiple %369, 8 : i32
    %371 = arith.index_cast %370 : i32 to index
    %c0_109 = arith.constant 0 : index
    %372 = vector.load %arg20[%371, %c0_109] : memref<64x128xf32, #tpu.memory_space<vmem>>, vector<8x128xf32>
    %cst_110 = arith.constant dense<0.000000e+00> : vector<8x128xf32>
    %373 = tpu.matmul %368, %304, %cst_110 {dimension_numbers = #tpu.dot_dimension_numbers<[1], [0], [0], [1], [0, 0, 1, 1], [], []>} : vector<8x32xf32>, vector<32x128xf32>, vector<8x128xf32> -> vector<8x128xf32>
    %374 = arith.addf %372, %373 : vector<8x128xf32>
    %375 = arith.negf %374 : vector<8x128xf32>
    %376 = math.exp %375 : vector<8x128xf32>
    %cst_111 = arith.constant 1.000000e+00 : f32
    %377 = vector.broadcast %cst_111 : f32 to vector<8x128xf32>
    %378 = arith.addf %377, %376 : vector<8x128xf32>
    %379 = arith.divf %377, %378 : vector<8x128xf32>
    %380 = math.tanh %374 : vector<8x128xf32>
    %381 = vector.extract_strided_slice %379 {offsets = [0, 0], sizes = [8, 32], strides = [1, 1]} : vector<8x128xf32> to vector<8x32xf32>
    %382 = vector.extract_strided_slice %379 {offsets = [0, 32], sizes = [8, 32], strides = [1, 1]} : vector<8x128xf32> to vector<8x32xf32>
    %383 = vector.extract_strided_slice %380 {offsets = [0, 64], sizes = [8, 32], strides = [1, 1]} : vector<8x128xf32> to vector<8x32xf32>
    %384 = vector.extract_strided_slice %379 {offsets = [0, 96], sizes = [8, 32], strides = [1, 1]} : vector<8x128xf32> to vector<8x32xf32>
    %385 = arith.mulf %382, %366 : vector<8x32xf32>
    %386 = arith.mulf %381, %383 : vector<8x32xf32>
    %387 = arith.addf %385, %386 : vector<8x32xf32>
    %388 = math.tanh %387 : vector<8x32xf32>
    %389 = arith.mulf %384, %388 : vector<8x32xf32>
    %c4_i32_112 = arith.constant 4 : i32
    %c8_i32_113 = arith.constant 8 : i32
    %390 = arith.muli %c4_i32_112, %c8_i32_113 : i32
    %391 = tpu.assume_multiple %390, 8 : i32
    %392 = arith.index_cast %391 : i32 to index
    %c0_114 = arith.constant 0 : index
    %393 = vector.load %arg20[%392, %c0_114] : memref<64x128xf32, #tpu.memory_space<vmem>>, vector<8x128xf32>
    %cst_115 = arith.constant dense<0.000000e+00> : vector<8x128xf32>
    %394 = tpu.matmul %389, %304, %cst_115 {dimension_numbers = #tpu.dot_dimension_numbers<[1], [0], [0], [1], [0, 0, 1, 1], [], []>} : vector<8x32xf32>, vector<32x128xf32>, vector<8x128xf32> -> vector<8x128xf32>
    %395 = arith.addf %393, %394 : vector<8x128xf32>
    %396 = arith.negf %395 : vector<8x128xf32>
    %397 = math.exp %396 : vector<8x128xf32>
    %cst_116 = arith.constant 1.000000e+00 : f32
    %398 = vector.broadcast %cst_116 : f32 to vector<8x128xf32>
    %399 = arith.addf %398, %397 : vector<8x128xf32>
    %400 = arith.divf %398, %399 : vector<8x128xf32>
    %401 = math.tanh %395 : vector<8x128xf32>
    %402 = vector.extract_strided_slice %400 {offsets = [0, 0], sizes = [8, 32], strides = [1, 1]} : vector<8x128xf32> to vector<8x32xf32>
    %403 = vector.extract_strided_slice %400 {offsets = [0, 32], sizes = [8, 32], strides = [1, 1]} : vector<8x128xf32> to vector<8x32xf32>
    %404 = vector.extract_strided_slice %401 {offsets = [0, 64], sizes = [8, 32], strides = [1, 1]} : vector<8x128xf32> to vector<8x32xf32>
    %405 = vector.extract_strided_slice %400 {offsets = [0, 96], sizes = [8, 32], strides = [1, 1]} : vector<8x128xf32> to vector<8x32xf32>
    %406 = arith.mulf %403, %387 : vector<8x32xf32>
    %407 = arith.mulf %402, %404 : vector<8x32xf32>
    %408 = arith.addf %406, %407 : vector<8x32xf32>
    %409 = math.tanh %408 : vector<8x32xf32>
    %410 = arith.mulf %405, %409 : vector<8x32xf32>
    %c5_i32_117 = arith.constant 5 : i32
    %c8_i32_118 = arith.constant 8 : i32
    %411 = arith.muli %c5_i32_117, %c8_i32_118 : i32
    %412 = tpu.assume_multiple %411, 8 : i32
    %413 = arith.index_cast %412 : i32 to index
    %c0_119 = arith.constant 0 : index
    %414 = vector.load %arg20[%413, %c0_119] : memref<64x128xf32, #tpu.memory_space<vmem>>, vector<8x128xf32>
    %cst_120 = arith.constant dense<0.000000e+00> : vector<8x128xf32>
    %415 = tpu.matmul %410, %304, %cst_120 {dimension_numbers = #tpu.dot_dimension_numbers<[1], [0], [0], [1], [0, 0, 1, 1], [], []>} : vector<8x32xf32>, vector<32x128xf32>, vector<8x128xf32> -> vector<8x128xf32>
    %416 = arith.addf %414, %415 : vector<8x128xf32>
    %417 = arith.negf %416 : vector<8x128xf32>
    %418 = math.exp %417 : vector<8x128xf32>
    %cst_121 = arith.constant 1.000000e+00 : f32
    %419 = vector.broadcast %cst_121 : f32 to vector<8x128xf32>
    %420 = arith.addf %419, %418 : vector<8x128xf32>
    %421 = arith.divf %419, %420 : vector<8x128xf32>
    %422 = math.tanh %416 : vector<8x128xf32>
    %423 = vector.extract_strided_slice %421 {offsets = [0, 0], sizes = [8, 32], strides = [1, 1]} : vector<8x128xf32> to vector<8x32xf32>
    %424 = vector.extract_strided_slice %421 {offsets = [0, 32], sizes = [8, 32], strides = [1, 1]} : vector<8x128xf32> to vector<8x32xf32>
    %425 = vector.extract_strided_slice %422 {offsets = [0, 64], sizes = [8, 32], strides = [1, 1]} : vector<8x128xf32> to vector<8x32xf32>
    %426 = vector.extract_strided_slice %421 {offsets = [0, 96], sizes = [8, 32], strides = [1, 1]} : vector<8x128xf32> to vector<8x32xf32>
    %427 = arith.mulf %424, %408 : vector<8x32xf32>
    %428 = arith.mulf %423, %425 : vector<8x32xf32>
    %429 = arith.addf %427, %428 : vector<8x32xf32>
    %430 = math.tanh %429 : vector<8x32xf32>
    %431 = arith.mulf %426, %430 : vector<8x32xf32>
    %c6_i32_122 = arith.constant 6 : i32
    %c8_i32_123 = arith.constant 8 : i32
    %432 = arith.muli %c6_i32_122, %c8_i32_123 : i32
    %433 = tpu.assume_multiple %432, 8 : i32
    %434 = arith.index_cast %433 : i32 to index
    %c0_124 = arith.constant 0 : index
    %435 = vector.load %arg20[%434, %c0_124] : memref<64x128xf32, #tpu.memory_space<vmem>>, vector<8x128xf32>
    %cst_125 = arith.constant dense<0.000000e+00> : vector<8x128xf32>
    %436 = tpu.matmul %431, %304, %cst_125 {dimension_numbers = #tpu.dot_dimension_numbers<[1], [0], [0], [1], [0, 0, 1, 1], [], []>} : vector<8x32xf32>, vector<32x128xf32>, vector<8x128xf32> -> vector<8x128xf32>
    %437 = arith.addf %435, %436 : vector<8x128xf32>
    %438 = arith.negf %437 : vector<8x128xf32>
    %439 = math.exp %438 : vector<8x128xf32>
    %cst_126 = arith.constant 1.000000e+00 : f32
    %440 = vector.broadcast %cst_126 : f32 to vector<8x128xf32>
    %441 = arith.addf %440, %439 : vector<8x128xf32>
    %442 = arith.divf %440, %441 : vector<8x128xf32>
    %443 = math.tanh %437 : vector<8x128xf32>
    %444 = vector.extract_strided_slice %442 {offsets = [0, 0], sizes = [8, 32], strides = [1, 1]} : vector<8x128xf32> to vector<8x32xf32>
    %445 = vector.extract_strided_slice %442 {offsets = [0, 32], sizes = [8, 32], strides = [1, 1]} : vector<8x128xf32> to vector<8x32xf32>
    %446 = vector.extract_strided_slice %443 {offsets = [0, 64], sizes = [8, 32], strides = [1, 1]} : vector<8x128xf32> to vector<8x32xf32>
    %447 = vector.extract_strided_slice %442 {offsets = [0, 96], sizes = [8, 32], strides = [1, 1]} : vector<8x128xf32> to vector<8x32xf32>
    %448 = arith.mulf %445, %429 : vector<8x32xf32>
    %449 = arith.mulf %444, %446 : vector<8x32xf32>
    %450 = arith.addf %448, %449 : vector<8x32xf32>
    %451 = math.tanh %450 : vector<8x32xf32>
    %452 = arith.mulf %447, %451 : vector<8x32xf32>
    %c7_i32_127 = arith.constant 7 : i32
    %c8_i32_128 = arith.constant 8 : i32
    %453 = arith.muli %c7_i32_127, %c8_i32_128 : i32
    %454 = tpu.assume_multiple %453, 8 : i32
    %455 = arith.index_cast %454 : i32 to index
    %c0_129 = arith.constant 0 : index
    %456 = vector.load %arg20[%455, %c0_129] : memref<64x128xf32, #tpu.memory_space<vmem>>, vector<8x128xf32>
    %cst_130 = arith.constant dense<0.000000e+00> : vector<8x128xf32>
    %457 = tpu.matmul %452, %304, %cst_130 {dimension_numbers = #tpu.dot_dimension_numbers<[1], [0], [0], [1], [0, 0, 1, 1], [], []>} : vector<8x32xf32>, vector<32x128xf32>, vector<8x128xf32> -> vector<8x128xf32>
    %458 = arith.addf %456, %457 : vector<8x128xf32>
    %459 = arith.negf %458 : vector<8x128xf32>
    %460 = math.exp %459 : vector<8x128xf32>
    %cst_131 = arith.constant 1.000000e+00 : f32
    %461 = vector.broadcast %cst_131 : f32 to vector<8x128xf32>
    %462 = arith.addf %461, %460 : vector<8x128xf32>
    %463 = arith.divf %461, %462 : vector<8x128xf32>
    %464 = math.tanh %458 : vector<8x128xf32>
    %465 = vector.extract_strided_slice %463 {offsets = [0, 0], sizes = [8, 32], strides = [1, 1]} : vector<8x128xf32> to vector<8x32xf32>
    %466 = vector.extract_strided_slice %463 {offsets = [0, 32], sizes = [8, 32], strides = [1, 1]} : vector<8x128xf32> to vector<8x32xf32>
    %467 = vector.extract_strided_slice %464 {offsets = [0, 64], sizes = [8, 32], strides = [1, 1]} : vector<8x128xf32> to vector<8x32xf32>
    %468 = vector.extract_strided_slice %463 {offsets = [0, 96], sizes = [8, 32], strides = [1, 1]} : vector<8x128xf32> to vector<8x32xf32>
    %469 = arith.mulf %466, %450 : vector<8x32xf32>
    %470 = arith.mulf %465, %467 : vector<8x32xf32>
    %471 = arith.addf %469, %470 : vector<8x32xf32>
    %472 = math.tanh %471 : vector<8x32xf32>
    %473 = arith.mulf %468, %472 : vector<8x32xf32>
    %c8_i32_132 = arith.constant 8 : i32
    %c56 = arith.constant 56 : index
    %c0_133 = arith.constant 0 : index
    %474 = vector.load %arg19[%c56, %c0_133] : memref<64x64xf32, #tpu.memory_space<vmem>>, vector<8x64xf32>
    %c0_134 = arith.constant 0 : index
    %c0_135 = arith.constant 0 : index
    %475 = vector.load %arg7[%c0_134, %c0_135] : memref<64x128xf32, #tpu.memory_space<vmem>>, vector<64x128xf32>
    %cst_136 = arith.constant dense<0.000000e+00> : vector<8x128xf32>
    %476 = tpu.matmul %474, %475, %cst_136 {dimension_numbers = #tpu.dot_dimension_numbers<[1], [0], [0], [1], [0, 0, 1, 1], [], []>} : vector<8x64xf32>, vector<64x128xf32>, vector<8x128xf32> -> vector<8x128xf32>
    %c0_137 = arith.constant 0 : index
    %c0_138 = arith.constant 0 : index
    %477 = vector.load %arg8[%c0_137, %c0_138] : memref<1x128xf32, #tpu.memory_space<vmem>>, vector<1x128xf32>
    %478 = vector.broadcast %477 : vector<1x128xf32> to vector<8x128xf32>
    %479 = arith.addf %476, %478 : vector<8x128xf32>
    %cst_139 = arith.constant 0.000000e+00 : f32
    %480 = vector.broadcast %cst_139 : f32 to vector<8x32xf32>
    %481 = arith.negf %479 : vector<8x128xf32>
    %482 = math.exp %481 : vector<8x128xf32>
    %cst_140 = arith.constant 1.000000e+00 : f32
    %483 = vector.broadcast %cst_140 : f32 to vector<8x128xf32>
    %484 = arith.addf %483, %482 : vector<8x128xf32>
    %485 = arith.divf %483, %484 : vector<8x128xf32>
    %486 = math.tanh %479 : vector<8x128xf32>
    %487 = vector.extract_strided_slice %485 {offsets = [0, 0], sizes = [8, 32], strides = [1, 1]} : vector<8x128xf32> to vector<8x32xf32>
    %488 = vector.extract_strided_slice %485 {offsets = [0, 32], sizes = [8, 32], strides = [1, 1]} : vector<8x128xf32> to vector<8x32xf32>
    %489 = vector.extract_strided_slice %486 {offsets = [0, 64], sizes = [8, 32], strides = [1, 1]} : vector<8x128xf32> to vector<8x32xf32>
    %490 = vector.extract_strided_slice %485 {offsets = [0, 96], sizes = [8, 32], strides = [1, 1]} : vector<8x128xf32> to vector<8x32xf32>
    %491 = arith.mulf %488, %480 : vector<8x32xf32>
    %492 = arith.mulf %487, %489 : vector<8x32xf32>
    %493 = arith.addf %491, %492 : vector<8x32xf32>
    %494 = math.tanh %493 : vector<8x32xf32>
    %495 = arith.mulf %490, %494 : vector<8x32xf32>
    %496 = tpu.concatenate %473, %495 in 1 : vector<8x32xf32>, vector<8x32xf32> -> vector<8x64xf32>
    %c0_141 = arith.constant 0 : index
    %c0_142 = arith.constant 0 : index
    %497 = vector.load %arg9[%c0_141, %c0_142] : memref<64x896xf32, #tpu.memory_space<vmem>>, vector<64x896xf32>
    %cst_143 = arith.constant dense<0.000000e+00> : vector<8x896xf32>
    %498 = tpu.matmul %496, %497, %cst_143 {dimension_numbers = #tpu.dot_dimension_numbers<[1], [0], [0], [1], [0, 0, 1, 1], [], []>} : vector<8x64xf32>, vector<64x896xf32>, vector<8x896xf32> -> vector<8x896xf32>
    %c0_144 = arith.constant 0 : index
    %c0_145 = arith.constant 0 : index
    %499 = vector.load %arg10[%c0_144, %c0_145] : memref<1x896xf32, #tpu.memory_space<vmem>>, vector<1x896xf32>
    %500 = vector.broadcast %499 : vector<1x896xf32> to vector<8x896xf32>
    %501 = arith.addf %498, %500 : vector<8x896xf32>
    %c0_146 = arith.constant 0 : index
    %c0_147 = arith.constant 0 : index
    %502 = vector.load %arg11[%c0_146, %c0_147] : memref<896x640xf32, #tpu.memory_space<vmem>>, vector<896x640xf32>
    %cst_148 = arith.constant dense<0.000000e+00> : vector<8x640xf32>
    %503 = tpu.matmul %501, %502, %cst_148 {dimension_numbers = #tpu.dot_dimension_numbers<[1], [0], [0], [1], [0, 0, 1, 1], [], []>} : vector<8x896xf32>, vector<896x640xf32>, vector<8x640xf32> -> vector<8x640xf32>
    %c0_149 = arith.constant 0 : index
    %c0_150 = arith.constant 0 : index
    %504 = vector.load %arg12[%c0_149, %c0_150] : memref<1x640xf32, #tpu.memory_space<vmem>>, vector<1x640xf32>
    %505 = vector.broadcast %504 : vector<1x640xf32> to vector<8x640xf32>
    %506 = arith.addf %503, %505 : vector<8x640xf32>
    %c0_151 = arith.constant 0 : index
    %c0_152 = arith.constant 0 : index
    %507 = vector.load %arg13[%c0_151, %c0_152] : memref<640x128xf32, #tpu.memory_space<vmem>>, vector<640x128xf32>
    %cst_153 = arith.constant dense<0.000000e+00> : vector<8x128xf32>
    %508 = tpu.matmul %506, %507, %cst_153 {dimension_numbers = #tpu.dot_dimension_numbers<[1], [0], [0], [1], [0, 0, 1, 1], [], []>} : vector<8x640xf32>, vector<640x128xf32>, vector<8x128xf32> -> vector<8x128xf32>
    %c0_154 = arith.constant 0 : index
    %c0_155 = arith.constant 0 : index
    %509 = vector.load %arg14[%c0_154, %c0_155] : memref<1x128xf32, #tpu.memory_space<vmem>>, vector<1x128xf32>
    %510 = vector.broadcast %509 : vector<1x128xf32> to vector<8x128xf32>
    %511 = arith.addf %508, %510 : vector<8x128xf32>
    %c0_156 = arith.constant 0 : index
    %c0_157 = arith.constant 0 : index
    %512 = vector.load %arg15[%c0_156, %c0_157] : memref<128x1xf32, #tpu.memory_space<vmem>>, vector<128x1xf32>
    %cst_158 = arith.constant dense<0.000000e+00> : vector<8x1xf32>
    %513 = tpu.matmul %511, %512, %cst_158 {dimension_numbers = #tpu.dot_dimension_numbers<[1], [0], [0], [1], [0, 0, 1, 1], [], []>} : vector<8x128xf32>, vector<128x1xf32>, vector<8x1xf32> -> vector<8x1xf32>
    %c0_159 = arith.constant 0 : index
    %c0_160 = arith.constant 0 : index
    %514 = vector.load %arg16[%c0_159, %c0_160] : memref<1x1xf32, #tpu.memory_space<vmem>>, vector<1x1xf32>
    %515 = vector.broadcast %514 : vector<1x1xf32> to vector<8x1xf32>
    %516 = arith.addf %513, %515 : vector<8x1xf32>
    %517 = arith.negf %516 : vector<8x1xf32>
    %518 = math.exp %517 : vector<8x1xf32>
    %cst_161 = arith.constant 1.000000e+00 : f32
    %519 = vector.broadcast %cst_161 : f32 to vector<8x1xf32>
    %520 = arith.addf %519, %518 : vector<8x1xf32>
    %521 = arith.divf %519, %520 : vector<8x1xf32>
    %c0_162 = arith.constant 0 : index
    %c0_163 = arith.constant 0 : index
    %522 = vector.load %arg17[%c0_162, %c0_163] : memref<8x1xf32, #tpu.memory_space<vmem>>, vector<8x1xf32>
    tpu.vector_store %arg17[%c0_162, %c0_163], %521 {strides = array<i32>} : memref<8x1xf32, #tpu.memory_space<vmem>>, vector<8x1xf32>,
    return
  }
}

</mosaic_0001>

<bundles_post_ra>
// kernel: discriminator_forward.1
= control target key start
LH: loop header
LB: loop body
LE: loop exit
PB: predicated region body
PF: predicated region fallthrough
CT: control target
= control target key end

     0   :  { %v6479_v3 = vmov 0.0   ;;  %vm82_vm0 = vcmask 130048   ;;  %v72_v27 = vlaneseq  ;;  %s6481_s23 = smov 32   ;;  %vm244_vm1 = vcmask 261120   ;;  %s9405_s1 = inlined_call_operand.vmem [shape: f32[16,256], index: 1, kind: input, shape index: {}]   ;;  %s9406_s2 = inlined_call_operand.vmem [shape: f32[32,256], index: 2, kind: input, shape index: {}]   ;;  %s9407_s0 = inlined_call_operand.vmem [shape: f32[64,16], index: 0, kind: input, shape index: {}]   ;;  %s9408_s3 = inlined_call_operand.vmem [shape: f32[1,256], index: 3, kind: input, shape index: {}]   ;;  %s9409_s4 = inlined_call_operand.vmem [shape: f32[64,128], index: 4, kind: input, shape index: {}]   ;;  %s9410_s5 = inlined_call_operand.vmem [shape: f32[32,128], index: 5, kind: input, shape index: {}]   ;;  %s9411_s6 = inlined_call_operand.vmem [shape: f32[1,128], index: 6, kind: input, shape index: {}]   ;;  %s9412_s7 = inlined_call_operand.vmem [shape: f32[64,128], index: 7, kind: input, shape index: {}]   ;;  %s9413_s8 = inlined_call_operand.vmem [shape: f32[1,128], index: 8, kind: input, shape index: {}]   ;;  %s9414_s9 = inlined_call_operand.vmem [shape: f32[64,896], index: 9, kind: input, shape index: {}]   ;;  %s9415_s11 = inlined_call_operand.vmem [shape: f32[896,640], index: 11, kind: input, shape index: {}]   ;;  %s9416_s10 = inlined_call_operand.vmem [shape: f32[1,896], index: 10, kind: input, shape index: {}]   ;;  %s9417_s13 = inlined_call_operand.vmem [shape: f32[640,128], index: 13, kind: input, shape index: {}]   ;;  %s9418_s12 = inlined_call_operand.vmem [shape: f32[1,640], index: 12, kind: input, shape index: {}]   ;;  %s9419_s15 = inlined_call_operand.vmem [shape: f32[128,1], index: 15, kind: input, shape index: {}]   ;;  %s9420_s16 = inlined_call_operand.<no memory space> [shape: f32[1,1], index: 16, kind: input, shape index: {}]   ;;  %s9421_s14 = inlined_call_operand.vmem [shape: f32[1,128], index: 14, kind: input, shape index: {}]   ;;  %s9422_s17 = inlined_call_operand.vmem [shape: f32[8,1], index: 17, kind: output, shape index: {}]  }
   0x1   :  { %9425 = sst [smem:[#allocation6_spill]] %s9405_s1  ;;  %171 = vmatprep.mubr.f32.mxu0 %v6479_v3  ;;  %463 = vmatprep.mubr.f32.mxu1 %v6479_v3  ;;  %v58_v12 = vld [vmem:[%s9407_s0] sm:$0xff]  ;;  %v59_v19 = vld [vmem:[%s9407_s0 + $0x8] sm:$0xff]  ;;  %v60_v21 = vld [vmem:[%s9407_s0 + $0x10] sm:$0xff]  ;;  %vm6483_vm2 = vmmov 0   ;;  %vm391_vm3 = vcmask 523520  }
   0x2   :  { %9426 = sst [smem:[#allocation7_spill]] %s9406_s2  ;;  %s9427_s26 = sld [smem:[#allocation6_spill]]  ;;  %v61_v22 = vld [vmem:[%s9407_s0 + $0x18] sm:$0xff]  ;;  %v62_v23 = vld [vmem:[%s9407_s0 + $0x20] sm:$0xff]  ;;  %v63_v24 = vld [vmem:[%s9407_s0 + $0x28] sm:$0xff]  ;;  %v6678_v28 = vshrl.u32 %v72_v27, 7 }
   0x3   :  { %s9428_s20 = sld [smem:[#allocation7_spill]]  ;;  %v64_v25 = vld [vmem:[%s9407_s0 + $0x30] sm:$0xff]  ;;  %v65_v26 = vld [vmem:[%s9407_s0 + $0x38] sm:$0xff]  ;;  %v70_v30 = vld [vmem:[%s9408_s3] sm:$0x3]  ;;  %s6480_s3 = smov 64  }
   0x4   :  { %v6681_v29 = vsub.s32 1, %v6678_v28  ;;  %v6688_v32 = vsub.s32 0, %v6678_v28  ;;  %vm1441_vm4 = vcmask 523264   ;;  %vm4725_vm5 = vcmask 7168  }
   0x6   :  { %v79_v31 = vrot.slane %v70_v30, %v6681_v29  ;;  %v75_v36 = vrot.slane %v70_v30, %v6688_v32 }
   0x8   :  { %v67_v0 = vld [vmem:[%s9427_s26 + $0x8] sm:$0xff]  ;;  %v69_v1 = vld [vmem:[%s9427_s26 + $0x18] sm:$0xff]  ;;  %v66_v2 = vld [vmem:[%s9427_s26] sm:$0xff] }
   0x9   :  { %v5369_v4 = vpack.c.bf16 %v69_v1, %v67_v0  ;;  %v68_v5 = vld [vmem:[%s9427_s26 + $0x10] sm:$0xff]  ;;  %v237_v6 = vld [vmem:[%s9428_s20 + $0x8] sm:$0xff]  ;;  %v239_v8 = vld [vmem:[%s9428_s20 + $0x18] sm:$0xff] }
   0xa   :  { %v5371_v7 = vpack.c.bf16 %v68_v5, %v66_v2  ;;  %v236_v9 = vld [vmem:[%s9428_s20] sm:$0xff]  ;;  %v238_v10 = vld [vmem:[%s9428_s20 + $0x10] sm:$0xff]  ;;  %v6600_v11 = vpack.c.bf16 %v239_v8, %v237_v6  ;;  %v241_v14 = vld [vmem:[%s9428_s20 + $0x28] sm:$0xff] }
   0xb   :  { %5370 = vmatprep.subr.bf16.mxu0 %v5369_v4  ;;  %v6605_v13 = vpack.c.bf16 %v238_v10, %v236_v9  ;;  %v243_v15 = vld [vmem:[%s9428_s20 + $0x38] sm:$0xff]  ;;  %v240_v17 = vld [vmem:[%s9428_s20 + $0x20] sm:$0xff]  ;;  %v242_v18 = vld [vmem:[%s9428_s20 + $0x30] sm:$0xff] }
   0xc   :  { %5372 = vmatpush1.bf16.msra.mxu0 %v5371_v7  ;;  %v6614_v16 = vpack.c.bf16 %v243_v15, %v241_v14  ;;  %5382 = vmatprep.subr.bf16.mxu1 %v6600_v11  ;;  %v6631_v20 = vpack.c.bf16 %v242_v18, %v240_v17 }
   0xd   :  { %5374 = vmatprep.subr.bf16.mxu0 %v6600_v11  ;;  %5384 = vmatpush1.bf16.msra.mxu1 %v6605_v13 }
   0xe   :  { %5386 = vmatprep.subr.bf16.mxu1 %v6614_v16 }
   0xf   :  { %4738 = vmatmul.mubr.msk.f32.vlgmr.msra.gmra.mrb[0].mxu0 %vm82_vm0, %v58_v12 }
  0x10   :  { %5376 = vmatpush1.bf16.msra.mxu0 %v6605_v13  ;;  %177 = vmatprep.mubr.f32.mxu0 %v6479_v3 }
  0x11   :  { %5378 = vmatprep.subr.bf16.mxu0 %v6614_v16  ;;  %5388 = vmatpush1.bf16.msra.mxu1 %v6631_v20 }
  0x12   :  { %5390 = vmatprep.subr.bf16.mxu1 %v6600_v11 }
  0x13   :  { %4739 = vmatmul.mubr.msk.f32.gmra.mrb[2].mxu0 %vm82_vm0, %v59_v19 }
  0x14   :  { %183 = vmatprep.mubr.f32.mxu0 %v6479_v3  ;;  %5380 = vmatpush1.bf16.msra.mxu0 %v6631_v20 }
  0x15   :  { %5406 = vmatprep.subr.bf16.mxu0 %v6600_v11 }
  0x17   :  { %4740 = vmatmul.mubr.msk.f32.gmra.mrb[4].mxu0 %vm82_vm0, %v60_v21 }
  0x18   :  { %189 = vmatprep.mubr.f32.mxu0 %v6479_v3 }
  0x1b   :  { %4741 = vmatmul.mubr.msk.f32.gmra.mrb[6].mxu0 %vm82_vm0, %v61_v22 }
  0x1c   :  { %195 = vmatprep.mubr.f32.mxu0 %v6479_v3 }
  0x1f   :  { %4742 = vmatmul.mubr.msk.f32.gmra.mrb[8].mxu0 %vm82_vm0, %v62_v23 }
  0x20   :  { %201 = vmatprep.mubr.f32.mxu0 %v6479_v3 }
  0x23   :  { %4743 = vmatmul.mubr.msk.f32.gmra.mrb[10].mxu0 %vm82_vm0, %v63_v24 }
  0x24   :  { %207 = vmatprep.mubr.f32.mxu0 %v6479_v3 }
  0x27   :  { %4744 = vmatmul.mubr.msk.f32.gmra.mrb[12].mxu0 %vm82_vm0, %v64_v25 }
  0x28   :  { %213 = vmatprep.mubr.f32.mxu0 %v6479_v3 }
  0x2b   :  { %4745 = vmatmul.mubr.msk.f32.gmra.mrb[14].mxu0 %vm82_vm0, %v65_v26 }
  0x2c   :  { %312 = vmatprep.mubr.f32.mxu0 %v6479_v3 }
  0x2f   :  { %313 = vmatmul.mubr.f32.vlgmr.msra.gmra.mrb[16].mxu0 %v6479_v3 }
  0x30   :  { %317 = vmatprep.mubr.f32.mxu0 %v6479_v3  ;;  %5408 = vmatpush1.bf16.msra.mxu0 %v6605_v13 }
  0x31   :  { %5410 = vmatprep.subr.bf16.mxu0 %v6614_v16 }
  0x33   :  { %318 = vmatmul.mubr.f32.gmra.mrb[18].mxu0 %v6479_v3 }
  0x34   :  { %5412 = vmatpush1.bf16.msra.mxu0 %v6631_v20  ;;  %916 = vmatprep.mubr.f32.mxu0 %v6479_v3 }
  0x35   :  { %5422 = vmatprep.subr.bf16.mxu0 %v6600_v11 }
  0xe2   :  { %v173_v33 = vpop.f32.mrb[0].mxu0 }
  0xe3   :  { %v175_v34 = vpop.f32.mrb[1].mxu0  ;;  %v174_v0 = vadd.f32 %v173_v33, %v75_v36 }
  0xe4   :  { %v6690_v35 = vadd.f32 %v175_v34, %v79_v31 }
  0xe6   :  { %v179_v37 = vpop.f32.mrb[2].mxu0 }
  0xe7   :  { %v6693_v38 = vadd.f32 %v179_v37, %v75_v36  ;;  %v181_v39 = vpop.f32.mrb[3].mxu0 }
  0xe8   :  { %v6695_v40 = vadd.f32 %v181_v39, %v79_v31 }
  0xea   :  { %v185_v41 = vpop.f32.mrb[4].mxu0 }
  0xeb   :  { %v6697_v42 = vadd.f32 %v185_v41, %v75_v36  ;;  %v187_v43 = vpop.f32.mrb[5].mxu0 }
  0xec   :  { %v6699_v44 = vadd.f32 %v187_v43, %v79_v31 }
  0xee   :  { %v191_v45 = vpop.f32.mrb[6].mxu0 }
  0xef   :  { %v6701_v46 = vadd.f32 %v191_v45, %v75_v36  ;;  %v193_v47 = vpop.f32.mrb[7].mxu0 }
  0xf0   :  { %v6703_v48 = vadd.f32 %v193_v47, %v79_v31 }
  0xf2   :  { %v197_v49 = vpop.f32.mrb[8].mxu0 }
  0xf3   :  { %v6705_v50 = vadd.f32 %v197_v49, %v75_v36  ;;  %v199_v51 = vpop.f32.mrb[9].mxu0 }
  0xf4   :  { %v6707_v52 = vadd.f32 %v199_v51, %v79_v31 }
  0xf6   :  { %v203_v53 = vpop.f32.mrb[10].mxu0 }
  0xf7   :  { %v6709_v54 = vadd.f32 %v203_v53, %v75_v36  ;;  %v205_v55 = vpop.f32.mrb[11].mxu0 }
  0xf8   :  { %v6711_v56 = vadd.f32 %v205_v55, %v79_v31 }
  0xfa   :  { %v209_v57 = vpop.f32.mrb[12].mxu0 }
  0xfb   :  { %v6713_v58 = vadd.f32 %v209_v57, %v75_v36  ;;  %v211_v59 = vpop.f32.mrb[13].mxu0 }
  0xfc   :  { %v6715_v60 = vadd.f32 %v211_v59, %v79_v31 }
  0xfe   :  { %v215_v61 = vpop.f32.mrb[14].mxu0 }
  0xff   :  { %v6717_v62 = vadd.f32 %v215_v61, %v75_v36  ;;  %v217_v63 = vpop.f32.mrb[15].mxu0 }
 0x100   :  { %v218_v5 = vadd.f32 %v217_v63, %v79_v31 }
 0x102   :  { %v314_v1 = vpop.f32.mrb[16].mxu0 }
 0x103   :  { %v327_v2 = vadd.f32 %v314_v1, %v174_v0  ;;  %v316_v4 = vpop.f32.mrb[17].mxu0 }
 0x105   :  { %6274 = vtanh.f32 %v327_v2  ;;  %v4746_v12 = vmul.f32 -1.442695, %v327_v2 }
 0x106   :  { %v319_v6 = vpop.f32.mrb[18].mxu0 }
 0x107   :  { %v320_v7 = vpop.f32.mrb[19].mxu0 }
 0x108   :  { %v332_v8 = vadd.f32 %v320_v7, %v218_v5 }
 0x10a   :  { %6276 = vtanh.f32 %v332_v8  ;;  %v4747_v14 = vmul.f32 -1.442695, %v332_v8 }
 0x10b   :  { %6278 = vpow2.f32 %v4746_v12 }
 0x10c   :  { %6280 = vpow2.f32 %v4747_v14 }
 0x10f   :  { %v6275_v9 = vpop.eup %6274 }
 0x110   :  { %351 = vrot.lane.b32.xlu0 %v6275_v9, %s6480_s3 }
 0x114   :  { %v6277_v10 = vpop.eup %6276 }
 0x115   :  { %353 = vrot.lane.b32.xlu0 %v6277_v10, %s6480_s3  ;;  %v6279_v15 = vpop.eup %6278 }
 0x116   :  { %v339_v17 = vadd.f32 1.0, %v6279_v15  ;;  %v6281_v18 = vpop.eup %6280 }
 0x117   :  { %v340_v19 = vadd.f32 1.0, %v6281_v18 }
 0x118   :  { %6282 = vrcp.f32 %v339_v17 }
 0x119   :  { %6284 = vrcp.f32 %v340_v19 }
 0x122   :  { %v6283_v21 = vpop.eup %6282 }
 0x123   :  { %v6285_v24 = vpop.eup %6284  ;;  %v347_v27 = vmul.f32 0.0, %v6283_v21 }
 0x124   :  { %v348_v33 = vmul.f32 0.0, %v6285_v24 }
 0x182   :  { %v352_v22 = vpop.permute.xlu0 %351 }
 0x183   :  { %v357_v23 = vmul.f32 %v6283_v21, %v352_v22 }
 0x185   :  { %361 = vrot.lane.b32.xlu1 %v357_v23, %s6481_s23 }
 0x187   :  { %v354_v25 = vpop.permute.xlu0 %353 }
 0x188   :  { %v358_v26 = vmul.f32 %v6285_v24, %v354_v25 }
 0x18a   :  { %363 = vrot.lane.b32.xlu1 %v358_v26, %s6481_s23 }
 0x1f7   :  { %v362_v30 = vpop.permute.xlu1 %361 }
 0x1f8   :  { %v367_v31 = vadd.f32 %v362_v30, %v347_v27 }
 0x1fa   :  { %6286 = vtanh.f32 %v367_v31 }
 0x1fc   :  { %v364_v34 = vpop.permute.xlu1 %363 }
 0x1fd   :  { %v368_v36 = vadd.f32 %v364_v34, %v348_v33 }
 0x1ff   :  { %6288 = vtanh.f32 %v368_v36 }
 0x204   :  { %v6287_v37 = vpop.eup %6286 }
 0x205   :  { %373 = vrot.lane.b32.xlu0 %v6287_v37, %s6480_s3 }
 0x209   :  { %v6289_v39 = vpop.eup %6288 }
 0x20a   :  { %375 = vrot.lane.b32.xlu1 %v6289_v39, %s6480_s3 }
 0x277   :  { %v374_v41 = vpop.permute.xlu0 %373 }
 0x278   :  { %v379_v43 = vmul.f32 %v6283_v21, %v374_v41 }
 0x27a   :  { %382 = vrot.lane.b32.xlu0 %v379_v43, %s6481_s23 }
 0x27c   :  { %v376_v45 = vpop.permute.xlu1 %375 }
 0x27d   :  { %v6726_v47 = vmul.f32 %v6285_v24, %v376_v45 }
 0x27f   :  { %393 = vrot.lane.b32.xlu1 %v6726_v47, %s6481_s23 }
 0x2ec   :  { %v383_v49 = vpop.permute.xlu0 %382 }
 0x2ed   :  { %385 = vst.msk [vmem:[#allocation3] sm:$0xff] %vm244_vm1, %v383_v49  ;;  %4748 = vmatmul.mubr.msk.f32.vlgmr.msra.gmra.mrb[0].mxu1 %vm244_vm1, %v383_v49 }
 0x2ee   :  { %468 = vmatprep.mubr.f32.mxu1 %v6479_v3  ;;  %5392 = vmatpush1.bf16.msra.mxu1 %v6605_v13 }
 0x2ef   :  { %5394 = vmatprep.subr.bf16.mxu1 %v6614_v16 }
 0x2f1   :  { %v394_v51 = vpop.permute.xlu1 %393 }
 0x2f2   :  { %4749 = vmatmul.mubr.msk.f32.gmra.mrb[2].mxu1 %vm244_vm1, %v394_v51 }
 0x2f3   :  { %5396 = vmatpush1.bf16.msra.mxu1 %v6631_v20  ;;  %614 = vmatprep.mubr.f32.mxu1 %v6479_v3 }
 0x2f4   :  { %5398 = vmatprep.subr.bf16.mxu1 %v6600_v11 }
 0x3c0   :  { %v465_v53 = vpop.f32.mrb[0].mxu1 }
 0x3c1   :  { %v478_v55 = vadd.f32 %v465_v53, %v6693_v38  ;;  %v467_v57 = vpop.f32.mrb[1].mxu1 }
 0x3c3   :  { %6290 = vtanh.f32 %v478_v55  ;;  %v4750_v2 = vmul.f32 -1.442695, %v478_v55 }
 0x3c5   :  { %v470_v59 = vpop.f32.mrb[2].mxu1 }
 0x3c6   :  { %v471_v61 = vpop.f32.mrb[3].mxu1 }
 0x3c7   :  { %v483_v63 = vadd.f32 %v471_v61, %v6715_v60 }
 0x3c9   :  { %6292 = vtanh.f32 %v483_v63  ;;  %v4751_v4 = vmul.f32 -1.442695, %v483_v63 }
 0x3ca   :  { %6294 = vpow2.f32 %v4750_v2 }
 0x3cb   :  { %6296 = vpow2.f32 %v4751_v4 }
 0x3cd   :  { %v6291_v0 = vpop.eup %6290 }
 0x3ce   :  { %502 = vrot.lane.b32.xlu0 %v6291_v0, %s6480_s3 }
 0x3d3   :  { %v6293_v1 = vpop.eup %6292 }
 0x3d4   :  { %504 = vrot.lane.b32.xlu1 %v6293_v1, %s6480_s3  ;;  %v6295_v5 = vpop.eup %6294 }
 0x3d5   :  { %v490_v6 = vadd.f32 1.0, %v6295_v5  ;;  %v6297_v38 = vpop.eup %6296 }
 0x3d6   :  { %v491_v7 = vadd.f32 1.0, %v6297_v38 }
 0x3d7   :  { %6298 = vrcp.f32 %v490_v6 }
 0x3d8   :  { %6300 = vrcp.f32 %v491_v7 }
 0x3e1   :  { %v6299_v8 = vpop.eup %6298 }
 0x3e2   :  { %v6301_v10 = vpop.eup %6300  ;;  %v498_v15 = vmul.f32 %v6299_v8, %v367_v31 }
 0x3e3   :  { %v499_v19 = vmul.f32 %v6301_v10, %v368_v36 }
 0x440   :  { %v503_v9 = vpop.permute.xlu0 %502 }
 0x441   :  { %v508_v60 = vmul.f32 %v6299_v8, %v503_v9 }
 0x443   :  { %512 = vrot.lane.b32.xlu0 %v508_v60, %s6481_s23 }
 0x446   :  { %v505_v12 = vpop.permute.xlu1 %504 }
 0x447   :  { %v509_v14 = vmul.f32 %v6301_v10, %v505_v12 }
 0x449   :  { %514 = vrot.lane.b32.xlu1 %v509_v14, %s6481_s23 }
 0x4b5   :  { %v513_v17 = vpop.permute.xlu0 %512 }
 0x4b6   :  { %v518_v18 = vadd.f32 %v513_v17, %v498_v15 }
 0x4b8   :  { %6302 = vtanh.f32 %v518_v18 }
 0x4bb   :  { %v515_v21 = vpop.permute.xlu1 %514 }
 0x4bc   :  { %v519_v22 = vadd.f32 %v515_v21, %v499_v19 }
 0x4be   :  { %6304 = vtanh.f32 %v519_v22 }
 0x4c2   :  { %v6303_v23 = vpop.eup %6302 }
 0x4c3   :  { %524 = vrot.lane.b32.xlu0 %v6303_v23, %s6480_s3 }
 0x4c8   :  { %v6305_v24 = vpop.eup %6304 }
 0x4c9   :  { %526 = vrot.lane.b32.xlu1 %v6305_v24, %s6480_s3 }
 0x535   :  { %v525_v25 = vpop.permute.xlu0 %524 }
 0x536   :  { %v530_v26 = vmul.f32 %v6299_v8, %v525_v25 }
 0x538   :  { %533 = vrot.lane.b32.xlu0 %v530_v26, %s6481_s23 }
 0x53b   :  { %v527_v27 = vpop.permute.xlu1 %526 }
 0x53c   :  { %v6748_v30 = vmul.f32 %v6301_v10, %v527_v27 }
 0x53e   :  { %544 = vrot.lane.b32.xlu1 %v6748_v30, %s6481_s23 }
 0x5aa   :  { %v534_v31 = vpop.permute.xlu0 %533 }
 0x5ab   :  { %537 = vst.msk [vmem:[#allocation3 + $0x8] sm:$0xff] %vm244_vm1, %v534_v31  ;;  %4752 = vmatmul.mubr.msk.f32.vlgmr.msra.gmra.mrb[4].mxu1 %vm244_vm1, %v534_v31 }
 0x5ac   :  { %619 = vmatprep.mubr.f32.mxu1 %v6479_v3  ;;  %5400 = vmatpush1.bf16.msra.mxu1 %v6605_v13 }
 0x5ad   :  { %5402 = vmatprep.subr.bf16.mxu1 %v6614_v16 }
 0x5b0   :  { %v545_v33 = vpop.permute.xlu1 %544  ;;  %5404 = vmatpush1.bf16.msra.mxu1 %v6631_v20 }
 0x5b1   :  { %4753 = vmatmul.mubr.msk.f32.gmra.mrb[6].mxu1 %vm244_vm1, %v545_v33  ;;  %5414 = vmatprep.subr.bf16.mxu1 %v6600_v11 }
 0x5b2   :  { %765 = vmatprep.mubr.f32.mxu1 %v6479_v3 }
 0x67e   :  { %v616_v34 = vpop.f32.mrb[4].mxu1 }
 0x67f   :  { %v629_v36 = vadd.f32 %v616_v34, %v6697_v42  ;;  %v618_v37 = vpop.f32.mrb[5].mxu1 }
 0x681   :  { %6306 = vtanh.f32 %v629_v36  ;;  %v4754_v51 = vmul.f32 -1.442695, %v629_v36 }
 0x684   :  { %v621_v39 = vpop.f32.mrb[6].mxu1 }
 0x685   :  { %v622_v41 = vpop.f32.mrb[7].mxu1 }
 0x686   :  { %v634_v43 = vadd.f32 %v622_v41, %v6711_v56 }
 0x688   :  { %6308 = vtanh.f32 %v634_v43  ;;  %v4755_v53 = vmul.f32 -1.442695, %v634_v43 }
 0x689   :  { %6310 = vpow2.f32 %v4754_v51 }
 0x68a   :  { %6312 = vpow2.f32 %v4755_v53 }
 0x68b   :  { %v6307_v45 = vpop.eup %6306 }
 0x68c   :  { %653 = vrot.lane.b32.xlu0 %v6307_v45, %s6480_s3 }
 0x692   :  { %v6309_v49 = vpop.eup %6308 }
 0x693   :  { %655 = vrot.lane.b32.xlu1 %v6309_v49, %s6480_s3  ;;  %v6311_v55 = vpop.eup %6310 }
 0x694   :  { %v641_v57 = vadd.f32 1.0, %v6311_v55  ;;  %v6313_v42 = vpop.eup %6312 }
 0x695   :  { %v642_v59 = vadd.f32 1.0, %v6313_v42 }
 0x696   :  { %6314 = vrcp.f32 %v641_v57 }
 0x697   :  { %6316 = vrcp.f32 %v642_v59 }
 0x6a0   :  { %v6315_v61 = vpop.eup %6314 }
 0x6a1   :  { %v6317_v0 = vpop.eup %6316  ;;  %v649_v4 = vmul.f32 %v6315_v61, %v518_v18 }
 0x6a2   :  { %v650_v38 = vmul.f32 %v6317_v0, %v519_v22 }
 0x6fe   :  { %v654_v63 = vpop.permute.xlu0 %653 }
 0x6ff   :  { %v659_v56 = vmul.f32 %v6315_v61, %v654_v63 }
 0x701   :  { %663 = vrot.lane.b32.xlu0 %v659_v56, %s6481_s23 }
 0x705   :  { %v656_v1 = vpop.permute.xlu1 %655 }
 0x706   :  { %v660_v2 = vmul.f32 %v6317_v0, %v656_v1 }
 0x708   :  { %665 = vrot.lane.b32.xlu1 %v660_v2, %s6481_s23 }
 0x773   :  { %v664_v5 = vpop.permute.xlu0 %663 }
 0x774   :  { %v669_v6 = vadd.f32 %v664_v5, %v649_v4 }
 0x776   :  { %6318 = vtanh.f32 %v669_v6 }
 0x77a   :  { %v666_v7 = vpop.permute.xlu1 %665 }
 0x77b   :  { %v670_v8 = vadd.f32 %v666_v7, %v650_v38 }
 0x77d   :  { %6320 = vtanh.f32 %v670_v8 }
 0x780   :  { %v6319_v9 = vpop.eup %6318 }
 0x781   :  { %675 = vrot.lane.b32.xlu0 %v6319_v9, %s6480_s3 }
 0x787   :  { %v6321_v60 = vpop.eup %6320 }
 0x788   :  { %677 = vrot.lane.b32.xlu1 %v6321_v60, %s6480_s3 }
 0x7f3   :  { %v676_v10 = vpop.permute.xlu0 %675 }
 0x7f4   :  { %v681_v12 = vmul.f32 %v6315_v61, %v676_v10 }
 0x7f6   :  { %684 = vrot.lane.b32.xlu0 %v681_v12, %s6481_s23 }
 0x7fa   :  { %v678_v14 = vpop.permute.xlu1 %677 }
 0x7fb   :  { %v6770_v15 = vmul.f32 %v6317_v0, %v678_v14 }
 0x7fd   :  { %695 = vrot.lane.b32.xlu1 %v6770_v15, %s6481_s23 }
 0x868   :  { %v685_v17 = vpop.permute.xlu0 %684 }
 0x869   :  { %688 = vst.msk [vmem:[#allocation3 + $0x10] sm:$0xff] %vm244_vm1, %v685_v17  ;;  %4756 = vmatmul.mubr.msk.f32.vlgmr.msra.gmra.mrb[8].mxu1 %vm244_vm1, %v685_v17 }
 0x86a   :  { %770 = vmatprep.mubr.f32.mxu1 %v6479_v3  ;;  %5416 = vmatpush1.bf16.msra.mxu1 %v6605_v13 }
 0x86b   :  { %5418 = vmatprep.subr.bf16.mxu1 %v6614_v16 }
 0x86e   :  { %5420 = vmatpush1.bf16.msra.mxu1 %v6631_v20 }
 0x86f   :  { %v696_v18 = vpop.permute.xlu1 %695  ;;  %5430 = vmatprep.subr.bf16.mxu1 %v6600_v11 }
 0x870   :  { %4757 = vmatmul.mubr.msk.f32.gmra.mrb[10].mxu1 %vm244_vm1, %v696_v18 }
 0x871   :  { %1059 = vmatprep.mubr.f32.mxu1 %v6479_v3 }
 0x93c   :  { %v767_v19 = vpop.f32.mrb[8].mxu1 }
 0x93d   :  { %v780_v21 = vadd.f32 %v767_v19, %v6701_v46  ;;  %v769_v22 = vpop.f32.mrb[9].mxu1 }
 0x93f   :  { %6322 = vtanh.f32 %v780_v21  ;;  %v4758_v11 = vmul.f32 -1.442695, %v780_v21 }
 0x943   :  { %v772_v23 = vpop.f32.mrb[10].mxu1 }
 0x944   :  { %v773_v24 = vpop.f32.mrb[11].mxu1 }
 0x945   :  { %v785_v25 = vadd.f32 %v773_v24, %v6707_v52 }
 0x947   :  { %6324 = vtanh.f32 %v785_v25  ;;  %v4759_v31 = vmul.f32 -1.442695, %v785_v25 }
 0x948   :  { %6326 = vpow2.f32 %v4758_v11 }
 0x949   :  { %v6323_v26 = vpop.eup %6322  ;;  %6328 = vpow2.f32 %v4759_v31 }
 0x94a   :  { %804 = vrot.lane.b32.xlu0 %v6323_v26, %s6480_s3 }
 0x951   :  { %v6325_v27 = vpop.eup %6324 }
 0x952   :  { %806 = vrot.lane.b32.xlu1 %v6325_v27, %s6480_s3  ;;  %v6327_v33 = vpop.eup %6326 }
 0x953   :  { %v792_v34 = vadd.f32 1.0, %v6327_v33  ;;  %v6329_v46 = vpop.eup %6328 }
 0x954   :  { %v793_v36 = vadd.f32 1.0, %v6329_v46 }
 0x955   :  { %6330 = vrcp.f32 %v792_v34 }
 0x956   :  { %6332 = vrcp.f32 %v793_v36 }
 0x95f   :  { %v6331_v37 = vpop.eup %6330 }
 0x960   :  { %v6333_v41 = vpop.eup %6332  ;;  %v800_v49 = vmul.f32 %v6331_v37, %v669_v6 }
 0x961   :  { %v801_v55 = vmul.f32 %v6333_v41, %v670_v8 }
 0x9bc   :  { %v805_v39 = vpop.permute.xlu0 %804 }
 0x9bd   :  { %v810_v52 = vmul.f32 %v6331_v37, %v805_v39 }
 0x9bf   :  { %814 = vrot.lane.b32.xlu0 %v810_v52, %s6481_s23 }
 0x9c4   :  { %v807_v43 = vpop.permute.xlu1 %806 }
 0x9c5   :  { %v811_v45 = vmul.f32 %v6333_v41, %v807_v43 }
 0x9c7   :  { %816 = vrot.lane.b32.xlu1 %v811_v45, %s6481_s23 }
 0xa31   :  { %v815_v51 = vpop.permute.xlu0 %814 }
 0xa32   :  { %v820_v53 = vadd.f32 %v815_v51, %v800_v49 }
 0xa34   :  { %6334 = vtanh.f32 %v820_v53 }
 0xa39   :  { %v817_v57 = vpop.permute.xlu1 %816 }
 0xa3a   :  { %v821_v42 = vadd.f32 %v817_v57, %v801_v55 }
 0xa3c   :  { %6336 = vtanh.f32 %v821_v42 }
 0xa3e   :  { %v6335_v59 = vpop.eup %6334 }
 0xa3f   :  { %826 = vrot.lane.b32.xlu0 %v6335_v59, %s6480_s3 }
 0xa46   :  { %v6337_v61 = vpop.eup %6336 }
 0xa47   :  { %828 = vrot.lane.b32.xlu1 %v6337_v61, %s6480_s3 }
 0xab1   :  { %v827_v63 = vpop.permute.xlu0 %826 }
 0xab2   :  { %v832_v56 = vmul.f32 %v6331_v37, %v827_v63 }
 0xab4   :  { %835 = vrot.lane.b32.xlu0 %v832_v56, %s6481_s23 }
 0xab9   :  { %v829_v0 = vpop.permute.xlu1 %828 }
 0xaba   :  { %v6792_v1 = vmul.f32 %v6333_v41, %v829_v0 }
 0xabc   :  { %846 = vrot.lane.b32.xlu1 %v6792_v1, %s6481_s23 }
 0xb26   :  { %v836_v2 = vpop.permute.xlu0 %835 }
 0xb27   :  { %839 = vst.msk [vmem:[#allocation3 + $0x18] sm:$0xff] %vm244_vm1, %v836_v2  ;;  %4760 = vmatmul.mubr.msk.f32.vlgmr.msra.gmra.mrb[20].mxu0 %vm244_vm1, %v836_v2 }
 0xb28   :  { %921 = vmatprep.mubr.f32.mxu0 %v6479_v3  ;;  %5424 = vmatpush1.bf16.msra.mxu0 %v6605_v13 }
 0xb29   :  { %5426 = vmatprep.subr.bf16.mxu0 %v6614_v16 }
 0xb2c   :  { %5428 = vmatpush1.bf16.msra.mxu0 %v6631_v20 }
 0xb2e   :  { %v847_v4 = vpop.permute.xlu1 %846 }
 0xb2f   :  { %4761 = vmatmul.mubr.msk.f32.gmra.mrb[22].mxu0 %vm244_vm1, %v847_v4 }
 0xb30   :  { %1202 = vmatprep.mubr.f32.mxu0 %v6479_v3 }
 0xbfa   :  { %v918_v5 = vpop.f32.mrb[20].mxu0 }
 0xbfb   :  { %v928_v6 = vadd.f32 %v918_v5, %v6705_v50  ;;  %v920_v38 = vpop.f32.mrb[21].mxu0 }
 0xbfd   :  { %6338 = vtanh.f32 %v928_v6  ;;  %v4762_v12 = vmul.f32 -1.442695, %v928_v6 }
 0xc02   :  { %v923_v7 = vpop.f32.mrb[22].mxu0 }
 0xc03   :  { %v924_v8 = vpop.f32.mrb[23].mxu0 }
 0xc04   :  { %v930_v9 = vadd.f32 %v924_v8, %v6703_v48 }
 0xc06   :  { %6340 = vtanh.f32 %v930_v9  ;;  %v4763_v14 = vmul.f32 -1.442695, %v930_v9 }
 0xc07   :  { %v6339_v60 = vpop.eup %6338  ;;  %6342 = vpow2.f32 %v4762_v12 }
 0xc08   :  { %949 = vrot.lane.b32.xlu0 %v6339_v60, %s6480_s3  ;;  %6344 = vpow2.f32 %v4763_v14 }
 0xc10   :  { %v6341_v10 = vpop.eup %6340 }
 0xc11   :  { %951 = vrot.lane.b32.xlu1 %v6341_v10, %s6480_s3  ;;  %v6343_v17 = vpop.eup %6342 }
 0xc12   :  { %v937_v18 = vadd.f32 1.0, %v6343_v17  ;;  %v6345_v50 = vpop.eup %6344 }
 0xc13   :  { %v938_v19 = vadd.f32 1.0, %v6345_v50 }
 0xc14   :  { %6346 = vrcp.f32 %v937_v18 }
 0xc15   :  { %6348 = vrcp.f32 %v938_v19 }
 0xc1e   :  { %v6347_v21 = vpop.eup %6346 }
 0xc1f   :  { %v6349_v23 = vpop.eup %6348  ;;  %v945_v26 = vmul.f32 %v6347_v21, %v820_v53 }
 0xc20   :  { %v946_v31 = vmul.f32 %v6349_v23, %v821_v42 }
 0xc7a   :  { %v950_v22 = vpop.permute.xlu0 %949 }
 0xc7b   :  { %v955_v48 = vmul.f32 %v6347_v21, %v950_v22 }
 0xc7d   :  { %959 = vrot.lane.b32.xlu0 %v955_v48, %s6481_s23 }
 0xc83   :  { %v952_v24 = vpop.permute.xlu1 %951 }
 0xc84   :  { %v956_v25 = vmul.f32 %v6349_v23, %v952_v24 }
 0xc86   :  { %961 = vrot.lane.b32.xlu1 %v956_v25, %s6481_s23 }
 0xcef   :  { %v960_v27 = vpop.permute.xlu0 %959 }
 0xcf0   :  { %v965_v11 = vadd.f32 %v960_v27, %v945_v26 }
 0xcf2   :  { %6350 = vtanh.f32 %v965_v11 }
 0xcf8   :  { %v962_v33 = vpop.permute.xlu1 %961 }
 0xcf9   :  { %v966_v34 = vadd.f32 %v962_v33, %v946_v31 }
 0xcfb   :  { %6352 = vtanh.f32 %v966_v34 }
 0xcfc   :  { %v6351_v46 = vpop.eup %6350 }
 0xcfd   :  { %971 = vrot.lane.b32.xlu0 %v6351_v46, %s6480_s3 }
 0xd05   :  { %v6353_v36 = vpop.eup %6352 }
 0xd06   :  { %973 = vrot.lane.b32.xlu1 %v6353_v36, %s6480_s3 }
 0xd6f   :  { %v972_v37 = vpop.permute.xlu0 %971 }
 0xd70   :  { %v977_v39 = vmul.f32 %v6347_v21, %v972_v37 }
 0xd72   :  { %980 = vrot.lane.b32.xlu0 %v977_v39, %s6481_s23 }
 0xd78   :  { %v974_v52 = vpop.permute.xlu1 %973 }
 0xd79   :  { %v6813_v41 = vmul.f32 %v6349_v23, %v974_v52 }
 0xd7b   :  { %989 = vrot.lane.b32.xlu1 %v6813_v41, %s6481_s23 }
 0xde4   :  { %v6817_v43 = vpop.permute.xlu0 %980 }
 0xde5   :  { %4764 = vmatmul.mubr.msk.f32.vlgmr.msra.gmra.mrb[12].mxu1 %vm244_vm1, %v6817_v43 }
 0xde6   :  { %1064 = vmatprep.mubr.f32.mxu1 %v6479_v3  ;;  %5432 = vmatpush1.bf16.msra.mxu1 %v6605_v13 }
 0xde7   :  { %5434 = vmatprep.subr.bf16.mxu1 %v6614_v16 }
 0xdea   :  { %5436 = vmatpush1.bf16.msra.mxu1 %v6631_v20 }
 0xded   :  { %v990_v45 = vpop.permute.xlu1 %989 }
 0xdee   :  { %4765 = vmatmul.mubr.msk.f32.gmra.mrb[14].mxu1 %vm244_vm1, %v990_v45 }
 0xdef   :  { %1345 = vmatprep.mubr.f32.mxu1 %v6479_v3 }
 0xeb8   :  { %v1061_v49 = vpop.f32.mrb[12].mxu1 }
 0xeb9   :  { %v1071_v51 = vadd.f32 %v1061_v49, %v6709_v54  ;;  %v1063_v53 = vpop.f32.mrb[13].mxu1 }
 0xebb   :  { %6354 = vtanh.f32 %v1071_v51  ;;  %v4766_v16 = vmul.f32 -1.442695, %v1071_v51 }
 0xec1   :  { %v1066_v55 = vpop.f32.mrb[14].mxu1 }
 0xec2   :  { %v1067_v57 = vpop.f32.mrb[15].mxu1 }
 0xec3   :  { %v1073_v42 = vadd.f32 %v1067_v57, %v6699_v44 }
 0xec5   :  { %v6355_v59 = vpop.eup %6354  ;;  %6356 = vtanh.f32 %v1073_v42  ;;  %v4767_v20 = vmul.f32 -1.442695, %v1073_v42 }
 0xec6   :  { %1092 = vrot.lane.b32.xlu0 %v6355_v59, %s6480_s3  ;;  %6358 = vpow2.f32 %v4766_v16 }
 0xec7   :  { %6360 = vpow2.f32 %v4767_v20 }
 0xecf   :  { %v6357_v13 = vpop.eup %6356 }
 0xed0   :  { %1094 = vrot.lane.b32.xlu1 %v6357_v13, %s6480_s3  ;;  %v6359_v61 = vpop.eup %6358 }
 0xed1   :  { %v1080_v63 = vadd.f32 1.0, %v6359_v61  ;;  %v6361_v54 = vpop.eup %6360 }
 0xed2   :  { %v1081_v56 = vadd.f32 1.0, %v6361_v54 }
 0xed3   :  { %6362 = vrcp.f32 %v1080_v63 }
 0xed4   :  { %6364 = vrcp.f32 %v1081_v56 }
 0xedd   :  { %v6363_v0 = vpop.eup %6362 }
 0xede   :  { %v6365_v4 = vpop.eup %6364  ;;  %v1088_v38 = vmul.f32 %v6363_v0, %v965_v11 }
 0xedf   :  { %v1089_v9 = vmul.f32 %v6365_v4, %v966_v34 }
 0xf38   :  { %v1093_v2 = vpop.permute.xlu0 %1092 }
 0xf39   :  { %v1098_v44 = vmul.f32 %v6363_v0, %v1093_v2 }
 0xf3b   :  { %1102 = vrot.lane.b32.xlu0 %v1098_v44, %s6481_s23 }
 0xf42   :  { %v1095_v5 = vpop.permute.xlu1 %1094 }
 0xf43   :  { %v1099_v6 = vmul.f32 %v6365_v4, %v1095_v5 }
 0xf45   :  { %1104 = vrot.lane.b32.xlu1 %v1099_v6, %s6481_s23 }
 0xfad   :  { %v1103_v7 = vpop.permute.xlu0 %1102 }
 0xfae   :  { %v1108_v8 = vadd.f32 %v1103_v7, %v1088_v38 }
 0xfb0   :  { %6366 = vtanh.f32 %v1108_v8 }
 0xfb7   :  { %v1105_v60 = vpop.permute.xlu1 %1104 }
 0xfb8   :  { %v1109_v10 = vadd.f32 %v1105_v60, %v1089_v9 }
 0xfba   :  { %v6367_v12 = vpop.eup %6366  ;;  %6368 = vtanh.f32 %v1109_v10 }
 0xfbb   :  { %1114 = vrot.lane.b32.xlu0 %v6367_v12, %s6480_s3 }
 0xfc4   :  { %v6369_v14 = vpop.eup %6368 }
 0xfc5   :  { %1116 = vrot.lane.b32.xlu1 %v6369_v14, %s6480_s3 }
0x102d   :  { %v1115_v17 = vpop.permute.xlu0 %1114 }
0x102e   :  { %v1120_v18 = vmul.f32 %v6363_v0, %v1115_v17 }
0x1030   :  { %1123 = vrot.lane.b32.xlu0 %v1120_v18, %s6481_s23 }
0x1037   :  { %v1117_v50 = vpop.permute.xlu1 %1116 }
0x1038   :  { %v6836_v19 = vmul.f32 %v6365_v4, %v1117_v50 }
0x103a   :  { %1132 = vrot.lane.b32.xlu1 %v6836_v19, %s6481_s23 }
0x10a2   :  { %v6840_v21 = vpop.permute.xlu0 %1123 }
0x10a3   :  { %4768 = vmatmul.mubr.msk.f32.vlgmr.msra.gmra.mrb[24].mxu0 %vm244_vm1, %v6840_v21 }
0x10a4   :  { %1207 = vmatprep.mubr.f32.mxu0 %v6479_v3 }
0x10ac   :  { %v1133_v22 = vpop.permute.xlu1 %1132 }
0x10ad   :  { %4769 = vmatmul.mubr.msk.f32.gmra.mrb[26].mxu0 %vm244_vm1, %v1133_v22  ;;  %v1427_v22 = vld [vmem:[%s9409_s4 + $0x8] sm:$0xff] }
0x1176   :  { %v1204_v48 = vpop.f32.mrb[24].mxu0 }
0x1177   :  { %v1214_v23 = vadd.f32 %v1204_v48, %v6713_v58  ;;  %v1206_v24 = vpop.f32.mrb[25].mxu0  ;;  %v1428_v48 = vld [vmem:[%s9409_s4 + $0x10] sm:$0xff] }
0x1178   :  { %v1429_v24 = vld [vmem:[%s9409_s4 + $0x18] sm:$0xff] }
0x1179   :  { %6370 = vtanh.f32 %v1214_v23  ;;  %v4770_v33 = vmul.f32 -1.442695, %v1214_v23 }
0x1180   :  { %v1209_v25 = vpop.f32.mrb[26].mxu0 }
0x1181   :  { %v1210_v26 = vpop.f32.mrb[27].mxu0  ;;  %v5441_v25 = vpack.c.bf16 %v1429_v24, %v1428_v48 }
0x1182   :  { %v1216_v27 = vadd.f32 %v1210_v26, %v6695_v40 }
0x1183   :  { %v6371_v11 = vpop.eup %6370 }
0x1184   :  { %6372 = vtanh.f32 %v1216_v27  ;;  %1235 = vrot.lane.b32.xlu0 %v6371_v11, %s6480_s3  ;;  %v4771_v34 = vmul.f32 -1.442695, %v1216_v27  ;;  %v1430_v27 = vld [vmem:[%s9409_s4 + $0x20] sm:$0xff]  ;;  %v1431_v11 = vld [vmem:[%s9409_s4 + $0x28] sm:$0xff] }
0x1185   :  { %6374 = vpow2.f32 %v4770_v33  ;;  %v1432_v33 = vld [vmem:[%s9409_s4 + $0x30] sm:$0xff] }
0x1186   :  { %6376 = vpow2.f32 %v4771_v34  ;;  %v1433_v34 = vld [vmem:[%s9409_s4 + $0x38] sm:$0xff] }
0x118e   :  { %v6373_v31 = vpop.eup %6372 }
0x118f   :  { %1237 = vrot.lane.b32.xlu1 %v6373_v31, %s6480_s3  ;;  %v6375_v46 = vpop.eup %6374  ;;  %v5445_v31 = vpack.c.bf16 %v1431_v11, %v1430_v27 }
0x1190   :  { %v1223_v36 = vadd.f32 1.0, %v6375_v46  ;;  %v6377_v58 = vpop.eup %6376  ;;  %v6482_v46 = vmov 0.0|0.0  }
0x1191   :  { %v1224_v37 = vadd.f32 1.0, %v6377_v58  ;;  %5453 = vmatprep.subr.bf16.mxu1 %v6482_v46  ;;  %v1579_v58 = vld [vmem:[%s9410_s5] sm:$0xff] }
0x1192   :  { %6378 = vrcp.f32 %v1223_v36  ;;  %v5449_v36 = vpack.c.bf16 %v1433_v34, %v1432_v33 }
0x1193   :  { %6380 = vrcp.f32 %v1224_v37  ;;  %v1580_v37 = vld [vmem:[%s9410_s5 + $0x8] sm:$0xff] }
0x119c   :  { %v6379_v39 = vpop.eup %6378 }
0x119d   :  { %v6381_v45 = vpop.eup %6380  ;;  %v1231_v53 = vmul.f32 %v6379_v39, %v1108_v8 }
0x119e   :  { %v1232_v42 = vmul.f32 %v6381_v45, %v1109_v10 }
0x11f6   :  { %v1236_v52 = vpop.permute.xlu0 %1235 }
0x11f7   :  { %v1241_v40 = vmul.f32 %v6379_v39, %v1236_v52  ;;  %v1581_v52 = vld [vmem:[%s9410_s5 + $0x10] sm:$0xff] }
0x11f9   :  { %1245 = vrot.lane.b32.xlu0 %v1241_v40, %s6481_s23  ;;  %v1582_v40 = vld [vmem:[%s9410_s5 + $0x18] sm:$0xff] }
0x1201   :  { %v1238_v49 = vpop.permute.xlu1 %1237 }
0x1202   :  { %v1242_v51 = vmul.f32 %v6381_v45, %v1238_v49 }
0x1204   :  { %1247 = vrot.lane.b32.xlu1 %v1242_v51, %s6481_s23 }
0x126b   :  { %v1246_v55 = vpop.permute.xlu0 %1245 }
0x126c   :  { %v6852_v57 = vadd.f32 %v1246_v55, %v1231_v53 }
0x126e   :  { %6382 = vtanh.f32 %v6852_v57 }
0x1276   :  { %v1248_v59 = vpop.permute.xlu1 %1247 }
0x1277   :  { %v1252_v13 = vadd.f32 %v1248_v59, %v1232_v42 }
0x1278   :  { %v6383_v16 = vpop.eup %6382 }
0x1279   :  { %6384 = vtanh.f32 %v1252_v13  ;;  %1257 = vrot.lane.b32.xlu0 %v6383_v16, %s6480_s3 }
0x1283   :  { %v6385_v20 = vpop.eup %6384 }
0x1284   :  { %1259 = vrot.lane.b32.xlu1 %v6385_v20, %s6480_s3  ;;  %v6940_v20 = vld [vmem:[%s9411_s6] ss:$0 sm:$0xff] }
0x12eb   :  { %v1258_v61 = vpop.permute.xlu0 %1257 }
0x12ec   :  { %v1263_v63 = vmul.f32 %v6379_v39, %v1258_v61  ;;  %v6904_v39 = vpack.c.bf16 %v1580_v37, %v1579_v58 }
0x12ee   :  { %1266 = vrot.lane.b32.xlu0 %v1263_v63, %s6481_s23 }
0x12f6   :  { %v1260_v54 = vpop.permute.xlu1 %1259 }
0x12f7   :  { %v1264_v56 = vmul.f32 %v6381_v45, %v1260_v54  ;;  %v6914_v45 = vpack.c.bf16 %v1582_v40, %v1581_v52 }
0x12f9   :  { %1275 = vrot.lane.b32.xlu1 %v1264_v56, %s6481_s23 }
0x1360   :  { %v6859_v0 = vpop.permute.xlu0 %1266 }
0x1361   :  { %4772 = vmatmul.mubr.msk.f32.vlgmr.msra.gmra.mrb[16].mxu1 %vm244_vm1, %v6859_v0 }
0x1362   :  { %1350 = vmatprep.mubr.f32.mxu1 %v6479_v3  ;;  %5455 = vmatpush3.bf16.msra.mxu1 %v6904_v39 }
0x1363   :  { %5456 = vmatprep.subr.bf16.mxu1 %v6482_v46 }
0x1366   :  { %5458 = vmatpush3.bf16.msra.mxu1 %v6914_v45 }
0x1367   :  { %5459 = vmatprep.subr.bf16.mxu1 %v6482_v46 }
0x136b   :  { %v1276_v2 = vpop.permute.xlu1 %1275 }
0x136c   :  { %4773 = vmatmul.mubr.msk.f32.gmra.mrb[18].mxu1 %vm244_vm1, %v1276_v2 }
0x136d   :  { %5146 = vmatprep.mubr.msk.f32.mxu1 %vm6483_vm2, %v6479_v3 }
0x1370   :  { %5147 = vmatmul.mubr.f32.vlgmr.msra.gmra.mrb[20].mxu1 %v6479_v3 }
0x1371   :  { %5461 = vmatpush3.bf16.msra.mxu1 %v6904_v39  ;;  %5157 = vmatprep.mubr.msk.f32.mxu1 %vm6483_vm2, %v6479_v3 }
0x1372   :  { %5462 = vmatprep.subr.bf16.mxu1 %v6482_v46 }
0x1375   :  { %5464 = vmatpush3.bf16.msra.mxu1 %v6914_v45 }
0x1376   :  { %5465 = vmatprep.subr.bf16.mxu1 %v6482_v46 }
0x1434   :  { %v1347_v44 = vpop.f32.mrb[16].mxu1 }
0x1435   :  { %v6866_v4 = vadd.f32 %v1347_v44, %v6717_v62  ;;  %v1349_v5 = vpop.f32.mrb[17].mxu1 }
0x1437   :  { %v4774_v52 = vmul.f32 -1.442695, %v6866_v4 }
0x143f   :  { %v1352_v6 = vpop.f32.mrb[18].mxu1 }
0x1440   :  { %v1353_v38 = vpop.f32.mrb[19].mxu1 }
0x1441   :  { %v1359_v7 = vadd.f32 %v1353_v38, %v6690_v35  ;;  %v1426_v35 = vld [vmem:[%s9409_s4] sm:$0xff] }
0x1442   :  { %v5437_v23 = vpack.c.bf16 %v1427_v22, %v1426_v35 }
0x1443   :  { %6386 = vtanh.f32 %v1359_v7  ;;  %v4775_v9 = vmul.f32 -1.442695, %v1359_v7 }
0x1444   :  { %5438 = vmatprep.subr.bf16.mxu0 %v5437_v23 }
0x1445   :  { %6388 = vpow2.f32 %v4775_v9  ;;  %5440 = vmatpush3.bf16.msra.mxu0 %v5437_v23 }
0x1446   :  { %5442 = vmatprep.subr.bf16.mxu0 %v5441_v25 }
0x1449   :  { %5444 = vmatpush3.bf16.msra.mxu0 %v5441_v25 }
0x144a   :  { %5446 = vmatprep.subr.bf16.mxu0 %v5445_v31 }
0x144d   :  { %v6387_v8 = vpop.eup %6386  ;;  %5448 = vmatpush3.bf16.msra.mxu0 %v5445_v31 }
0x144e   :  { %1380 = vrot.lane.b32.xlu0 %v6387_v8, %s6480_s3  ;;  %5450 = vmatprep.subr.bf16.mxu0 %v5449_v36 }
0x144f   :  { %v6389_v60 = vpop.eup %6388 }
0x1450   :  { %v1367_v10 = vadd.f32 1.0, %v6389_v60 }
0x1451   :  { %5452 = vmatpush3.bf16.msra.mxu0 %v5449_v36 }
0x1452   :  { %6390 = vrcp.f32 %v1367_v10  ;;  %5471 = vmatprep.subr.bf16.mxu0 %v6482_v46 }
0x145c   :  { %v6391_v12 = vpop.eup %6390 }
0x145d   :  { %v1375_v62 = vmul.f32 %v6391_v12, %v1252_v13  ;;  %v1650_v13 = vpop.f32.mrb[20].mxu1 }
0x145e   :  { %v5148_v16 = vpop.f32.mrb[21].mxu1 }
0x14c0   :  { %v1381_v14 = vpop.permute.xlu0 %1380 }
0x14c1   :  { %v1385_v17 = vmul.f32 %v6391_v12, %v1381_v14 }
0x14c3   :  { %1390 = vrot.lane.b32.xlu1 %v1385_v17, %s6481_s23 }
0x1535   :  { %v1391_v18 = vpop.permute.xlu1 %1390 }
0x1536   :  { %v1395_v50 = vadd.f32 %v1391_v18, %v1375_v62 }
0x1538   :  { %6392 = vtanh.f32 %v1395_v50 }
0x1542   :  { %v6393_v26 = vpop.eup %6392 }
0x1543   :  { %1402 = vrot.lane.b32.xlu0 %v6393_v26, %s6480_s3 }
0x1547   :  { %1271 = vrot.lane.b32.xlu0 %v1264_v56, %s6480_s3 }
0x15b5   :  { %v1403_v49 = vpop.permute.xlu0 %1402 }
0x15b6   :  { %v1407_v51 = vmul.f32 %v6391_v12, %v1403_v49 }
0x15b8   :  { %1414 = vrot.lane.b32.xlu1 %v1407_v51, %s6480_s3 }
0x15b9   :  { %v1272_v53 = vpop.permute.xlu0 %1271 }
0x15ba   :  { %1274 = vst.msk [vmem:[#allocation3 + $0x8] sm:$0xff] %vm391_vm3, %v1272_v53 }
0x15c1   :  { %v1419_v59 = vld [vmem:[#allocation3 + $0x8] sm:$0xff] }
0x162a   :  { %v1415_v55 = vpop.permute.xlu1 %1414 }
0x162b   :  { %1417 = vst.msk [vmem:[#allocation3] sm:$0xff] %vm391_vm3, %v1415_v55 }
0x1632   :  { %v1418_v42 = vld [vmem:[#allocation3] sm:$0xff] }
0x1633   :  { %5126 = vmatprep.mubr.msk.f32.mxu0 %vm1441_vm4, %v1418_v42 }
0x1634   :  { %5127 = vmatmul.mubr.msk.f32.vlgmr.msra.gmra.mrb[28].mxu0 %vm1441_vm4, %v1419_v59 }
0x1635   :  { %5473 = vmatpush3.bf16.msra.mxu0 %v6904_v39 }
0x1636   :  { %5474 = vmatprep.subr.bf16.mxu0 %v6482_v46 }
0x1639   :  { %5476 = vmatpush3.bf16.msra.mxu0 %v6914_v45 }
0x163a   :  { %5483 = vmatprep.subr.bf16.mxu0 %v6482_v46 }
0x1707   :  { %v5128_v61 = vpop.f32.mrb[28].mxu0 }
0x1708   :  { %v1532_v63 = vpop.f32.mrb[29].mxu0  ;;  %v1538_v18 = vadd.f32 %v5128_v61, %v6940_v20 }
0x1709   :  { %v1533_v54 = vadd.f32 %v6940_v20, %v1532_v63 }
0x170b   :  { %v1654_v56 = vadd.f32 %v1650_v13, %v1533_v54 }
0x170d   :  { %6394 = vtanh.f32 %v1654_v56  ;;  %v4785_v44 = vmul.f32 -1.442695, %v1654_v56 }
0x170f   :  { %6396 = vpow2.f32 %v4785_v44 }
0x1717   :  { %v6395_v2 = vpop.eup %6394 }
0x1718   :  { %1664 = vrot.lane.b32.xlu1 %v6395_v2, %s6480_s3 }
0x1719   :  { %v6397_v5 = vpop.eup %6396 }
0x171a   :  { %v1658_v6 = vadd.f32 1.0, %v6397_v5 }
0x171c   :  { %6398 = vrcp.f32 %v1658_v6 }
0x1726   :  { %v6399_v38 = vpop.eup %6398 }
0x1727   :  { %v1662_v9 = vmul.f32 0.0, %v6399_v38 }
0x178a   :  { %v1665_v7 = vpop.permute.xlu1 %1664 }
0x178b   :  { %v1667_v8 = vmul.f32 %v6399_v38, %v1665_v7 }
0x178d   :  { %1669 = vrot.lane.b32.xlu0 %v1667_v8, %s6481_s23 }
0x17ff   :  { %v1670_v60 = vpop.permute.xlu0 %1669 }
0x1800   :  { %v1672_v10 = vadd.f32 %v1670_v60, %v1662_v9 }
0x1802   :  { %6400 = vtanh.f32 %v1672_v10 }
0x180c   :  { %v6401_v12 = vpop.eup %6400 }
0x180d   :  { %1675 = vrot.lane.b32.xlu1 %v6401_v12, %s6480_s3 }
0x187f   :  { %v1676_v14 = vpop.permute.xlu1 %1675 }
0x1880   :  { %v1678_v17 = vmul.f32 %v6399_v38, %v1676_v14 }
0x1882   :  { %1682 = vrot.lane.b32.xlu0 %v1678_v17, %s6481_s23 }
0x18f4   :  { %v1683_v62 = vpop.permute.xlu0 %1682 }
0x18f5   :  { %5158 = vmatmul.mubr.msk.f32.vlgmr.msra.gmra.mrb[22].mxu1 %vm244_vm1, %v1683_v62 }
0x18f6   :  { %5467 = vmatpush3.bf16.msra.mxu1 %v6904_v39  ;;  %5168 = vmatprep.mubr.msk.f32.mxu1 %vm6483_vm2, %v6479_v3 }
0x18f7   :  { %5468 = vmatprep.subr.bf16.mxu1 %v6482_v46 }
0x18fa   :  { %5470 = vmatpush3.bf16.msra.mxu1 %v6914_v45 }
0x18fb   :  { %5477 = vmatprep.subr.bf16.mxu1 %v6482_v46 }
0x19c8   :  { %v1752_v50 = vpop.f32.mrb[22].mxu1 }
0x19c9   :  { %v1756_v35 = vadd.f32 %v1752_v50, %v1538_v18  ;;  %v5159_v22 = vpop.f32.mrb[23].mxu1 }
0x19cb   :  { %6402 = vtanh.f32 %v1756_v35  ;;  %v4787_v23 = vmul.f32 -1.442695, %v1756_v35 }
0x19cd   :  { %6404 = vpow2.f32 %v4787_v23 }
0x19d5   :  { %v6403_v48 = vpop.eup %6402 }
0x19d6   :  { %1766 = vrot.lane.b32.xlu1 %v6403_v48, %s6480_s3 }
0x19d7   :  { %v6405_v24 = vpop.eup %6404 }
0x19d8   :  { %v1760_v25 = vadd.f32 1.0, %v6405_v24 }
0x19da   :  { %6406 = vrcp.f32 %v1760_v25 }
0x19e4   :  { %v6407_v26 = vpop.eup %6406 }
0x19e5   :  { %v1764_v31 = vmul.f32 %v6407_v26, %v1672_v10 }
0x1a48   :  { %v1767_v27 = vpop.permute.xlu1 %1766 }
0x1a49   :  { %v1769_v11 = vmul.f32 %v6407_v26, %v1767_v27 }
0x1a4b   :  { %1771 = vrot.lane.b32.xlu0 %v1769_v11, %s6481_s23 }
0x1a4f   :  { %1128 = vrot.lane.b32.xlu0 %v6836_v19, %s6480_s3 }
0x1abd   :  { %v1772_v33 = vpop.permute.xlu0 %1771 }
0x1abe   :  { %v6959_v34 = vadd.f32 %v1772_v33, %v1764_v31 }
0x1ac0   :  { %6408 = vtanh.f32 %v6959_v34 }
0x1ac1   :  { %v1129_v36 = vpop.permute.xlu0 %1128  ;;  %6410 = vtanh.f32 %v6866_v4 }
0x1ac2   :  { %1131 = vst.msk [vmem:[#allocation3 + $0x10] sm:$0xff] %vm391_vm3, %v1129_v36  ;;  %6412 = vpow2.f32 %v4774_v52 }
0x1ac9   :  { %v1420_v58 = vld [vmem:[#allocation3 + $0x10] sm:$0xff] }
0x1aca   :  { %v6409_v37 = vpop.eup %6408  ;;  %5129 = vmatprep.mubr.msk.f32.mxu0 %vm1441_vm4, %v1420_v58 }
0x1acb   :  { %1777 = vrot.lane.b32.xlu1 %v6409_v37, %s6480_s3  ;;  %v6411_v19 = vpop.eup %6410 }
0x1acc   :  { %v6413_v40 = vpop.eup %6412 }
0x1acd   :  { %v1366_v49 = vadd.f32 1.0, %v6413_v40 }
0x1acf   :  { %985 = vrot.lane.b32.xlu1 %v6813_v41, %s6480_s3  ;;  %6414 = vrcp.f32 %v1366_v49 }
0x1ad3   :  { %1378 = vrot.lane.b32.xlu1 %v6411_v19, %s6480_s3 }
0x1ad9   :  { %v6415_v42 = vpop.eup %6414 }
0x1ada   :  { %v1374_v16 = vmul.f32 %v6415_v42, %v6852_v57 }
0x1b3d   :  { %v1778_v51 = vpop.permute.xlu1 %1777 }
0x1b3e   :  { %v1780_v53 = vmul.f32 %v6407_v26, %v1778_v51 }
0x1b40   :  { %1784 = vrot.lane.b32.xlu0 %v1780_v53, %s6481_s23 }
0x1b41   :  { %v986_v55 = vpop.permute.xlu1 %985 }
0x1b42   :  { %988 = vst.msk [vmem:[#allocation3 + $0x18] sm:$0xff] %vm391_vm3, %v986_v55 }
0x1b45   :  { %v1379_v59 = vpop.permute.xlu1 %1378 }
0x1b46   :  { %v1384_v13 = vmul.f32 %v6415_v42, %v1379_v59 }
0x1b48   :  { %1388 = vrot.lane.b32.xlu1 %v1384_v13, %s6481_s23 }
0x1b49   :  { %v1421_v41 = vld [vmem:[#allocation3 + $0x18] sm:$0xff] }
0x1b4a   :  { %5130 = vmatmul.mubr.msk.f32.gmra.mrb[30].mxu0 %vm1441_vm4, %v1421_v41 }
0x1bb2   :  { %v1785_v4 = vpop.permute.xlu0 %1784 }
0x1bb3   :  { %5169 = vmatmul.mubr.msk.f32.vlgmr.msra.gmra.mrb[24].mxu1 %vm244_vm1, %v1785_v4 }
0x1bb4   :  { %5479 = vmatpush3.bf16.msra.mxu1 %v6904_v39  ;;  %5190 = vmatprep.mubr.msk.f32.mxu1 %vm6483_vm2, %v6479_v3 }
0x1bb5   :  { %5480 = vmatprep.subr.bf16.mxu1 %v6482_v46 }
0x1bb8   :  { %5482 = vmatpush3.bf16.msra.mxu1 %v6914_v45 }
0x1bb9   :  { %5489 = vmatprep.subr.bf16.mxu1 %v6482_v46 }
0x1bba   :  { %v1389_v61 = vpop.permute.xlu1 %1388 }
0x1bbb   :  { %v1394_v63 = vadd.f32 %v1389_v61, %v1374_v16 }
0x1bbd   :  { %6416 = vtanh.f32 %v1394_v63 }
0x1bc7   :  { %v6417_v54 = vpop.eup %6416 }
0x1bc8   :  { %1400 = vrot.lane.b32.xlu1 %v6417_v54, %s6480_s3 }
0x1bcc   :  { %841 = vrot.lane.b32.xlu1 %v6792_v1, %s6480_s3 }
0x1bd0   :  { %539 = vrot.lane.b32.xlu1 %v6748_v30, %s6480_s3 }
0x1c1d   :  { %v6987_v56 = vpop.f32.mrb[30].mxu0 }
0x1c1e   :  { %v1542_v2 = vpop.f32.mrb[31].mxu0  ;;  %v1548_v33 = vadd.f32 %v6987_v56, %v6940_v20 }
0x1c1f   :  { %v1543_v1 = vadd.f32 %v6940_v20, %v1542_v2 }
0x1c3a   :  { %v1401_v44 = vpop.permute.xlu1 %1400 }
0x1c3b   :  { %v1406_v5 = vmul.f32 %v6415_v42, %v1401_v44 }
0x1c3d   :  { %1409 = vrot.lane.b32.xlu1 %v1406_v5, %s6481_s23 }
0x1c3e   :  { %v842_v57 = vpop.permute.xlu1 %841 }
0x1c3f   :  { %845 = vst.msk [vmem:[#allocation3 + $0x20] sm:$0xff] %vm391_vm3, %v842_v57 }
0x1c40   :  { %983 = vst.msk [vmem:[#allocation3 + $0x20] sm:$0xff] %vm244_vm1, %v6817_v43 }
0x1c42   :  { %v540_v6 = vpop.permute.xlu1 %539 }
0x1c43   :  { %543 = vst.msk [vmem:[#allocation3 + $0x30] sm:$0xff] %vm391_vm3, %v540_v6 }
0x1c44   :  { %1269 = vst.msk [vmem:[#allocation3 + $0x30] sm:$0xff] %vm244_vm1, %v6859_v0 }
0x1c47   :  { %v1422_v30 = vld [vmem:[#allocation3 + $0x20] sm:$0xff] }
0x1c48   :  { %5132 = vmatprep.mubr.msk.f32.mxu0 %vm1441_vm4, %v1422_v30 }
0x1c86   :  { %v1854_v38 = vpop.f32.mrb[24].mxu1 }
0x1c87   :  { %v1858_v7 = vadd.f32 %v1854_v38, %v1543_v1  ;;  %v5170_v8 = vpop.f32.mrb[25].mxu1 }
0x1c89   :  { %6418 = vtanh.f32 %v1858_v7  ;;  %v4789_v60 = vmul.f32 -1.442695, %v1858_v7 }
0x1c8b   :  { %6420 = vpow2.f32 %v4789_v60 }
0x1c93   :  { %v6419_v9 = vpop.eup %6418 }
0x1c94   :  { %1868 = vrot.lane.b32.xlu0 %v6419_v9, %s6480_s3 }
0x1c95   :  { %v6421_v43 = vpop.eup %6420 }
0x1c96   :  { %v1862_v10 = vadd.f32 1.0, %v6421_v43 }
0x1c98   :  { %6422 = vrcp.f32 %v1862_v10 }
0x1ca2   :  { %v6423_v12 = vpop.eup %6422 }
0x1ca3   :  { %v1866_v17 = vmul.f32 %v6423_v12, %v6959_v34 }
0x1caf   :  { %v1410_v24 = vpop.permute.xlu1 %1409 }
0x1d06   :  { %v1869_v14 = vpop.permute.xlu0 %1868 }
0x1d07   :  { %v1871_v0 = vmul.f32 %v6423_v12, %v1869_v14 }
0x1d09   :  { %1873 = vrot.lane.b32.xlu0 %v1871_v0, %s6481_s23 }
0x1d7b   :  { %v1874_v62 = vpop.permute.xlu0 %1873 }
0x1d7c   :  { %v1876_v18 = vadd.f32 %v1874_v62, %v1866_v17 }
0x1d7e   :  { %6424 = vtanh.f32 %v1876_v18 }
0x1d88   :  { %v6425_v50 = vpop.eup %6424 }
0x1d89   :  { %1879 = vrot.lane.b32.xlu0 %v6425_v50, %s6480_s3 }
0x1d8d   :  { %690 = vrot.lane.b32.xlu0 %v6770_v15, %s6480_s3 }
0x1d91   :  { %387 = vrot.lane.b32.xlu0 %v6726_v47, %s6480_s3  ;;  %v1424_v47 = vld [vmem:[#allocation3 + $0x30] sm:$0xff] }
0x1dfb   :  { %v1880_v35 = vpop.permute.xlu0 %1879 }
0x1dfc   :  { %v1882_v22 = vmul.f32 %v6423_v12, %v1880_v35 }
0x1dfe   :  { %1886 = vrot.lane.b32.xlu0 %v1882_v22, %s6481_s23 }
0x1dff   :  { %v691_v48 = vpop.permute.xlu0 %690 }
0x1e00   :  { %694 = vst.msk [vmem:[#allocation3 + $0x28] sm:$0xff] %vm391_vm3, %v691_v48 }
0x1e01   :  { %1126 = vst.msk [vmem:[#allocation3 + $0x28] sm:$0xff] %vm244_vm1, %v6840_v21 }
0x1e03   :  { %v388_v23 = vpop.permute.xlu0 %387 }
0x1e04   :  { %392 = vst.msk [vmem:[#allocation3 + $0x38] sm:$0xff] %vm391_vm3, %v388_v23 }
0x1e05   :  { %1412 = vst.msk [vmem:[#allocation3 + $0x38] sm:$0xff] %vm244_vm1, %v1410_v24 }
0x1e08   :  { %v1423_v15 = vld [vmem:[#allocation3 + $0x28] sm:$0xff] }
0x1e09   :  { %5133 = vmatmul.mubr.msk.f32.gmra.mrb[32].mxu0 %vm1441_vm4, %v1423_v15 }
0x1e0a   :  { %5135 = vmatprep.mubr.msk.f32.mxu0 %vm1441_vm4, %v1424_v47 }
0x1e0c   :  { %v7014_v25 = vld [vmem:[#allocation3 + $0x38] sm:$0xff] }
0x1e0d   :  { %5136 = vmatmul.mubr.msk.f32.gmra.mrb[34].mxu0 %vm1441_vm4, %v7014_v25 }
0x1e0e   :  { %5179 = vmatprep.mubr.msk.f32.mxu0 %vm6483_vm2, %v6479_v3 }
0x1e70   :  { %v1887_v21 = vpop.permute.xlu0 %1886 }
0x1e71   :  { %5180 = vmatmul.mubr.msk.f32.vlgmr.msra.gmra.mrb[36].mxu0 %vm244_vm1, %v1887_v21 }
0x1e72   :  { %5485 = vmatpush3.bf16.msra.mxu0 %v6904_v39  ;;  %5201 = vmatprep.mubr.msk.f32.mxu0 %vm6483_vm2, %v6479_v3 }
0x1e73   :  { %5486 = vmatprep.subr.bf16.mxu0 %v6482_v46 }
0x1e76   :  { %5488 = vmatpush3.bf16.msra.mxu0 %v6914_v45 }
0x1e77   :  { %5495 = vmatprep.subr.bf16.mxu0 %v6482_v46 }
0x1edc   :  { %v7027_v26 = vpop.f32.mrb[32].mxu0 }
0x1edd   :  { %v1552_v27 = vpop.f32.mrb[33].mxu0  ;;  %v1558_v12 = vadd.f32 %v7027_v26, %v6940_v20  ;;  %v2394_v26 = vld [vmem:[%s9412_s7] sm:$0xff] }
0x1ede   :  { %v1553_v61 = vadd.f32 %v6940_v20, %v1552_v27  ;;  %v2395_v27 = vld [vmem:[%s9412_s7 + $0x8] sm:$0xff] }
0x1ee0   :  { %v7029_v11 = vpop.f32.mrb[34].mxu0 }
0x1ee1   :  { %v7031_v31 = vpop.f32.mrb[35].mxu0 }
0x1f44   :  { %v1956_v34 = vpop.f32.mrb[36].mxu0 }
0x1f45   :  { %v1960_v36 = vadd.f32 %v1956_v34, %v1548_v33  ;;  %v5181_v58 = vpop.f32.mrb[37].mxu0  ;;  %v5502_v33 = vpack.c.bf16 %v2395_v27, %v2394_v26  ;;  %v2396_v34 = vld [vmem:[%s9412_s7 + $0x10] sm:$0xff] }
0x1f47   :  { %6426 = vtanh.f32 %v1960_v36  ;;  %v4791_v19 = vmul.f32 -1.442695, %v1960_v36  ;;  %v2397_v36 = vld [vmem:[%s9412_s7 + $0x18] sm:$0xff] }
0x1f49   :  { %6428 = vpow2.f32 %v4791_v19  ;;  %v2398_v19 = vld [vmem:[%s9412_s7 + $0x20] sm:$0xff] }
0x1f51   :  { %v6427_v37 = vpop.eup %6426 }
0x1f52   :  { %1970 = vrot.lane.b32.xlu1 %v6427_v37, %s6480_s3  ;;  %v5505_v37 = vpack.c.bf16 %v2397_v36, %v2396_v34  ;;  %v2516_v34 = vld [vmem:[%s9414_s9 + $0x8] sm:$0xff]  ;;  %v2523_v36 = vld [vmem:[%s9414_s9 + $0x40] sm:$0xff] }
0x1f53   :  { %v6429_v52 = vpop.eup %6428 }
0x1f54   :  { %v1964_v40 = vadd.f32 1.0, %v6429_v52  ;;  %v2399_v52 = vld [vmem:[%s9412_s7 + $0x28] sm:$0xff] }
0x1f56   :  { %6430 = vrcp.f32 %v1964_v40  ;;  %v5508_v40 = vpack.c.bf16 %v2399_v52, %v2398_v19  ;;  %v2525_v19 = vld [vmem:[%s9414_s9 + $0x50] sm:$0xff]  ;;  %v2515_v52 = vld [vmem:[%s9414_s9] sm:$0xff] }
0x1f60   :  { %v6431_v49 = vpop.eup %6430 }
0x1f61   :  { %v1968_v55 = vmul.f32 %v6431_v49, %v1876_v18 }
0x1fc4   :  { %v1971_v51 = vpop.permute.xlu1 %1970 }
0x1fc5   :  { %v1973_v53 = vmul.f32 %v6431_v49, %v1971_v51  ;;  %v2401_v51 = vld [vmem:[%s9412_s7 + $0x38] sm:$0xff] }
0x1fc7   :  { %1975 = vrot.lane.b32.xlu0 %v1973_v53, %s6481_s23 }
0x2039   :  { %v1976_v42 = vpop.permute.xlu0 %1975 }
0x203a   :  { %v1978_v59 = vadd.f32 %v1976_v42, %v1968_v55  ;;  %v1563_v55 = vadd.f32 %v6940_v20, %v7031_v31 }
0x203c   :  { %6432 = vtanh.f32 %v1978_v59 }
0x2046   :  { %v6433_v13 = vpop.eup %6432 }
0x2047   :  { %1981 = vrot.lane.b32.xlu1 %v6433_v13, %s6480_s3 }
0x20b9   :  { %v1982_v41 = vpop.permute.xlu1 %1981 }
0x20ba   :  { %v1984_v4 = vmul.f32 %v6431_v49, %v1982_v41  ;;  %v2400_v49 = vld [vmem:[%s9412_s7 + $0x30] sm:$0xff] }
0x20bb   :  { %v5511_v53 = vpack.c.bf16 %v2401_v51, %v2400_v49 }
0x20bc   :  { %1988 = vrot.lane.b32.xlu0 %v1984_v4, %s6481_s23 }
0x212e   :  { %v1989_v16 = vpop.permute.xlu0 %1988 }
0x212f   :  { %5191 = vmatmul.mubr.msk.f32.vlgmr.msra.gmra.mrb[26].mxu1 %vm244_vm1, %v1989_v16 }
0x2130   :  { %5491 = vmatpush3.bf16.msra.mxu1 %v6904_v39  ;;  %5212 = vmatprep.mubr.msk.f32.mxu1 %vm6483_vm2, %v6479_v3 }
0x2131   :  { %5492 = vmatprep.subr.bf16.mxu1 %v6482_v46 }
0x2134   :  { %5494 = vmatpush3.bf16.msra.mxu1 %v6914_v45 }
0x2135   :  { %5501 = vmatprep.subr.bf16.mxu1 %v6482_v46 }
0x2202   :  { %v2058_v63 = vpop.f32.mrb[26].mxu1 }
0x2203   :  { %v2062_v54 = vadd.f32 %v2058_v63, %v1553_v61  ;;  %v5192_v56 = vpop.f32.mrb[27].mxu1 }
0x2205   :  { %6434 = vtanh.f32 %v2062_v54  ;;  %v4793_v44 = vmul.f32 -1.442695, %v2062_v54 }
0x2207   :  { %6436 = vpow2.f32 %v4793_v44 }
0x220f   :  { %v6435_v2 = vpop.eup %6434 }
0x2210   :  { %2072 = vrot.lane.b32.xlu1 %v6435_v2, %s6480_s3 }
0x2211   :  { %v6437_v5 = vpop.eup %6436 }
0x2212   :  { %v2066_v57 = vadd.f32 1.0, %v6437_v5 }
0x2214   :  { %6438 = vrcp.f32 %v2066_v57 }
0x221e   :  { %v6439_v6 = vpop.eup %6438 }
0x221f   :  { %v2070_v38 = vmul.f32 %v6439_v6, %v1978_v59 }
0x2282   :  { %v2073_v30 = vpop.permute.xlu1 %2072 }
0x2283   :  { %v2075_v1 = vmul.f32 %v6439_v6, %v2073_v30 }
0x2285   :  { %2077 = vrot.lane.b32.xlu0 %v2075_v1, %s6481_s23 }
0x22f7   :  { %v2078_v7 = vpop.permute.xlu0 %2077 }
0x22f8   :  { %v2080_v8 = vadd.f32 %v2078_v7, %v2070_v38 }
0x22fa   :  { %6440 = vtanh.f32 %v2080_v8 }
0x2304   :  { %v6441_v9 = vpop.eup %6440 }
0x2305   :  { %2083 = vrot.lane.b32.xlu1 %v6441_v9, %s6480_s3 }
0x2377   :  { %v2084_v60 = vpop.permute.xlu1 %2083 }
0x2378   :  { %v2086_v43 = vmul.f32 %v6439_v6, %v2084_v60  ;;  %v4800_v6 = vld [vmem:[%s9413_s8] ss:$0 sm:$0xff] }
0x237a   :  { %2090 = vrot.lane.b32.xlu0 %v2086_v43, %s6481_s23 }
0x23ec   :  { %v2091_v10 = vpop.permute.xlu0 %2090 }
0x23ed   :  { %5202 = vmatmul.mubr.msk.f32.vlgmr.msra.gmra.mrb[38].mxu0 %vm244_vm1, %v2091_v10 }
0x23ee   :  { %5497 = vmatpush3.bf16.msra.mxu0 %v6904_v39  ;;  %5223 = vmatprep.mubr.msk.f32.mxu0 %vm6483_vm2, %v6479_v3 }
0x23ef   :  { %5498 = vmatprep.subr.bf16.mxu0 %v6482_v46 }
0x23f2   :  { %5500 = vmatpush3.bf16.msra.mxu0 %v6914_v45 }
0x24c0   :  { %v2160_v14 = vpop.f32.mrb[38].mxu0 }
0x24c1   :  { %v2164_v0 = vadd.f32 %v2160_v14, %v1558_v12  ;;  %v5203_v17 = vpop.f32.mrb[39].mxu0 }
0x24c3   :  { %6442 = vtanh.f32 %v2164_v0  ;;  %v4795_v18 = vmul.f32 -1.442695, %v2164_v0 }
0x24c5   :  { %6444 = vpow2.f32 %v4795_v18 }
0x24cd   :  { %v6443_v62 = vpop.eup %6442 }
0x24ce   :  { %2174 = vrot.lane.b32.xlu1 %v6443_v62, %s6480_s3 }
0x24cf   :  { %v6445_v39 = vpop.eup %6444 }
0x24d0   :  { %v2168_v50 = vadd.f32 1.0, %v6445_v39  ;;  %v1568_v39 = vadd.f32 %v7029_v11, %v6940_v20 }
0x24d2   :  { %6446 = vrcp.f32 %v2168_v50 }
0x24dc   :  { %v6447_v35 = vpop.eup %6446 }
0x24dd   :  { %v2172_v45 = vmul.f32 %v6447_v35, %v2080_v8 }
0x2540   :  { %v2175_v22 = vpop.permute.xlu1 %2174 }
0x2541   :  { %v2177_v48 = vmul.f32 %v6447_v35, %v2175_v22 }
0x2543   :  { %2179 = vrot.lane.b32.xlu0 %v2177_v48, %s6481_s23 }
0x25b5   :  { %v2180_v23 = vpop.permute.xlu0 %2179 }
0x25b6   :  { %v2182_v24 = vadd.f32 %v2180_v23, %v2172_v45 }
0x25b8   :  { %6448 = vtanh.f32 %v2182_v24 }
0x25c2   :  { %v6449_v15 = vpop.eup %6448 }
0x25c3   :  { %2185 = vrot.lane.b32.xlu1 %v6449_v15, %s6480_s3 }
0x2635   :  { %v2186_v47 = vpop.permute.xlu1 %2185 }
0x2636   :  { %v2188_v21 = vmul.f32 %v6447_v35, %v2186_v47 }
0x2638   :  { %2192 = vrot.lane.b32.xlu0 %v2188_v21, %s6481_s23 }
0x26aa   :  { %v2193_v58 = vpop.permute.xlu0 %2192 }
0x26ab   :  { %5213 = vmatmul.mubr.msk.f32.vlgmr.msra.gmra.mrb[28].mxu1 %vm244_vm1, %v2193_v58  ;;  %v2518_v58 = vld [vmem:[%s9414_s9 + $0x18] sm:$0xff] }
0x26ac   :  { %5503 = vmatpush3.bf16.msra.mxu1 %v5502_v33  ;;  %5242 = vmatprep.mubr.msk.f32.mxu1 %vm6483_vm2, %v6479_v3  ;;  %v5529_v49 = vpack.c.bf16 %v2525_v19, %v2518_v58 }
0x26ad   :  { %5504 = vmatprep.subr.bf16.mxu1 %v6482_v46 }
0x26b0   :  { %5506 = vmatpush3.bf16.msra.mxu1 %v5505_v37  ;;  %v5513_v37 = vpack.c.bf16 %v2523_v36, %v2516_v34  ;;  %v2541_v34 = vld [vmem:[%s9414_s9 + $0xd0] sm:$0xff] }
0x26b1   :  { %5507 = vmatprep.subr.bf16.mxu1 %v6482_v46 }
0x26b2   :  { %5514 = vmatprep.subr.bf16.mxu0 %v5513_v37  ;;  %v2533_v37 = vld [vmem:[%s9414_s9 + $0x90] sm:$0xff] }
0x26b4   :  { %5509 = vmatpush3.bf16.msra.mxu1 %v5508_v40  ;;  %v2522_v40 = vld [vmem:[%s9414_s9 + $0x38] sm:$0xff] }
0x26b5   :  { %5510 = vmatprep.subr.bf16.mxu1 %v6482_v46  ;;  %v5515_v51 = vpack.c.bf16 %v2522_v40, %v2515_v52 }
0x26b8   :  { %5512 = vmatpush3.bf16.msra.mxu1 %v5511_v53  ;;  %v2517_v53 = vld [vmem:[%s9414_s9 + $0x10] sm:$0xff] }
0x26b9   :  { %5530 = vmatprep.subr.bf16.mxu1 %v5529_v49  ;;  %v2540_v49 = vld [vmem:[%s9414_s9 + $0xc8] sm:$0xff] }
0x26bb   :  { %5243 = vmatmul.mubr.msk.f32.vlgmr.msra.gmra.mrb[30].mxu1 %vm1441_vm4, %v7014_v25 }
0x26bc   :  { %2746 = vmatprep.mubr.f32.mxu1 %v6479_v3 }
0x277e   :  { %v2262_v42 = vpop.f32.mrb[28].mxu1 }
0x277f   :  { %v2266_v59 = vadd.f32 %v2262_v42, %v1563_v55  ;;  %v5214_v13 = vpop.f32.mrb[29].mxu1  ;;  %v2524_v55 = vld [vmem:[%s9414_s9 + $0x48] sm:$0xff]  ;;  %v2530_v42 = vld [vmem:[%s9414_s9 + $0x78] sm:$0xff] }
0x2780   :  { %v2537_v13 = vld [vmem:[%s9414_s9 + $0xb0] sm:$0xff] }
0x2781   :  { %6450 = vtanh.f32 %v2266_v59  ;;  %v4797_v61 = vmul.f32 -1.442695, %v2266_v59  ;;  %v5531_v59 = vpack.c.bf16 %v2524_v55, %v2517_v53  ;;  %v2542_v53 = vld [vmem:[%s9414_s9 + $0xd8] sm:$0xff] }
0x2783   :  { %6452 = vpow2.f32 %v4797_v61  ;;  %5532 = vmatpush1.bf16.msra.mxu1 %v5531_v59  ;;  %v2555_v59 = vld [vmem:[%s9414_s9 + $0x140] sm:$0xff] }
0x278b   :  { %v6451_v41 = vpop.eup %6450 }
0x278c   :  { %2276 = vrot.lane.b32.xlu1 %v6451_v41, %s6480_s3  ;;  %v2532_v41 = vld [vmem:[%s9414_s9 + $0x88] sm:$0xff] }
0x278d   :  { %v6453_v63 = vpop.eup %6452 }
0x278e   :  { %v2478_v4 = vpop.f32.mrb[30].mxu1  ;;  %v2270_v54 = vadd.f32 1.0, %v6453_v63  ;;  %v2529_v63 = vld [vmem:[%s9414_s9 + $0x70] sm:$0xff] }
0x278f   :  { %v5244_v16 = vpop.f32.mrb[31].mxu1  ;;  %v2479_v30 = vadd.f32 %v4800_v6, %v2478_v4  ;;  %v2539_v4 = vld [vmem:[%s9414_s9 + $0xc0] sm:$0xff]  ;;  %v2546_v6 = vld [vmem:[%s9414_s9 + $0xf8] sm:$0xff] }
0x2790   :  { %6454 = vrcp.f32 %v2270_v54  ;;  %v5517_v16 = vpack.c.bf16 %v2537_v13, %v2530_v42  ;;  %v5533_v61 = vpack.c.bf16 %v2539_v4, %v2532_v41  ;;  %v2536_v54 = vld [vmem:[%s9414_s9 + $0xa8] sm:$0xff]  ;;  %v5551_v13 = vpack.c.bf16 %v2540_v49, %v2533_v37  ;;  %v2547_v4 = vld [vmem:[%s9414_s9 + $0x100] sm:$0xff] }
0x2791   :  { %v4802_v8 = vmul.f32 -1.442695, %v2479_v30  ;;  %v2548_v42 = vld [vmem:[%s9414_s9 + $0x108] sm:$0xff]  ;;  %v2930_v49 = vld [vmem:[%s9415_s11 + $0x120] sm:$0xff] }
0x2792   :  { %5534 = vmatprep.subr.bf16.mxu1 %v5533_v61  ;;  %v2554_v61 = vld [vmem:[%s9414_s9 + $0x138] sm:$0xff] }
0x279a   :  { %v6455_v25 = vpop.eup %6454 }
0x279b   :  { %v2274_v31 = vmul.f32 %v6455_v25, %v2182_v24 }
0x27fe   :  { %v2277_v56 = vpop.permute.xlu1 %2276 }
0x27ff   :  { %v2279_v2 = vmul.f32 %v6455_v25, %v2277_v56  ;;  %v5519_v56 = vpack.c.bf16 %v2536_v54, %v2529_v63  ;;  %v2549_v63 = vld [vmem:[%s9414_s9 + $0x110] sm:$0xff]  ;;  %v2556_v54 = vld [vmem:[%s9414_s9 + $0x148] sm:$0xff] }
0x2801   :  { %2281 = vrot.lane.b32.xlu0 %v2279_v2, %s6481_s23  ;;  %v2538_v2 = vld [vmem:[%s9414_s9 + $0xb8] sm:$0xff] }
0x2873   :  { %v2282_v44 = vpop.permute.xlu0 %2281 }
0x2874   :  { %v2284_v5 = vadd.f32 %v2282_v44, %v2274_v31  ;;  %v2544_v31 = vld [vmem:[%s9414_s9 + $0xe8] sm:$0xff]  ;;  %v2551_v44 = vld [vmem:[%s9414_s9 + $0x120] sm:$0xff] }
0x2876   :  { %6456 = vtanh.f32 %v2284_v5 }
0x2877   :  { %6458 = vtanh.f32 %v2479_v30  ;;  %v2553_v30 = vld [vmem:[%s9414_s9 + $0x130] sm:$0xff] }
0x2878   :  { %6460 = vpow2.f32 %v4802_v8  ;;  %v2545_v8 = vld [vmem:[%s9414_s9 + $0xf0] sm:$0xff] }
0x2880   :  { %v6457_v57 = vpop.eup %6456 }
0x2881   :  { %2287 = vrot.lane.b32.xlu1 %v6457_v57, %s6480_s3  ;;  %v6459_v7 = vpop.eup %6458  ;;  %v5521_v57 = vpack.c.bf16 %v2551_v44, %v2544_v31  ;;  %v5568_v31 = vpack.c.bf16 %v2556_v54, %v2549_v63  ;;  %v2561_v44 = vld [vmem:[%s9414_s9 + $0x170] sm:$0xff]  ;;  %v2935_v63 = vld [vmem:[%s9415_s11 + $0x148] sm:$0xff] }
0x2882   :  { %v6461_v9 = vpop.eup %6460  ;;  %v2940_v54 = vld [vmem:[%s9415_s11 + $0x170] sm:$0xff] }
0x2883   :  { %v2485_v60 = vadd.f32 1.0, %v6461_v9  ;;  %v2552_v9 = vld [vmem:[%s9414_s9 + $0x128] sm:$0xff] }
0x2885   :  { %6462 = vrcp.f32 %v2485_v60 }
0x288f   :  { %v6463_v10 = vpop.eup %6462 }
0x2890   :  { %v2489_v0 = vmul.f32 0.0, %v6463_v10 }
0x28f3   :  { %v2288_v1 = vpop.permute.xlu1 %2287 }
0x28f4   :  { %v2290_v38 = vmul.f32 %v6455_v25, %v2288_v1  ;;  %v2531_v25 = vld [vmem:[%s9414_s9 + $0x80] sm:$0xff] }
0x28f5   :  { %v2543_v1 = vld [vmem:[%s9414_s9 + $0xe0] sm:$0xff] }
0x28f6   :  { %2294 = vrot.lane.b32.xlu0 %v2290_v38, %s6481_s23  ;;  %v5537_v38 = vpack.c.bf16 %v2553_v30, %v2546_v6  ;;  %v2563_v6 = vld [vmem:[%s9414_s9 + $0x180] sm:$0xff]  ;;  %v2570_v30 = vld [vmem:[%s9414_s9 + $0x1b8] sm:$0xff] }
0x28fa   :  { %2491 = vrot.lane.b32.xlu0 %v6459_v7, %s6480_s3  ;;  %v2550_v7 = vld [vmem:[%s9414_s9 + $0x118] sm:$0xff] }
0x28fb   :  { %v5523_v60 = vpack.c.bf16 %v2550_v7, %v2543_v1  ;;  %v2895_v1 = vld [vmem:[%s9415_s11 + $0x8] sm:$0xff]  ;;  %v2897_v7 = vld [vmem:[%s9415_s11 + $0x18] sm:$0xff] }
0x2968   :  { %v2295_v43 = vpop.permute.xlu0 %2294 }
0x2969   :  { %5224 = vmatmul.mubr.msk.f32.vlgmr.msra.gmra.mrb[40].mxu0 %vm244_vm1, %v2295_v43  ;;  %v2558_v43 = vld [vmem:[%s9414_s9 + $0x158] sm:$0xff] }
0x296a   :  { %2675 = vmatprep.mubr.f32.mxu0 %v6479_v3  ;;  %5516 = vmatpush1.bf16.msra.mxu0 %v5515_v51  ;;  %v2535_v51 = vld [vmem:[%s9414_s9 + $0xa0] sm:$0xff] }
0x296b   :  { %5518 = vmatprep.subr.bf16.mxu0 %v5517_v16  ;;  %v5565_v41 = vpack.c.bf16 %v2542_v53, %v2535_v51  ;;  %v5553_v16 = vpack.c.bf16 %v2555_v59, %v2548_v42  ;;  %v2927_v51 = vld [vmem:[%s9415_s11 + $0x108] sm:$0xff]  ;;  %v2932_v53 = vld [vmem:[%s9415_s11 + $0x130] sm:$0xff] }
0x296c   :  { %v2492_v12 = vpop.permute.xlu0 %2491  ;;  %v2924_v59 = vld [vmem:[%s9415_s11 + $0xf0] sm:$0xff] }
0x296d   :  { %v2494_v14 = vmul.f32 %v6463_v10, %v2492_v12  ;;  %v2560_v12 = vld [vmem:[%s9414_s9 + $0x168] sm:$0xff] }
0x296e   :  { %5520 = vmatpush1.bf16.msra.mxu0 %v5519_v56  ;;  %v2569_v56 = vld [vmem:[%s9414_s9 + $0x1b0] sm:$0xff] }
0x296f   :  { %2496 = vrot.lane.b32.xlu0 %v2494_v14, %s6481_s23  ;;  %5522 = vmatprep.subr.bf16.mxu0 %v5521_v57 }
0x2972   :  { %5524 = vmatpush1.bf16.msra.mxu0 %v5523_v60  ;;  %v5571_v60 = vpack.c.bf16 %v2570_v30, %v2563_v6  ;;  %v2936_v30 = vld [vmem:[%s9415_s11 + $0x150] sm:$0xff] }
0x29e1   :  { %v2497_v17 = vpop.permute.xlu0 %2496 }
0x29e2   :  { %v2499_v62 = vadd.f32 %v2497_v17, %v2489_v0  ;;  %v5539_v0 = vpack.c.bf16 %v2552_v9, %v2545_v8  ;;  %v2902_v8 = vld [vmem:[%s9415_s11 + $0x40] sm:$0xff] }
0x29e4   :  { %6464 = vtanh.f32 %v2499_v62  ;;  %v2567_v62 = vld [vmem:[%s9414_s9 + $0x1a0] sm:$0xff] }
0x29ee   :  { %v6465_v18 = vpop.eup %6464 }
0x29ef   :  { %2502 = vrot.lane.b32.xlu0 %v6465_v18, %s6480_s3  ;;  %v2557_v18 = vld [vmem:[%s9414_s9 + $0x150] sm:$0xff] }
0x2a3c   :  { %v2364_v50 = vpop.f32.mrb[40].mxu0 }
0x2a3d   :  { %v2368_v35 = vadd.f32 %v2364_v50, %v1568_v39  ;;  %v5225_v22 = vpop.f32.mrb[41].mxu0  ;;  %v2564_v39 = vld [vmem:[%s9414_s9 + $0x188] sm:$0xff]  ;;  %v5541_v50 = vpack.c.bf16 %v2567_v62, %v2560_v12  ;;  %v2905_v62 = vld [vmem:[%s9415_s11 + $0x58] sm:$0xff] }
0x2a3e   :  { %v2566_v22 = vld [vmem:[%s9414_s9 + $0x198] sm:$0xff] }
0x2a3f   :  { %6466 = vtanh.f32 %v2368_v35  ;;  %v4799_v24 = vmul.f32 -1.442695, %v2368_v35  ;;  %v2559_v35 = vld [vmem:[%s9414_s9 + $0x160] sm:$0xff] }
0x2a41   :  { %6468 = vpow2.f32 %v4799_v24  ;;  %v2527_v24 = vld [vmem:[%s9414_s9 + $0x60] sm:$0xff] }
0x2a49   :  { %v6467_v48 = vpop.eup %6466 }
0x2a4a   :  { %2378 = vrot.lane.b32.xlu1 %v6467_v48, %s6480_s3  ;;  %v5527_v48 = vpack.c.bf16 %v2564_v39, %v2557_v18  ;;  %v2910_v18 = vld [vmem:[%s9415_s11 + $0x80] sm:$0xff]  ;;  %v2907_v39 = vld [vmem:[%s9415_s11 + $0x68] sm:$0xff] }
0x2a4b   :  { %v6469_v15 = vpop.eup %6468 }
0x2a4c   :  { %v2372_v47 = vadd.f32 1.0, %v6469_v15 }
0x2a4e   :  { %6470 = vrcp.f32 %v2372_v47 }
0x2a58   :  { %v7114_v21 = vpop.eup %6470 }
0x2a59   :  { %v2376_v11 = vmul.f32 %v7114_v21, %v2284_v5  ;;  %v5535_v5 = vpack.c.bf16 %v2538_v2, %v2531_v25  ;;  %v2562_v25 = vld [vmem:[%s9414_s9 + $0x178] sm:$0xff]  ;;  %v5555_v2 = vpack.c.bf16 %v2554_v61, %v2547_v4  ;;  %v5809_v4 = vpack.c.bf16 %v2932_v53, %v2927_v51  ;;  %v2931_v61 = vld [vmem:[%s9415_s11 + $0x128] sm:$0xff]  ;;  %v2980_v51 = vld [vmem:[%s9415_s11 + $0x2b0] sm:$0xff] }
0x2a5a   :  { %v5557_v57 = vpack.c.bf16 %v2569_v56, %v2562_v25  ;;  %v2937_v25 = vld [vmem:[%s9415_s11 + $0x158] sm:$0xff]  ;;  %v2942_v56 = vld [vmem:[%s9415_s11 + $0x180] sm:$0xff] }
0x2a5b   :  { %5536 = vmatpush1.bf16.msra.mxu1 %v5535_v5  ;;  %v2568_v5 = vld [vmem:[%s9414_s9 + $0x1a8] sm:$0xff]  ;;  %v5813_v6 = vpack.c.bf16 %v2942_v56, %v2937_v25  ;;  %v2977_v53 = vld [vmem:[%s9415_s11 + $0x298] sm:$0xff]  ;;  %v2990_v25 = vld [vmem:[%s9415_s11 + $0x300] sm:$0xff] }
0x2a5c   :  { %5538 = vmatprep.subr.bf16.mxu1 %v5537_v38  ;;  %v2900_v38 = vld [vmem:[%s9415_s11 + $0x30] sm:$0xff]  ;;  %v5559_v9 = vpack.c.bf16 %v2568_v5, %v2561_v44  ;;  %v2934_v44 = vld [vmem:[%s9415_s11 + $0x140] sm:$0xff]  ;;  %v2939_v5 = vld [vmem:[%s9415_s11 + $0x168] sm:$0xff] }
0x2a5d   :  { %v5573_v12 = vpack.c.bf16 %v2900_v38, %v2895_v1  ;;  %v2941_v1 = vld [vmem:[%s9415_s11 + $0x178] sm:$0xff]  ;;  %v2987_v56 = vld [vmem:[%s9415_s11 + $0x2e8] sm:$0xff] }
0x2a5e   :  { %v2945_v38 = vld [vmem:[%s9415_s11 + $0x198] sm:$0xff] }
0x2a5f   :  { %5540 = vmatpush1.bf16.msra.mxu1 %v5539_v0  ;;  %v2896_v0 = vld [vmem:[%s9415_s11 + $0x10] sm:$0xff] }
0x2a60   :  { %5542 = vmatprep.subr.bf16.mxu1 %v5541_v50  ;;  %v2912_v50 = vld [vmem:[%s9415_s11 + $0x90] sm:$0xff] }
0x2a61   :  { %v2503_v45 = vpop.permute.xlu0 %2502 }
0x2a62   :  { %v2505_v23 = vmul.f32 %v6463_v10, %v2503_v45  ;;  %v2565_v10 = vld [vmem:[%s9414_s9 + $0x190] sm:$0xff]  ;;  %v5543_v45 = vpack.c.bf16 %v2566_v22, %v2559_v35 }
0x2a63   :  { %v5525_v17 = vpack.c.bf16 %v2565_v10, %v2558_v43  ;;  %v2894_v43 = vld [vmem:[%s9415_s11] sm:$0xff]  ;;  %v2899_v10 = vld [vmem:[%s9415_s11 + $0x28] sm:$0xff] }
0x2a64   :  { %2511 = vrot.lane.b32.xlu0 %v2505_v23, %s6480_s3  ;;  %5544 = vmatpush1.bf16.msra.mxu1 %v5543_v45  ;;  %v2520_v23 = vld [vmem:[%s9414_s9 + $0x28] sm:$0xff]  ;;  %v5575_v35 = vpack.c.bf16 %v2899_v10, %v2894_v43  ;;  %v2909_v45 = vld [vmem:[%s9415_s11 + $0x78] sm:$0xff]  ;;  %v5815_v43 = vpack.c.bf16 %v2941_v1, %v2936_v30  ;;  %v2944_v10 = vld [vmem:[%s9415_s11 + $0x190] sm:$0xff] }
0x2a65   :  { %5526 = vmatprep.subr.bf16.mxu0 %v5525_v17  ;;  %5561 = vmatprep.subr.bf16.mxu1 %v6482_v46  ;;  %v5545_v15 = vpack.c.bf16 %v2527_v24, %v2520_v23  ;;  %v2901_v17 = vld [vmem:[%s9415_s11 + $0x38] sm:$0xff]  ;;  %v5577_v23 = vpack.c.bf16 %v2910_v18, %v2905_v62  ;;  %v5801_v24 = vpack.c.bf16 %v2912_v50, %v2907_v39  ;;  %v2951_v62 = vld [vmem:[%s9415_s11 + $0x1c8] sm:$0xff]  ;;  %v2960_v39 = vld [vmem:[%s9415_s11 + $0x210] sm:$0xff] }
0x2a66   :  { %5528 = vmatpush1.bf16.msra.mxu0 %v5527_v48  ;;  %v5799_v22 = vpack.c.bf16 %v2901_v17, %v2896_v0  ;;  %v2904_v48 = vld [vmem:[%s9415_s11 + $0x50] sm:$0xff]  ;;  %v2946_v17 = vld [vmem:[%s9415_s11 + $0x1a0] sm:$0xff]  ;;  %v2955_v18 = vld [vmem:[%s9415_s11 + $0x1e8] sm:$0xff] }
0x2a67   :  { %5546 = vmatprep.subr.bf16.mxu0 %v5545_v15  ;;  %v2906_v15 = vld [vmem:[%s9415_s11 + $0x60] sm:$0xff]  ;;  %v2957_v50 = vld [vmem:[%s9415_s11 + $0x1f8] sm:$0xff] }
0x2a68   :  { %v2986_v1 = vld [vmem:[%s9415_s11 + $0x2e0] sm:$0xff] }
0x2abc   :  { %v2379_v26 = vpop.permute.xlu1 %2378 }
0x2abd   :  { %v2381_v20 = vmul.f32 %v7114_v21, %v2379_v26 }
0x2abf   :  { %2383 = vrot.lane.b32.xlu1 %v2381_v20, %s6481_s23  ;;  %v2519_v20 = vld [vmem:[%s9414_s9 + $0x20] sm:$0xff] }
0x2ad6   :  { %v2512_v19 = vpop.permute.xlu0 %2511 }
0x2b31   :  { %v2384_v27 = vpop.permute.xlu1 %2383 }
0x2b32   :  { %v2386_v33 = vadd.f32 %v2384_v27, %v2376_v11  ;;  %v2526_v11 = vld [vmem:[%s9414_s9 + $0x58] sm:$0xff]  ;;  %v2521_v27 = vld [vmem:[%s9414_s9 + $0x30] sm:$0xff] }
0x2b33   :  { %v5547_v36 = vpack.c.bf16 %v2526_v11, %v2519_v20  ;;  %v2920_v20 = vld [vmem:[%s9415_s11 + $0xd0] sm:$0xff]  ;;  %v2917_v11 = vld [vmem:[%s9415_s11 + $0xb8] sm:$0xff] }
0x2b34   :  { %6472 = vtanh.f32 %v2386_v33  ;;  %v2528_v33 = vld [vmem:[%s9414_s9 + $0x68] sm:$0xff] }
0x2b35   :  { %v5562_v58 = vpack.c.bf16 %v2528_v33, %v2521_v27  ;;  %v2922_v27 = vld [vmem:[%s9415_s11 + $0xe0] sm:$0xff]  ;;  %v5579_v33 = vpack.c.bf16 %v2909_v45, %v2904_v48  ;;  %v5819_v48 = vpack.c.bf16 %v2951_v62, %v2946_v17  ;;  %v2996_v62 = vld [vmem:[%s9415_s11 + $0x330] sm:$0xff] }
0x2b36   :  { %v5805_v37 = vpack.c.bf16 %v2922_v27, %v2917_v11  ;;  %v2954_v45 = vld [vmem:[%s9415_s11 + $0x1e0] sm:$0xff]  ;;  %v2967_v27 = vld [vmem:[%s9415_s11 + $0x248] sm:$0xff] }
0x2b37   :  { %v2970_v11 = vld [vmem:[%s9415_s11 + $0x260] sm:$0xff] }
0x2b3e   :  { %v6473_v14 = vpop.eup %6472 }
0x2b3f   :  { %2389 = vrot.lane.b32.xlu1 %v6473_v14, %s6480_s3  ;;  %v5797_v14 = vpack.c.bf16 %v2902_v8, %v2897_v7  ;;  %v2950_v7 = vld [vmem:[%s9415_s11 + $0x1c0] sm:$0xff]  ;;  %v2947_v8 = vld [vmem:[%s9415_s11 + $0x1a8] sm:$0xff] }
0x2bb1   :  { %v2390_v47 = vpop.permute.xlu1 %2389 }
0x2bb2   :  { %v2392_v26 = vmul.f32 %v7114_v21, %v2390_v47  ;;  %v2534_v21 = vld [vmem:[%s9414_s9 + $0x98] sm:$0xff]  ;;  %v2911_v47 = vld [vmem:[%s9415_s11 + $0x88] sm:$0xff] }
0x2bb3   :  { %v5549_v40 = vpack.c.bf16 %v2541_v34, %v2534_v21  ;;  %v5803_v21 = vpack.c.bf16 %v2911_v47, %v2906_v15  ;;  %v2914_v34 = vld [vmem:[%s9415_s11 + $0xa0] sm:$0xff]  ;;  %v2956_v47 = vld [vmem:[%s9415_s11 + $0x1f0] sm:$0xff] }
0x2bb4   :  { %2507 = vrot.lane.b32.xlu1 %v2392_v26, %s6481_s23  ;;  %v2915_v26 = vld [vmem:[%s9415_s11 + $0xa8] sm:$0xff] }
0x2c26   :  { %v2508_v52 = vpop.permute.xlu1 %2507 }
0x2c27   :  { %v7256_v55 = vsel %vm244_vm1, %v2508_v52, %v2512_v19  ;;  %v2916_v19 = vld [vmem:[%s9415_s11 + $0xb0] sm:$0xff]  ;;  %v2921_v52 = vld [vmem:[%s9415_s11 + $0xd8] sm:$0xff] }
0x2c28   :  { %4803 = vmatmul.mubr.msk.f32.vlgmr.msra.gmra.mrb[42].mxu0 %vm1441_vm4, %v7256_v55  ;;  %4804 = vmatmul.mubr.msk.f32.vlgmr.msra.gmra.mrb[32].mxu1 %vm1441_vm4, %v7256_v55  ;;  %v5807_v42 = vpack.c.bf16 %v2921_v52, %v2916_v19  ;;  %v2966_v52 = vld [vmem:[%s9415_s11 + $0x240] sm:$0xff] }
0x2c29   :  { %5548 = vmatpush1.bf16.msra.mxu0 %v5547_v36  ;;  %5563 = vmatpush3.bf16.msra.mxu1 %v5562_v58  ;;  %v2919_v36 = vld [vmem:[%s9415_s11 + $0xc8] sm:$0xff]  ;;  %v5581_v58 = vpack.c.bf16 %v2920_v20, %v2915_v26  ;;  %v2961_v26 = vld [vmem:[%s9415_s11 + $0x218] sm:$0xff] }
0x2c2a   :  { %5550 = vmatprep.subr.bf16.mxu0 %v5549_v40  ;;  %5564 = vmatprep.subr.bf16.mxu1 %v6482_v46  ;;  %v2925_v40 = vld [vmem:[%s9415_s11 + $0xf8] sm:$0xff] }
0x2c2b   :  { %2817 = vmatprep.mubr.f32.mxu0 %v6479_v3  ;;  %5261 = vmatprep.mubr.msk.f32.mxu1 %vm6483_vm2, %v6479_v3  ;;  %v2965_v20 = vld [vmem:[%s9415_s11 + $0x238] sm:$0xff] }
0x2c2d   :  { %5552 = vmatpush1.bf16.msra.mxu0 %v5551_v13  ;;  %5566 = vmatpush3.bf16.msra.mxu1 %v5565_v41  ;;  %v2929_v13 = vld [vmem:[%s9415_s11 + $0x118] sm:$0xff]  ;;  %v5585_v41 = vpack.c.bf16 %v2930_v49, %v2925_v40  ;;  %v2971_v40 = vld [vmem:[%s9415_s11 + $0x268] sm:$0xff] }
0x2c2e   :  { %5554 = vmatprep.subr.bf16.mxu0 %v5553_v16  ;;  %5567 = vmatprep.subr.bf16.mxu1 %v6482_v46  ;;  %v2926_v16 = vld [vmem:[%s9415_s11 + $0x100] sm:$0xff]  ;;  %v2975_v49 = vld [vmem:[%s9415_s11 + $0x288] sm:$0xff] }
0x2c31   :  { %5556 = vmatpush1.bf16.msra.mxu0 %v5555_v2  ;;  %5569 = vmatpush3.bf16.msra.mxu1 %v5568_v31  ;;  %v5587_v2 = vpack.c.bf16 %v2929_v13, %v2924_v59  ;;  %v5811_v31 = vpack.c.bf16 %v2931_v61, %v2926_v16  ;;  %v5827_v59 = vpack.c.bf16 %v2971_v40, %v2966_v52  ;;  %v2974_v13 = vld [vmem:[%s9415_s11 + $0x280] sm:$0xff]  ;;  %v2976_v61 = vld [vmem:[%s9415_s11 + $0x290] sm:$0xff] }
0x2c32   :  { %5558 = vmatprep.subr.bf16.mxu0 %v5557_v57  ;;  %5570 = vmatprep.subr.bf16.mxu1 %v6482_v46  ;;  %v5589_v57 = vpack.c.bf16 %v2940_v54, %v2935_v63  ;;  %v2981_v63 = vld [vmem:[%s9415_s11 + $0x2b8] sm:$0xff]  ;;  %v3016_v40 = vld [vmem:[%s9415_s11 + $0x3d0] sm:$0xff] }
0x2c33   :  { %v2985_v54 = vld [vmem:[%s9415_s11 + $0x2d8] sm:$0xff] }
0x2c35   :  { %5560 = vmatpush1.bf16.msra.mxu0 %v5559_v9  ;;  %5572 = vmatpush3.bf16.msra.mxu1 %v5571_v60  ;;  %v2952_v9 = vld [vmem:[%s9415_s11 + $0x1d0] sm:$0xff]  ;;  %v5591_v60 = vpack.c.bf16 %v2939_v5, %v2934_v44  ;;  %v5831_v44 = vpack.c.bf16 %v2981_v63, %v2976_v61  ;;  %v3026_v63 = vld [vmem:[%s9415_s11 + $0x420] sm:$0xff] }
0x2c36   :  { %5574 = vmatprep.subr.bf16.mxu0 %v5573_v12  ;;  %5798 = vmatprep.subr.bf16.mxu1 %v5797_v14  ;;  %v2949_v12 = vld [vmem:[%s9415_s11 + $0x1b8] sm:$0xff]  ;;  %v5593_v14 = vpack.c.bf16 %v2950_v7, %v2945_v38  ;;  %v5817_v0 = vpack.c.bf16 %v2952_v9, %v2947_v8  ;;  %v2984_v5 = vld [vmem:[%s9415_s11 + $0x2d0] sm:$0xff]  ;;  %v2991_v38 = vld [vmem:[%s9415_s11 + $0x308] sm:$0xff] }
0x2c37   :  { %v2995_v7 = vld [vmem:[%s9415_s11 + $0x328] sm:$0xff]  ;;  %v3000_v8 = vld [vmem:[%s9415_s11 + $0x350] sm:$0xff]  ;;  %v2997_v9 = vld [vmem:[%s9415_s11 + $0x338] sm:$0xff] }
0x2c38   :  { %4805 = vmatmul.mubr.msk.f32.vlgmr.msra.gmra.mrb[44].mxu0 %vm1441_vm4, %v7256_v55  ;;  %5262 = vmatmul.mubr.msk.f32.vlgmr.msra.gmra.mrb[34].mxu1 %vm1441_vm4, %v7256_v55  ;;  %v5583_v55 = vpack.c.bf16 %v2919_v36, %v2914_v34  ;;  %v5823_v34 = vpack.c.bf16 %v2961_v26, %v2956_v47  ;;  %v2964_v36 = vld [vmem:[%s9415_s11 + $0x230] sm:$0xff]  ;;  %v3006_v26 = vld [vmem:[%s9415_s11 + $0x380] sm:$0xff] }
0x2c39   :  { %5576 = vmatpush1.bf16.msra.mxu0 %v5575_v35  ;;  %5800 = vmatpush1.bf16.msra.mxu1 %v5799_v22  ;;  %v2962_v35 = vld [vmem:[%s9415_s11 + $0x220] sm:$0xff]  ;;  %v5595_v22 = vpack.c.bf16 %v2949_v12, %v2944_v10  ;;  %v5835_v10 = vpack.c.bf16 %v2991_v38, %v2986_v1  ;;  %v3039_v1 = vld [vmem:[%s9415_s11 + $0x488] sm:$0xff]  ;;  %v3036_v38 = vld [vmem:[%s9415_s11 + $0x470] sm:$0xff] }
0x2c3a   :  { %5578 = vmatprep.subr.bf16.mxu0 %v5577_v23  ;;  %5802 = vmatprep.subr.bf16.mxu1 %v5801_v24  ;;  %v2959_v23 = vld [vmem:[%s9415_s11 + $0x208] sm:$0xff]  ;;  %v5597_v24 = vpack.c.bf16 %v2960_v39, %v2955_v18  ;;  %v5821_v15 = vpack.c.bf16 %v2962_v35, %v2957_v50  ;;  %v2994_v12 = vld [vmem:[%s9415_s11 + $0x320] sm:$0xff]  ;;  %v3001_v18 = vld [vmem:[%s9415_s11 + $0x358] sm:$0xff] }
0x2c3b   :  { %v3005_v39 = vld [vmem:[%s9415_s11 + $0x378] sm:$0xff]  ;;  %v3010_v50 = vld [vmem:[%s9415_s11 + $0x3a0] sm:$0xff]  ;;  %v3007_v35 = vld [vmem:[%s9415_s11 + $0x388] sm:$0xff] }
0x2c3d   :  { %5580 = vmatpush1.bf16.msra.mxu0 %v5579_v33  ;;  %5804 = vmatpush1.bf16.msra.mxu1 %v5803_v21  ;;  %v2972_v33 = vld [vmem:[%s9415_s11 + $0x270] sm:$0xff]  ;;  %v5599_v21 = vpack.c.bf16 %v2959_v23, %v2954_v45  ;;  %v5839_v45 = vpack.c.bf16 %v3001_v18, %v2996_v62 }
0x2c3e   :  { %5582 = vmatprep.subr.bf16.mxu0 %v5581_v58  ;;  %5806 = vmatprep.subr.bf16.mxu1 %v5805_v37  ;;  %v2969_v58 = vld [vmem:[%s9415_s11 + $0x258] sm:$0xff]  ;;  %v5601_v37 = vpack.c.bf16 %v2970_v11, %v2965_v20  ;;  %v5825_v19 = vpack.c.bf16 %v2972_v33, %v2967_v27  ;;  %v3004_v23 = vld [vmem:[%s9415_s11 + $0x370] sm:$0xff]  ;;  %v3011_v20 = vld [vmem:[%s9415_s11 + $0x3a8] sm:$0xff] }
0x2c3f   :  { %v3015_v11 = vld [vmem:[%s9415_s11 + $0x3c8] sm:$0xff]  ;;  %v3020_v27 = vld [vmem:[%s9415_s11 + $0x3f0] sm:$0xff]  ;;  %v3017_v33 = vld [vmem:[%s9415_s11 + $0x3d8] sm:$0xff] }
0x2c41   :  { %5584 = vmatpush1.bf16.msra.mxu0 %v5583_v55  ;;  %5808 = vmatpush1.bf16.msra.mxu1 %v5807_v42  ;;  %v2982_v55 = vld [vmem:[%s9415_s11 + $0x2c0] sm:$0xff]  ;;  %v5603_v42 = vpack.c.bf16 %v2969_v58, %v2964_v36  ;;  %v5843_v36 = vpack.c.bf16 %v3011_v20, %v3006_v26  ;;  %v2587_v26 = vsub.s32 3, %v6678_v28 }
0x2c42   :  { %5586 = vmatprep.subr.bf16.mxu0 %v5585_v41  ;;  %5810 = vmatprep.subr.bf16.mxu1 %v5809_v4  ;;  %v2979_v41 = vld [vmem:[%s9415_s11 + $0x2a8] sm:$0xff]  ;;  %v5605_v4 = vpack.c.bf16 %v2980_v51, %v2975_v49  ;;  %v5829_v16 = vpack.c.bf16 %v2982_v55, %v2977_v53  ;;  %v3014_v58 = vld [vmem:[%s9415_s11 + $0x3c0] sm:$0xff]  ;;  %v3021_v49 = vld [vmem:[%s9415_s11 + $0x3f8] sm:$0xff] }
0x2c43   :  { %v3025_v51 = vld [vmem:[%s9415_s11 + $0x418] sm:$0xff]  ;;  %v3030_v53 = vld [vmem:[%s9415_s11 + $0x440] sm:$0xff]  ;;  %v3027_v55 = vld [vmem:[%s9415_s11 + $0x428] sm:$0xff] }
0x2c45   :  { %5588 = vmatpush1.bf16.msra.mxu0 %v5587_v2  ;;  %5812 = vmatpush1.bf16.msra.mxu1 %v5811_v31  ;;  %v2992_v2 = vld [vmem:[%s9415_s11 + $0x310] sm:$0xff]  ;;  %v5607_v31 = vpack.c.bf16 %v2979_v41, %v2974_v13  ;;  %v5847_v13 = vpack.c.bf16 %v3021_v49, %v3016_v40  ;;  %v3070_v49 = vld [vmem:[%s9415_s11 + $0x580] sm:$0xff] }
0x2c46   :  { %5590 = vmatprep.subr.bf16.mxu0 %v5589_v57  ;;  %5814 = vmatprep.subr.bf16.mxu1 %v5813_v6  ;;  %v2989_v57 = vld [vmem:[%s9415_s11 + $0x2f8] sm:$0xff]  ;;  %v5609_v6 = vpack.c.bf16 %v2990_v25, %v2985_v54  ;;  %v5833_v30 = vpack.c.bf16 %v2992_v2, %v2987_v56  ;;  %v3024_v41 = vld [vmem:[%s9415_s11 + $0x410] sm:$0xff]  ;;  %v3031_v54 = vld [vmem:[%s9415_s11 + $0x448] sm:$0xff] }
0x2c47   :  { %v3035_v25 = vld [vmem:[%s9415_s11 + $0x468] sm:$0xff]  ;;  %v3040_v56 = vld [vmem:[%s9415_s11 + $0x490] sm:$0xff]  ;;  %v3037_v2 = vld [vmem:[%s9415_s11 + $0x478] sm:$0xff] }
0x2c49   :  { %5592 = vmatpush1.bf16.msra.mxu0 %v5591_v60  ;;  %5816 = vmatpush1.bf16.msra.mxu1 %v5815_v43  ;;  %v3002_v60 = vld [vmem:[%s9415_s11 + $0x360] sm:$0xff]  ;;  %v5611_v43 = vpack.c.bf16 %v2989_v57, %v2984_v5  ;;  %v5851_v5 = vpack.c.bf16 %v3031_v54, %v3026_v63  ;;  %v3075_v63 = vld [vmem:[%s9415_s11 + $0x5a8] sm:$0xff] }
0x2c4a   :  { %5594 = vmatprep.subr.bf16.mxu0 %v5593_v14  ;;  %5818 = vmatprep.subr.bf16.mxu1 %v5817_v0  ;;  %v2999_v14 = vld [vmem:[%s9415_s11 + $0x348] sm:$0xff]  ;;  %v5613_v0 = vpack.c.bf16 %v3000_v8, %v2995_v7  ;;  %v5837_v17 = vpack.c.bf16 %v3002_v60, %v2997_v9  ;;  %v3034_v57 = vld [vmem:[%s9415_s11 + $0x460] sm:$0xff]  ;;  %v3041_v7 = vld [vmem:[%s9415_s11 + $0x498] sm:$0xff] }
0x2c4b   :  { %v5631_v8 = vpack.c.bf16 %v3039_v1, %v3034_v57  ;;  %v5855_v9 = vpack.c.bf16 %v3041_v7, %v3036_v38  ;;  %v3045_v60 = vld [vmem:[%s9415_s11 + $0x4b8] sm:$0xff]  ;;  %v3076_v7 = vld [vmem:[%s9415_s11 + $0x5b0] sm:$0xff] }
0x2c4d   :  { %5596 = vmatpush1.bf16.msra.mxu0 %v5595_v22  ;;  %5820 = vmatpush1.bf16.msra.mxu1 %v5819_v48  ;;  %v3012_v22 = vld [vmem:[%s9415_s11 + $0x3b0] sm:$0xff]  ;;  %v5615_v48 = vpack.c.bf16 %v2999_v14, %v2994_v12 }
0x2c4e   :  { %5598 = vmatprep.subr.bf16.mxu0 %v5597_v24  ;;  %5822 = vmatprep.subr.bf16.mxu1 %v5821_v15  ;;  %v3009_v24 = vld [vmem:[%s9415_s11 + $0x398] sm:$0xff]  ;;  %v5617_v15 = vpack.c.bf16 %v3010_v50, %v3005_v39  ;;  %v5841_v47 = vpack.c.bf16 %v3012_v22, %v3007_v35  ;;  %v3052_v14 = vld [vmem:[%s9415_s11 + $0x4f0] sm:$0xff]  ;;  %v3046_v39 = vld [vmem:[%s9415_s11 + $0x4c0] sm:$0xff] }
0x2c4f   :  { %v3051_v50 = vld [vmem:[%s9415_s11 + $0x4e8] sm:$0xff] }
0x2c50   :  { %v5859_v35 = vpack.c.bf16 %v3051_v50, %v3046_v39  ;;  %v3055_v22 = vld [vmem:[%s9415_s11 + $0x508] sm:$0xff]  ;;  %v3086_v39 = vld [vmem:[%s9415_s11 + $0x600] sm:$0xff] }
0x2c51   :  { %5600 = vmatpush1.bf16.msra.mxu0 %v5599_v21  ;;  %5824 = vmatpush1.bf16.msra.mxu1 %v5823_v34  ;;  %v3022_v21 = vld [vmem:[%s9415_s11 + $0x400] sm:$0xff]  ;;  %v5619_v34 = vpack.c.bf16 %v3009_v24, %v3004_v23  ;;  %v3091_v50 = vld [vmem:[%s9415_s11 + $0x628] sm:$0xff] }
0x2c52   :  { %5602 = vmatprep.subr.bf16.mxu0 %v5601_v37  ;;  %5826 = vmatprep.subr.bf16.mxu1 %v5825_v19  ;;  %v3019_v37 = vld [vmem:[%s9415_s11 + $0x3e8] sm:$0xff]  ;;  %v5621_v19 = vpack.c.bf16 %v3020_v27, %v3015_v11  ;;  %v5845_v52 = vpack.c.bf16 %v3022_v21, %v3017_v33  ;;  %v3062_v24 = vld [vmem:[%s9415_s11 + $0x540] sm:$0xff]  ;;  %v3056_v21 = vld [vmem:[%s9415_s11 + $0x510] sm:$0xff] }
0x2c53   :  { %v3054_v11 = vld [vmem:[%s9415_s11 + $0x500] sm:$0xff]  ;;  %v3059_v33 = vld [vmem:[%s9415_s11 + $0x528] sm:$0xff] }
0x2c55   :  { %5604 = vmatpush1.bf16.msra.mxu0 %v5603_v42  ;;  %5828 = vmatpush1.bf16.msra.mxu1 %v5827_v59  ;;  %v3032_v42 = vld [vmem:[%s9415_s11 + $0x450] sm:$0xff]  ;;  %v5623_v59 = vpack.c.bf16 %v3019_v37, %v3014_v58  ;;  %v3065_v37 = vld [vmem:[%s9415_s11 + $0x558] sm:$0xff] }
0x2c56   :  { %5606 = vmatprep.subr.bf16.mxu0 %v5605_v4  ;;  %5830 = vmatprep.subr.bf16.mxu1 %v5829_v16  ;;  %v3029_v4 = vld [vmem:[%s9415_s11 + $0x438] sm:$0xff]  ;;  %v5625_v16 = vpack.c.bf16 %v3030_v53, %v3025_v51  ;;  %v5849_v61 = vpack.c.bf16 %v3032_v42, %v3027_v55  ;;  %v3067_v51 = vld [vmem:[%s9415_s11 + $0x568] sm:$0xff]  ;;  %v3072_v53 = vld [vmem:[%s9415_s11 + $0x590] sm:$0xff]  ;;  %v5639_v42 = vpack.c.bf16 %v3059_v33, %v3054_v11 }
0x2c57   :  { %v5641_v54 = vpack.c.bf16 %v3070_v49, %v3065_v37  ;;  %v3096_v33 = vld [vmem:[%s9415_s11 + $0x650] sm:$0xff] }
0x2c59   :  { %5608 = vmatpush1.bf16.msra.mxu0 %v5607_v31  ;;  %5832 = vmatpush1.bf16.msra.mxu1 %v5831_v44  ;;  %v3042_v31 = vld [vmem:[%s9415_s11 + $0x4a0] sm:$0xff]  ;;  %v5627_v44 = vpack.c.bf16 %v3029_v4, %v3024_v41  ;;  %v3069_v41 = vld [vmem:[%s9415_s11 + $0x578] sm:$0xff] }
0x2c5a   :  { %5610 = vmatprep.subr.bf16.mxu0 %v5609_v6  ;;  %5834 = vmatprep.subr.bf16.mxu1 %v5833_v30  ;;  %v5629_v6 = vpack.c.bf16 %v3040_v56, %v3035_v25  ;;  %v5853_v30 = vpack.c.bf16 %v3042_v31, %v3037_v2  ;;  %v5865_v25 = vpack.c.bf16 %v3072_v53, %v3067_v51  ;;  %v3080_v56 = vld [vmem:[%s9415_s11 + $0x5d0] sm:$0xff]  ;;  %v3077_v2 = vld [vmem:[%s9415_s11 + $0x5b8] sm:$0xff]  ;;  %v3082_v31 = vld [vmem:[%s9415_s11 + $0x5e0] sm:$0xff] }
0x2c5b   :  { %v5645_v1 = vpack.c.bf16 %v3080_v56, %v3075_v63  ;;  %v5869_v38 = vpack.c.bf16 %v3082_v31, %v3077_v2  ;;  %v3111_v63 = vld [vmem:[%s9415_s11 + $0x6c8] sm:$0xff]  ;;  %v3117_v56 = vld [vmem:[%s9415_s11 + $0x6f8] sm:$0xff]  ;;  %v3122_v2 = vld [vmem:[%s9415_s11 + $0x720] sm:$0xff] }
0x2c5d   :  { %5612 = vmatpush1.bf16.msra.mxu0 %v5611_v43  ;;  %5836 = vmatpush1.bf16.msra.mxu1 %v5835_v10  ;;  %v3050_v43 = vld [vmem:[%s9415_s11 + $0x4e0] sm:$0xff]  ;;  %v3047_v10 = vld [vmem:[%s9415_s11 + $0x4c8] sm:$0xff] }
0x2c5e   :  { %5614 = vmatprep.subr.bf16.mxu0 %v5613_v0  ;;  %5838 = vmatprep.subr.bf16.mxu1 %v5837_v17  ;;  %v5633_v12 = vpack.c.bf16 %v3050_v43, %v3045_v60  ;;  %v3044_v0 = vld [vmem:[%s9415_s11 + $0x4b0] sm:$0xff]  ;;  %v3049_v17 = vld [vmem:[%s9415_s11 + $0x4d8] sm:$0xff]  ;;  %v5857_v62 = vpack.c.bf16 %v3052_v14, %v3047_v10  ;;  %v3090_v60 = vld [vmem:[%s9415_s11 + $0x620] sm:$0xff] }
0x2c5f   :  { %v5635_v18 = vpack.c.bf16 %v3049_v17, %v3044_v0  ;;  %v3087_v43 = vld [vmem:[%s9415_s11 + $0x608] sm:$0xff]  ;;  %v3092_v10 = vld [vmem:[%s9415_s11 + $0x630] sm:$0xff]  ;;  %v3089_v17 = vld [vmem:[%s9415_s11 + $0x618] sm:$0xff] }
0x2c60   :  { %v3084_v0 = vld [vmem:[%s9415_s11 + $0x5f0] sm:$0xff] }
0x2c61   :  { %5616 = vmatpush1.bf16.msra.mxu0 %v5615_v48  ;;  %5840 = vmatpush1.bf16.msra.mxu1 %v5839_v45  ;;  %v3060_v48 = vld [vmem:[%s9415_s11 + $0x530] sm:$0xff]  ;;  %v3057_v45 = vld [vmem:[%s9415_s11 + $0x518] sm:$0xff] }
0x2c62   :  { %5618 = vmatprep.subr.bf16.mxu0 %v5617_v15  ;;  %5842 = vmatprep.subr.bf16.mxu1 %v5841_v47  ;;  %v5637_v23 = vpack.c.bf16 %v3060_v48, %v3055_v22  ;;  %v5861_v15 = vpack.c.bf16 %v3062_v24, %v3057_v45  ;;  %v7707_v47 = vld [vmem:[%s9416_s10] sm:$0xff]  ;;  %v3100_v22 = vld [vmem:[%s9415_s11 + $0x670] sm:$0xff]  ;;  %v3097_v48 = vld [vmem:[%s9415_s11 + $0x658] sm:$0xff]  ;;  %v5875_v24 = vpack.c.bf16 %v3091_v50, %v3086_v39 }
0x2c63   :  { %v2580_v20 = vrot.slane %v7707_v47, %v6681_v29  ;;  %v2576_v27 = vrot.slane %v7707_v47, %v6688_v32  ;;  %v3102_v45 = vld [vmem:[%s9415_s11 + $0x680] sm:$0xff]  ;;  %v3131_v39 = vld [vmem:[%s9415_s11 + $0x768] sm:$0xff] }
0x2c64   :  { %v3135_v50 = vld [vmem:[%s9415_s11 + $0x788] sm:$0xff] }
0x2c65   :  { %5620 = vmatpush1.bf16.msra.mxu0 %v5619_v34  ;;  %5844 = vmatpush1.bf16.msra.mxu1 %v5843_v36  ;;  %v3061_v34 = vld [vmem:[%s9415_s11 + $0x538] sm:$0xff] }
0x2c66   :  { %5622 = vmatprep.subr.bf16.mxu0 %v5621_v19  ;;  %5846 = vmatprep.subr.bf16.mxu1 %v5845_v52  ;;  %v2588_v52 = vrot.slane %v7707_v47, %v2587_v26 }
0x2c69   :  { %5624 = vmatpush1.bf16.msra.mxu0 %v5623_v59  ;;  %5848 = vmatpush1.bf16.msra.mxu1 %v5847_v13  ;;  %v5863_v59 = vpack.c.bf16 %v3061_v34, %v3056_v21  ;;  %v3064_v13 = vld [vmem:[%s9415_s11 + $0x550] sm:$0xff]  ;;  %v3101_v21 = vld [vmem:[%s9415_s11 + $0x678] sm:$0xff] }
0x2c6a   :  { %5626 = vmatprep.subr.bf16.mxu0 %v5625_v16  ;;  %5850 = vmatprep.subr.bf16.mxu1 %v5849_v61  ;;  %v3066_v16 = vld [vmem:[%s9415_s11 + $0x560] sm:$0xff]  ;;  %v3071_v61 = vld [vmem:[%s9415_s11 + $0x588] sm:$0xff]  ;;  %v3105_v34 = vld [vmem:[%s9415_s11 + $0x698] sm:$0xff] }
0x2c6b   :  { %v5867_v57 = vpack.c.bf16 %v3071_v61, %v3066_v16  ;;  %v3106_v61 = vld [vmem:[%s9415_s11 + $0x6a0] sm:$0xff] }
0x2c6d   :  { %5628 = vmatpush1.bf16.msra.mxu0 %v5627_v44  ;;  %5852 = vmatpush1.bf16.msra.mxu1 %v5851_v5  ;;  %v5643_v5 = vpack.c.bf16 %v3069_v41, %v3064_v13  ;;  %v3109_v13 = vld [vmem:[%s9415_s11 + $0x6b8] sm:$0xff] }
0x2c6e   :  { %5630 = vmatprep.subr.bf16.mxu0 %v5629_v6  ;;  %5854 = vmatprep.subr.bf16.mxu1 %v5853_v30  ;;  %v3074_v6 = vld [vmem:[%s9415_s11 + $0x5a0] sm:$0xff]  ;;  %v3079_v30 = vld [vmem:[%s9415_s11 + $0x5c8] sm:$0xff] }
0x2c71   :  { %5632 = vmatpush1.bf16.msra.mxu0 %v5631_v8  ;;  %5856 = vmatpush1.bf16.msra.mxu1 %v5855_v9  ;;  %v3081_v8 = vld [vmem:[%s9415_s11 + $0x5d8] sm:$0xff] }
0x2c72   :  { %5634 = vmatprep.subr.bf16.mxu0 %v5633_v12  ;;  %5858 = vmatprep.subr.bf16.mxu1 %v5857_v62  ;;  %v3085_v9 = vld [vmem:[%s9415_s11 + $0x5f8] sm:$0xff]  ;;  %v5647_v12 = vpack.c.bf16 %v3079_v30, %v3074_v6  ;;  %v5871_v14 = vpack.c.bf16 %v3081_v8, %v3076_v7  ;;  %v3119_v6 = vld [vmem:[%s9415_s11 + $0x708] sm:$0xff] }
0x2c73   :  { %v5649_v62 = vpack.c.bf16 %v3090_v60, %v3085_v9  ;;  %v3121_v7 = vld [vmem:[%s9415_s11 + $0x718] sm:$0xff]  ;;  %v3130_v9 = vld [vmem:[%s9415_s11 + $0x760] sm:$0xff]  ;;  %v3127_v60 = vld [vmem:[%s9415_s11 + $0x748] sm:$0xff] }
0x2c74   :  { %v3125_v8 = vld [vmem:[%s9415_s11 + $0x738] sm:$0xff] }
0x2c75   :  { %5636 = vmatpush1.bf16.msra.mxu0 %v5635_v18  ;;  %5860 = vmatpush1.bf16.msra.mxu1 %v5859_v35  ;;  %v5873_v18 = vpack.c.bf16 %v3092_v10, %v3087_v43  ;;  %v3095_v35 = vld [vmem:[%s9415_s11 + $0x648] sm:$0xff]  ;;  %v3132_v43 = vld [vmem:[%s9415_s11 + $0x770] sm:$0xff] }
0x2c76   :  { %5638 = vmatprep.subr.bf16.mxu0 %v5637_v23  ;;  %5862 = vmatprep.subr.bf16.mxu1 %v5861_v15  ;;  %v5651_v23 = vpack.c.bf16 %v3089_v17, %v3084_v0  ;;  %v3094_v15 = vld [vmem:[%s9415_s11 + $0x640] sm:$0xff]  ;;  %v5653_v11 = vpack.c.bf16 %v3100_v22, %v3095_v35  ;;  %v3129_v0 = vld [vmem:[%s9415_s11 + $0x758] sm:$0xff]  ;;  %v5665_v17 = vpack.c.bf16 %v3130_v9, %v3125_v8  ;;  %v3140_v35 = vld [vmem:[%s9415_s11 + $0x7b0] sm:$0xff] }
0x2c77   :  { %v3137_v22 = vld [vmem:[%s9415_s11 + $0x798] sm:$0xff]  ;;  %v3167_v8 = vld [vmem:[%s9415_s11 + $0x888] sm:$0xff]  ;;  %v3172_v9 = vld [vmem:[%s9415_s11 + $0x8b0] sm:$0xff] }
0x2cfb   :  { %v2677_v36 = vpop.f32.mrb[42].mxu0  ;;  %v7726_v58 = vpop.f32.mrb[32].mxu1 }
0x2cfc   :  { %v2679_v19 = vpop.f32.mrb[43].mxu0  ;;  %v2750_v40 = vpop.f32.mrb[33].mxu1  ;;  %v7751_v4 = vadd.f32 %v2677_v36, %v2576_v27  ;;  %v5877_v27 = vpack.c.bf16 %v3102_v45, %v3097_v48  ;;  %v3142_v48 = vld [vmem:[%s9415_s11 + $0x7c0] sm:$0xff] }
0x2cfd   :  { %v7743_v55 = vadd.f32 %v2679_v19, %v2580_v20  ;;  %v7773_v44 = vadd.f32 %v2750_v40, %v2588_v52  ;;  %v3099_v20 = vld [vmem:[%s9415_s11 + $0x668] sm:$0xff]  ;;  %v3110_v19 = vld [vmem:[%s9415_s11 + $0x6c0] sm:$0xff]  ;;  %v3112_v40 = vld [vmem:[%s9415_s11 + $0x6d0] sm:$0xff] }
0x2cfe   :  { %v3107_v52 = vld [vmem:[%s9415_s11 + $0x6a8] sm:$0xff]  ;;  %v5655_v53 = vpack.c.bf16 %v3099_v20, %v3094_v15  ;;  %v5657_v41 = vpack.c.bf16 %v3110_v19, %v3105_v34  ;;  %v5669_v20 = vpack.c.bf16 %v3140_v35, %v3135_v50  ;;  %v3150_v34 = vld [vmem:[%s9415_s11 + $0x800] sm:$0xff]  ;;  %v3177_v50 = vld [vmem:[%s9415_s11 + $0x8d8] sm:$0xff] }
0x2cff   :  { %3545 = vmatprep.mubr.f32.mxu0 %v7743_v55  ;;  %3829 = vmatprep.mubr.f32.mxu1 %v7743_v55  ;;  %v5881_v16 = vpack.c.bf16 %v3112_v40, %v3107_v52  ;;  %v3139_v15 = vld [vmem:[%s9415_s11 + $0x7a8] sm:$0xff]  ;;  %v3152_v52 = vld [vmem:[%s9415_s11 + $0x810] sm:$0xff]  ;;  %v3182_v35 = vld [vmem:[%s9415_s11 + $0x900] sm:$0xff] }
0x2d00   :  { %3546 = vmatmul.mubr.f32.vlgmr.msra.gmra.mrb[46].mxu0 %v7751_v4  ;;  %3830 = vmatmul.mubr.f32.vlgmr.msra.gmra.mrb[36].mxu1 %v7751_v4  ;;  %v3147_v19 = vld [vmem:[%s9415_s11 + $0x7e8] sm:$0xff] }
0x2d01   :  { %5640 = vmatpush1.bf16.msra.mxu0 %v5639_v42  ;;  %5864 = vmatpush1.bf16.msra.mxu1 %v5863_v59  ;;  %v5879_v42 = vpack.c.bf16 %v3101_v21, %v3096_v33  ;;  %v3104_v59 = vld [vmem:[%s9415_s11 + $0x690] sm:$0xff]  ;;  %v3141_v33 = vld [vmem:[%s9415_s11 + $0x7b8] sm:$0xff] }
0x2d02   :  { %3616 = vmatprep.mubr.f32.mxu0 %v7773_v44  ;;  %3900 = vmatprep.mubr.f32.mxu1 %v7773_v44  ;;  %v5659_v31 = vpack.c.bf16 %v3109_v13, %v3104_v59  ;;  %v3145_v21 = vld [vmem:[%s9415_s11 + $0x7d8] sm:$0xff]  ;;  %v5897_v13 = vpack.c.bf16 %v3152_v52, %v3147_v19 }
0x2d03   :  { %5642 = vmatprep.subr.bf16.mxu0 %v5641_v54  ;;  %5866 = vmatprep.subr.bf16.mxu1 %v5865_v25  ;;  %v3115_v54 = vld [vmem:[%s9415_s11 + $0x6e8] sm:$0xff]  ;;  %v3120_v25 = vld [vmem:[%s9415_s11 + $0x710] sm:$0xff]  ;;  %v5673_v59 = vpack.c.bf16 %v3150_v34, %v3145_v21 }
0x2d04   :  { %v5661_v30 = vpack.c.bf16 %v3120_v25, %v3115_v54  ;;  %v3157_v54 = vld [vmem:[%s9415_s11 + $0x838] sm:$0xff]  ;;  %v3162_v25 = vld [vmem:[%s9415_s11 + $0x860] sm:$0xff]  ;;  %v3187_v21 = vld [vmem:[%s9415_s11 + $0x928] sm:$0xff] }
0x2d05   :  { %5644 = vmatpush1.bf16.msra.mxu0 %v5643_v5  ;;  %5868 = vmatpush1.bf16.msra.mxu1 %v5867_v57  ;;  %v5883_v5 = vpack.c.bf16 %v3111_v63, %v3106_v61  ;;  %v3114_v57 = vld [vmem:[%s9415_s11 + $0x6e0] sm:$0xff]  ;;  %v3155_v61 = vld [vmem:[%s9415_s11 + $0x828] sm:$0xff]  ;;  %v3160_v63 = vld [vmem:[%s9415_s11 + $0x850] sm:$0xff] }
0x2d06   :  { %5646 = vmatprep.subr.bf16.mxu0 %v5645_v1  ;;  %5870 = vmatprep.subr.bf16.mxu1 %v5869_v38  ;;  %v5885_v1 = vpack.c.bf16 %v3122_v2, %v3117_v56  ;;  %v3116_v38 = vld [vmem:[%s9415_s11 + $0x6f0] sm:$0xff]  ;;  %v5663_v10 = vpack.c.bf16 %v3119_v6, %v3114_v57  ;;  %v5677_v57 = vpack.c.bf16 %v3160_v63, %v3155_v61  ;;  %v3197_v61 = vld [vmem:[%s9415_s11 + $0x978] sm:$0xff]  ;;  %v3202_v63 = vld [vmem:[%s9415_s11 + $0x9a0] sm:$0xff] }
0x2d07   :  { %v5901_v6 = vpack.c.bf16 %v3162_v25, %v3157_v54  ;;  %v3192_v34 = vld [vmem:[%s9415_s11 + $0x950] sm:$0xff] }
0x2d09   :  { %5648 = vmatpush1.bf16.msra.mxu0 %v5647_v12  ;;  %5872 = vmatpush1.bf16.msra.mxu1 %v5871_v14  ;;  %v5887_v12 = vpack.c.bf16 %v3121_v7, %v3116_v38  ;;  %v3124_v14 = vld [vmem:[%s9415_s11 + $0x730] sm:$0xff]  ;;  %v3165_v38 = vld [vmem:[%s9415_s11 + $0x878] sm:$0xff]  ;;  %v3170_v7 = vld [vmem:[%s9415_s11 + $0x8a0] sm:$0xff] }
0x2d0a   :  { %5650 = vmatprep.subr.bf16.mxu0 %v5649_v62  ;;  %5874 = vmatprep.subr.bf16.mxu1 %v5873_v18  ;;  %v5889_v62 = vpack.c.bf16 %v3132_v43, %v3127_v60  ;;  %v3126_v18 = vld [vmem:[%s9415_s11 + $0x740] sm:$0xff]  ;;  %v5667_v45 = vpack.c.bf16 %v3129_v0, %v3124_v14  ;;  %v5681_v14 = vpack.c.bf16 %v3170_v7, %v3165_v38  ;;  %v3207_v38 = vld [vmem:[%s9415_s11 + $0x9c8] sm:$0xff]  ;;  %v3212_v7 = vld [vmem:[%s9415_s11 + $0x9f0] sm:$0xff] }
0x2d0b   :  { %v7842_v36 = vpop.f32.mrb[44].mxu0  ;;  %v7844_v37 = vpop.f32.mrb[34].mxu1  ;;  %v5905_v0 = vpack.c.bf16 %v3172_v9, %v3167_v8 }
0x2d0c   :  { %v7855_v49 = vpop.f32.mrb[45].mxu0  ;;  %v5263_v51 = vpop.f32.mrb[35].mxu1 }
0x2d0d   :  { %5652 = vmatpush1.bf16.msra.mxu0 %v5651_v23  ;;  %5876 = vmatpush1.bf16.msra.mxu1 %v5875_v24  ;;  %v5891_v23 = vpack.c.bf16 %v3131_v39, %v3126_v18  ;;  %v3134_v24 = vld [vmem:[%s9415_s11 + $0x780] sm:$0xff]  ;;  %v3175_v18 = vld [vmem:[%s9415_s11 + $0x8c8] sm:$0xff]  ;;  %v3180_v39 = vld [vmem:[%s9415_s11 + $0x8f0] sm:$0xff] }
0x2d0e   :  { %5654 = vmatprep.subr.bf16.mxu0 %v5653_v11  ;;  %5878 = vmatprep.subr.bf16.mxu1 %v5877_v27  ;;  %v5893_v11 = vpack.c.bf16 %v3142_v48, %v3137_v22  ;;  %v3136_v27 = vld [vmem:[%s9415_s11 + $0x790] sm:$0xff]  ;;  %v5671_v40 = vpack.c.bf16 %v3139_v15, %v3134_v24  ;;  %v5685_v24 = vpack.c.bf16 %v3180_v39, %v3175_v18  ;;  %v2595_v18 = vsub.s32 5, %v6678_v28 }
0x2d0f   :  { %v5895_v51 = vpack.c.bf16 %v3141_v33, %v3136_v27  ;;  %v5909_v15 = vpack.c.bf16 %v3182_v35, %v3177_v50  ;;  %v3185_v27 = vld [vmem:[%s9415_s11 + $0x918] sm:$0xff]  ;;  %v3190_v33 = vld [vmem:[%s9415_s11 + $0x940] sm:$0xff]  ;;  %v3220_v39 = vld [vmem:[%s9415_s11 + $0xa30] sm:$0xff] }
0x2d10   :  { %v3217_v50 = vld [vmem:[%s9415_s11 + $0xa18] sm:$0xff]  ;;  %v3222_v35 = vld [vmem:[%s9415_s11 + $0xa40] sm:$0xff] }
0x2d11   :  { %5656 = vmatpush1.bf16.msra.mxu0 %v5655_v53  ;;  %5880 = vmatpush1.bf16.msra.mxu1 %v5879_v42  ;;  %v3144_v53 = vld [vmem:[%s9415_s11 + $0x7d0] sm:$0xff]  ;;  %v3149_v42 = vld [vmem:[%s9415_s11 + $0x7f8] sm:$0xff] }
0x2d12   :  { %5658 = vmatprep.subr.bf16.mxu0 %v5657_v41  ;;  %5882 = vmatprep.subr.bf16.mxu1 %v5881_v16  ;;  %v3146_v41 = vld [vmem:[%s9415_s11 + $0x7e0] sm:$0xff]  ;;  %v3151_v16 = vld [vmem:[%s9415_s11 + $0x808] sm:$0xff]  ;;  %v5675_v56 = vpack.c.bf16 %v3149_v42, %v3144_v53  ;;  %v5689_v53 = vpack.c.bf16 %v3190_v33, %v3185_v27  ;;  %v5913_v42 = vpack.c.bf16 %v3192_v34, %v3187_v21  ;;  %v3216_v27 = vld [vmem:[%s9415_s11 + $0xa10] sm:$0xff] }
0x2d13   :  { %v5899_v2 = vpack.c.bf16 %v3151_v16, %v3146_v41  ;;  %v3195_v41 = vld [vmem:[%s9415_s11 + $0x968] sm:$0xff]  ;;  %v3200_v16 = vld [vmem:[%s9415_s11 + $0x990] sm:$0xff]  ;;  %v3221_v33 = vld [vmem:[%s9415_s11 + $0xa38] sm:$0xff] }
0x2d14   :  { %v3225_v21 = vld [vmem:[%s9415_s11 + $0xa58] sm:$0xff]  ;;  %v3230_v34 = vld [vmem:[%s9415_s11 + $0xa80] sm:$0xff] }
0x2d15   :  { %5660 = vmatpush1.bf16.msra.mxu0 %v5659_v31  ;;  %5884 = vmatpush1.bf16.msra.mxu1 %v5883_v5  ;;  %v3154_v31 = vld [vmem:[%s9415_s11 + $0x820] sm:$0xff]  ;;  %v3159_v5 = vld [vmem:[%s9415_s11 + $0x848] sm:$0xff] }
0x2d16   :  { %5662 = vmatprep.subr.bf16.mxu0 %v5661_v30  ;;  %5886 = vmatprep.subr.bf16.mxu1 %v5885_v1  ;;  %v3156_v30 = vld [vmem:[%s9415_s11 + $0x830] sm:$0xff]  ;;  %v3161_v1 = vld [vmem:[%s9415_s11 + $0x858] sm:$0xff]  ;;  %v5679_v60 = vpack.c.bf16 %v3159_v5, %v3154_v31  ;;  %v5693_v31 = vpack.c.bf16 %v3200_v16, %v3195_v41  ;;  %v5917_v5 = vpack.c.bf16 %v3202_v63, %v3197_v61  ;;  %v3231_v16 = vld [vmem:[%s9415_s11 + $0xa88] sm:$0xff] }
0x2d17   :  { %v5903_v43 = vpack.c.bf16 %v3161_v1, %v3156_v30  ;;  %v3205_v30 = vld [vmem:[%s9415_s11 + $0x9b8] sm:$0xff]  ;;  %v3210_v1 = vld [vmem:[%s9415_s11 + $0x9e0] sm:$0xff]  ;;  %v3235_v61 = vld [vmem:[%s9415_s11 + $0xaa8] sm:$0xff] }
0x2d18   :  { %v3240_v63 = vld [vmem:[%s9415_s11 + $0xad0] sm:$0xff] }
0x2d19   :  { %5664 = vmatpush1.bf16.msra.mxu0 %v5663_v10  ;;  %5888 = vmatpush1.bf16.msra.mxu1 %v5887_v12  ;;  %v3164_v10 = vld [vmem:[%s9415_s11 + $0x870] sm:$0xff]  ;;  %v3169_v12 = vld [vmem:[%s9415_s11 + $0x898] sm:$0xff] }
0x2d1a   :  { %5666 = vmatprep.subr.bf16.mxu0 %v5665_v17  ;;  %5890 = vmatprep.subr.bf16.mxu1 %v5889_v62  ;;  %v3166_v17 = vld [vmem:[%s9415_s11 + $0x880] sm:$0xff]  ;;  %v3171_v62 = vld [vmem:[%s9415_s11 + $0x8a8] sm:$0xff]  ;;  %v5683_v22 = vpack.c.bf16 %v3169_v12, %v3164_v10  ;;  %v2583_v10 = vsub.s32 2, %v6678_v28  ;;  %v5697_v12 = vpack.c.bf16 %v3210_v1, %v3205_v30  ;;  %v3241_v30 = vld [vmem:[%s9415_s11 + $0xad8] sm:$0xff] }
0x2d1b   :  { %v5907_v48 = vpack.c.bf16 %v3171_v62, %v3166_v17  ;;  %v3211_v17 = vld [vmem:[%s9415_s11 + $0x9e8] sm:$0xff]  ;;  %v3245_v1 = vld [vmem:[%s9415_s11 + $0xaf8] sm:$0xff] }
0x2d1c   :  { %v3215_v62 = vld [vmem:[%s9415_s11 + $0xa08] sm:$0xff] }
0x2d1d   :  { %5668 = vmatpush1.bf16.msra.mxu0 %v5667_v45  ;;  %5892 = vmatpush1.bf16.msra.mxu1 %v5891_v23  ;;  %v3174_v45 = vld [vmem:[%s9415_s11 + $0x8c0] sm:$0xff]  ;;  %v3179_v23 = vld [vmem:[%s9415_s11 + $0x8e8] sm:$0xff] }
0x2d1e   :  { %5670 = vmatprep.subr.bf16.mxu0 %v5669_v20  ;;  %5894 = vmatprep.subr.bf16.mxu1 %v5893_v11  ;;  %v3176_v20 = vld [vmem:[%s9415_s11 + $0x8d0] sm:$0xff]  ;;  %v3181_v11 = vld [vmem:[%s9415_s11 + $0x8f8] sm:$0xff]  ;;  %v5687_v19 = vpack.c.bf16 %v3179_v23, %v3174_v45  ;;  %v2584_v45 = vrot.slane %v7707_v47, %v2583_v10  ;;  %v5701_v23 = vpack.c.bf16 %v3220_v39, %v3215_v62  ;;  %v3251_v62 = vld [vmem:[%s9415_s11 + $0xb28] sm:$0xff] }
0x2d1f   :  { %v5911_v52 = vpack.c.bf16 %v3181_v11, %v3176_v20  ;;  %v3219_v20 = vld [vmem:[%s9415_s11 + $0xa28] sm:$0xff]  ;;  %v2596_v11 = vrot.slane %v7707_v47, %v2595_v18  ;;  %v3260_v39 = vld [vmem:[%s9415_s11 + $0xb70] sm:$0xff] }
0x2d20   :  { %v3227_v47 = vld [vmem:[%s9415_s11 + $0xa68] sm:$0xff] }
0x2d21   :  { %5672 = vmatpush1.bf16.msra.mxu0 %v5671_v40  ;;  %5896 = vmatpush1.bf16.msra.mxu1 %v5895_v51  ;;  %v3184_v40 = vld [vmem:[%s9415_s11 + $0x910] sm:$0xff]  ;;  %v3189_v51 = vld [vmem:[%s9415_s11 + $0x938] sm:$0xff]  ;;  %v3255_v18 = vld [vmem:[%s9415_s11 + $0xb48] sm:$0xff] }
0x2d22   :  { %5674 = vmatprep.subr.bf16.mxu0 %v5673_v59  ;;  %5898 = vmatprep.subr.bf16.mxu1 %v5897_v13  ;;  %v3186_v59 = vld [vmem:[%s9415_s11 + $0x920] sm:$0xff]  ;;  %v3191_v13 = vld [vmem:[%s9415_s11 + $0x948] sm:$0xff]  ;;  %v5691_v54 = vpack.c.bf16 %v3189_v51, %v3184_v40  ;;  %v8152_v40 = vadd.f32 %v7726_v58, %v2584_v45  ;;  %v5927_v51 = vpack.c.bf16 %v3221_v33, %v3216_v27  ;;  %v3265_v27 = vld [vmem:[%s9415_s11 + $0xb98] sm:$0xff] }
0x2d23   :  { %v5915_v25 = vpack.c.bf16 %v3191_v13, %v3186_v59  ;;  %v3226_v59 = vld [vmem:[%s9415_s11 + $0xa60] sm:$0xff]  ;;  %v8164_v13 = vadd.f32 %v7855_v49, %v2596_v11  ;;  %v5705_v58 = vpack.c.bf16 %v3230_v34, %v3225_v21  ;;  %v3237_v49 = vld [vmem:[%s9415_s11 + $0xab8] sm:$0xff]  ;;  %v5717_v45 = vpack.c.bf16 %v3260_v39, %v3255_v18  ;;  %v3267_v21 = vld [vmem:[%s9415_s11 + $0xba8] sm:$0xff] }
0x2d24   :  { %v3261_v11 = vld [vmem:[%s9415_s11 + $0xb78] sm:$0xff]  ;;  %v3270_v33 = vld [vmem:[%s9415_s11 + $0xbc0] sm:$0xff]  ;;  %v3272_v34 = vld [vmem:[%s9415_s11 + $0xbd0] sm:$0xff] }
0x2d25   :  { %5676 = vmatpush1.bf16.msra.mxu0 %v5675_v56  ;;  %5900 = vmatpush1.bf16.msra.mxu1 %v5899_v2  ;;  %v3194_v56 = vld [vmem:[%s9415_s11 + $0x960] sm:$0xff]  ;;  %v3199_v2 = vld [vmem:[%s9415_s11 + $0x988] sm:$0xff]  ;;  %v3297_v18 = vld [vmem:[%s9415_s11 + $0xc98] sm:$0xff] }
0x2d26   :  { %5678 = vmatprep.subr.bf16.mxu0 %v5677_v57  ;;  %5902 = vmatprep.subr.bf16.mxu1 %v5901_v6  ;;  %v3196_v57 = vld [vmem:[%s9415_s11 + $0x970] sm:$0xff]  ;;  %v3201_v6 = vld [vmem:[%s9415_s11 + $0x998] sm:$0xff]  ;;  %v5695_v8 = vpack.c.bf16 %v3199_v2, %v3194_v56  ;;  %v5931_v56 = vpack.c.bf16 %v3231_v16, %v3226_v59  ;;  %v5709_v2 = vpack.c.bf16 %v3240_v63, %v3235_v61  ;;  %v3282_v63 = vld [vmem:[%s9415_s11 + $0xc20] sm:$0xff] }
0x2d27   :  { %v5919_v9 = vpack.c.bf16 %v3201_v6, %v3196_v57  ;;  %v3236_v57 = vld [vmem:[%s9415_s11 + $0xab0] sm:$0xff]  ;;  %v5945_v59 = vpack.c.bf16 %v3272_v34, %v3267_v21  ;;  %v3277_v61 = vld [vmem:[%s9415_s11 + $0xbf8] sm:$0xff]  ;;  %v3302_v39 = vld [vmem:[%s9415_s11 + $0xcc0] sm:$0xff] }
0x2d28   :  { %v3280_v16 = vld [vmem:[%s9415_s11 + $0xc10] sm:$0xff] }
0x2d29   :  { %5680 = vmatpush1.bf16.msra.mxu0 %v5679_v60  ;;  %5904 = vmatpush1.bf16.msra.mxu1 %v5903_v43  ;;  %v3204_v60 = vld [vmem:[%s9415_s11 + $0x9b0] sm:$0xff]  ;;  %v3209_v43 = vld [vmem:[%s9415_s11 + $0x9d8] sm:$0xff] }
0x2d2a   :  { %5682 = vmatprep.subr.bf16.mxu0 %v5681_v14  ;;  %5906 = vmatprep.subr.bf16.mxu1 %v5905_v0  ;;  %v5921_v14 = vpack.c.bf16 %v3212_v7, %v3207_v38  ;;  %v3206_v0 = vld [vmem:[%s9415_s11 + $0x9c0] sm:$0xff]  ;;  %v3247_v7 = vld [vmem:[%s9415_s11 + $0xb08] sm:$0xff] }
0x2d2b   :  { %v3250_v38 = vld [vmem:[%s9415_s11 + $0xb20] sm:$0xff] }
0x2d2d   :  { %5684 = vmatpush1.bf16.msra.mxu0 %v5683_v22  ;;  %5908 = vmatpush1.bf16.msra.mxu1 %v5907_v48  ;;  %v5699_v22 = vpack.c.bf16 %v3209_v43, %v3204_v60  ;;  %v5923_v48 = vpack.c.bf16 %v3211_v17, %v3206_v0  ;;  %v5935_v60 = vpack.c.bf16 %v3241_v30, %v3236_v57  ;;  %v3246_v0 = vld [vmem:[%s9415_s11 + $0xb00] sm:$0xff]  ;;  %v3281_v57 = vld [vmem:[%s9415_s11 + $0xc18] sm:$0xff] }
0x2d2e   :  { %5686 = vmatprep.subr.bf16.mxu0 %v5685_v24  ;;  %5910 = vmatprep.subr.bf16.mxu1 %v5909_v15  ;;  %v5925_v24 = vpack.c.bf16 %v3222_v35, %v3217_v50  ;;  %v3214_v15 = vld [vmem:[%s9415_s11 + $0xa00] sm:$0xff]  ;;  %v5713_v43 = vpack.c.bf16 %v3250_v38, %v3245_v1  ;;  %v3257_v50 = vld [vmem:[%s9415_s11 + $0xb58] sm:$0xff]  ;;  %v3287_v1 = vld [vmem:[%s9415_s11 + $0xc48] sm:$0xff] }
0x2d2f   :  { %v3262_v35 = vld [vmem:[%s9415_s11 + $0xb80] sm:$0xff]  ;;  %v3292_v38 = vld [vmem:[%s9415_s11 + $0xc70] sm:$0xff] }
0x2d30   :  { %v3290_v30 = vld [vmem:[%s9415_s11 + $0xc60] sm:$0xff] }
0x2d31   :  { %5688 = vmatpush1.bf16.msra.mxu0 %v5687_v19  ;;  %5912 = vmatpush1.bf16.msra.mxu1 %v5911_v52  ;;  %v3232_v19 = vld [vmem:[%s9415_s11 + $0xa90] sm:$0xff]  ;;  %v5703_v52 = vpack.c.bf16 %v3219_v20, %v3214_v15  ;;  %v5941_v20 = vpack.c.bf16 %v3262_v35, %v3257_v50 }
0x2d32   :  { %5690 = vmatprep.subr.bf16.mxu0 %v5689_v53  ;;  %5914 = vmatprep.subr.bf16.mxu1 %v5913_v42  ;;  %v3224_v53 = vld [vmem:[%s9415_s11 + $0xa50] sm:$0xff]  ;;  %v3229_v42 = vld [vmem:[%s9415_s11 + $0xa78] sm:$0xff]  ;;  %v5929_v41 = vpack.c.bf16 %v3232_v19, %v3227_v47 }
0x2d33   :  { %v3256_v15 = vld [vmem:[%s9415_s11 + $0xb50] sm:$0xff] }
0x2d34   :  { %v5943_v19 = vpack.c.bf16 %v3261_v11, %v3256_v15  ;;  %v3301_v15 = vld [vmem:[%s9415_s11 + $0xcb8] sm:$0xff]  ;;  %v3310_v11 = vld [vmem:[%s9415_s11 + $0xd00] sm:$0xff] }
0x2d35   :  { %5692 = vmatpush1.bf16.msra.mxu0 %v5691_v54  ;;  %5916 = vmatpush1.bf16.msra.mxu1 %v5915_v25  ;;  %v3242_v54 = vld [vmem:[%s9415_s11 + $0xae0] sm:$0xff]  ;;  %v5707_v25 = vpack.c.bf16 %v3229_v42, %v3224_v53  ;;  %v3269_v53 = vld [vmem:[%s9415_s11 + $0xbb8] sm:$0xff] }
0x2d36   :  { %5694 = vmatprep.subr.bf16.mxu0 %v5693_v31  ;;  %5918 = vmatprep.subr.bf16.mxu1 %v5917_v5  ;;  %v3234_v31 = vld [vmem:[%s9415_s11 + $0xaa0] sm:$0xff]  ;;  %v3239_v5 = vld [vmem:[%s9415_s11 + $0xac8] sm:$0xff]  ;;  %v5933_v6 = vpack.c.bf16 %v3242_v54, %v3237_v49 }
0x2d37   :  { %v3266_v42 = vld [vmem:[%s9415_s11 + $0xba0] sm:$0xff] }
0x2d39   :  { %5696 = vmatpush1.bf16.msra.mxu0 %v5695_v8  ;;  %5920 = vmatpush1.bf16.msra.mxu1 %v5919_v9  ;;  %v3252_v8 = vld [vmem:[%s9415_s11 + $0xb30] sm:$0xff]  ;;  %v5711_v9 = vpack.c.bf16 %v3239_v5, %v3234_v31  ;;  %v5949_v5 = vpack.c.bf16 %v3282_v63, %v3277_v61 }
0x2d3a   :  { %5698 = vmatprep.subr.bf16.mxu0 %v5697_v12  ;;  %5922 = vmatprep.subr.bf16.mxu1 %v5921_v14  ;;  %v3244_v12 = vld [vmem:[%s9415_s11 + $0xaf0] sm:$0xff]  ;;  %v3249_v14 = vld [vmem:[%s9415_s11 + $0xb18] sm:$0xff]  ;;  %v5937_v17 = vpack.c.bf16 %v3252_v8, %v3247_v7 }
0x2d3b   :  { %v3276_v31 = vld [vmem:[%s9415_s11 + $0xbf0] sm:$0xff] }
0x2d3c   :  { %v5951_v8 = vpack.c.bf16 %v3281_v57, %v3276_v31  ;;  %v3321_v31 = vld [vmem:[%s9415_s11 + $0xd58] sm:$0xff]  ;;  %v3330_v57 = vld [vmem:[%s9415_s11 + $0xda0] sm:$0xff] }
0x2d3d   :  { %5700 = vmatpush1.bf16.msra.mxu0 %v5699_v22  ;;  %5924 = vmatpush1.bf16.msra.mxu1 %v5923_v48  ;;  %v5715_v22 = vpack.c.bf16 %v3249_v14, %v3244_v12  ;;  %v5939_v48 = vpack.c.bf16 %v3251_v62, %v3246_v0  ;;  %v3286_v12 = vld [vmem:[%s9415_s11 + $0xc40] sm:$0xff]  ;;  %v5953_v14 = vpack.c.bf16 %v3292_v38, %v3287_v1  ;;  %v3291_v0 = vld [vmem:[%s9415_s11 + $0xc68] sm:$0xff]  ;;  %v3300_v62 = vld [vmem:[%s9415_s11 + $0xcb0] sm:$0xff] }
0x2d3e   :  { %5702 = vmatprep.subr.bf16.mxu0 %v5701_v23  ;;  %5926 = vmatprep.subr.bf16.mxu1 %v5925_v24  ;;  %v3254_v23 = vld [vmem:[%s9415_s11 + $0xb40] sm:$0xff]  ;;  %v3259_v24 = vld [vmem:[%s9415_s11 + $0xb68] sm:$0xff]  ;;  %v5955_v35 = vpack.c.bf16 %v3291_v0, %v3286_v12  ;;  %v3340_v0 = vld [vmem:[%s9415_s11 + $0xdf0] sm:$0xff] }
0x2d3f   :  { %v5719_v47 = vpack.c.bf16 %v3259_v24, %v3254_v23  ;;  %v3296_v23 = vld [vmem:[%s9415_s11 + $0xc90] sm:$0xff]  ;;  %v5957_v24 = vpack.c.bf16 %v3302_v39, %v3297_v18  ;;  %v3331_v12 = vld [vmem:[%s9415_s11 + $0xda8] sm:$0xff] }
0x2d40   :  { %3617 = vmatmul.mubr.f32.vlgmr.msra.gmra.mrb[46].mxu0 %v8152_v40  ;;  %3901 = vmatmul.mubr.f32.vlgmr.msra.gmra.mrb[36].mxu1 %v8152_v40  ;;  %v5959_v34 = vpack.c.bf16 %v3301_v15, %v3296_v23  ;;  %v3341_v23 = vld [vmem:[%s9415_s11 + $0xdf8] sm:$0xff]  ;;  %v3350_v15 = vld [vmem:[%s9415_s11 + $0xe40] sm:$0xff] }
0x2d41   :  { %5704 = vmatpush1.bf16.msra.mxu0 %v5703_v52  ;;  %3687 = vmatprep.mubr.f32.mxu0 %v8164_v13  ;;  %v5721_v52 = vpack.c.bf16 %v3270_v33, %v3265_v27  ;;  %v3307_v27 = vld [vmem:[%s9415_s11 + $0xce8] sm:$0xff]  ;;  %v3312_v33 = vld [vmem:[%s9415_s11 + $0xd10] sm:$0xff] }
0x2d42   :  { %5928 = vmatpush1.bf16.msra.mxu1 %v5927_v51  ;;  %3971 = vmatprep.mubr.f32.mxu1 %v8164_v13  ;;  %v3264_v51 = vld [vmem:[%s9415_s11 + $0xb90] sm:$0xff] }
0x2d43   :  { %5706 = vmatprep.subr.bf16.mxu0 %v5705_v58  ;;  %5930 = vmatprep.subr.bf16.mxu1 %v5929_v41  ;;  %v3271_v58 = vld [vmem:[%s9415_s11 + $0xbc8] sm:$0xff]  ;;  %v5723_v49 = vpack.c.bf16 %v3269_v53, %v3264_v51  ;;  %v3306_v51 = vld [vmem:[%s9415_s11 + $0xce0] sm:$0xff]  ;;  %v5961_v53 = vpack.c.bf16 %v3312_v33, %v3307_v27 }
0x2d44   :  { %v3275_v41 = vld [vmem:[%s9415_s11 + $0xbe8] sm:$0xff]  ;;  %v5947_v54 = vpack.c.bf16 %v3271_v58, %v3266_v42  ;;  %v3320_v58 = vld [vmem:[%s9415_s11 + $0xd50] sm:$0xff] }
0x2d45   :  { %5708 = vmatpush1.bf16.msra.mxu0 %v5707_v25  ;;  %v5725_v25 = vpack.c.bf16 %v3280_v16, %v3275_v41  ;;  %v3311_v42 = vld [vmem:[%s9415_s11 + $0xd08] sm:$0xff]  ;;  %v3317_v41 = vld [vmem:[%s9415_s11 + $0xd38] sm:$0xff]  ;;  %v3322_v16 = vld [vmem:[%s9415_s11 + $0xd60] sm:$0xff] }
0x2d46   :  { %5932 = vmatpush1.bf16.msra.mxu1 %v5931_v56  ;;  %5710 = vmatprep.subr.bf16.mxu0 %v5709_v2  ;;  %v3274_v56 = vld [vmem:[%s9415_s11 + $0xbe0] sm:$0xff]  ;;  %v3279_v2 = vld [vmem:[%s9415_s11 + $0xc08] sm:$0xff]  ;;  %v5963_v63 = vpack.c.bf16 %v3311_v42, %v3306_v51  ;;  %v3360_v42 = vld [vmem:[%s9415_s11 + $0xe90] sm:$0xff] }
0x2d47   :  { %5934 = vmatprep.subr.bf16.mxu1 %v5933_v6  ;;  %v3285_v6 = vld [vmem:[%s9415_s11 + $0xc38] sm:$0xff]  ;;  %v5727_v7 = vpack.c.bf16 %v3279_v2, %v3274_v56  ;;  %v3316_v56 = vld [vmem:[%s9415_s11 + $0xd30] sm:$0xff]  ;;  %v5965_v2 = vpack.c.bf16 %v3322_v16, %v3317_v41  ;;  %v3351_v51 = vld [vmem:[%s9415_s11 + $0xe48] sm:$0xff] }
0x2d48   :  { %v5967_v38 = vpack.c.bf16 %v3321_v31, %v3316_v56  ;;  %v3361_v56 = vld [vmem:[%s9415_s11 + $0xe98] sm:$0xff]  ;;  %v3370_v31 = vld [vmem:[%s9415_s11 + $0xee0] sm:$0xff] }
0x2d49   :  { %5712 = vmatpush1.bf16.msra.mxu0 %v5711_v9  ;;  %v5729_v9 = vpack.c.bf16 %v3290_v30, %v3285_v6  ;;  %v3327_v6 = vld [vmem:[%s9415_s11 + $0xd88] sm:$0xff]  ;;  %v3332_v30 = vld [vmem:[%s9415_s11 + $0xdb0] sm:$0xff] }
0x2d4a   :  { %5936 = vmatpush1.bf16.msra.mxu1 %v5935_v60  ;;  %5714 = vmatprep.subr.bf16.mxu0 %v5713_v43  ;;  %v3284_v60 = vld [vmem:[%s9415_s11 + $0xc30] sm:$0xff]  ;;  %v3289_v43 = vld [vmem:[%s9415_s11 + $0xc58] sm:$0xff] }
0x2d4b   :  { %5938 = vmatprep.subr.bf16.mxu1 %v5937_v17  ;;  %v3295_v17 = vld [vmem:[%s9415_s11 + $0xc88] sm:$0xff]  ;;  %v5731_v50 = vpack.c.bf16 %v3289_v43, %v3284_v60  ;;  %v3326_v60 = vld [vmem:[%s9415_s11 + $0xd80] sm:$0xff]  ;;  %v5969_v43 = vpack.c.bf16 %v3332_v30, %v3327_v6  ;;  %v2591_v30 = vsub.s32 4, %v6678_v28 }
0x2d4c   :  { %v5971_v39 = vpack.c.bf16 %v3331_v12, %v3326_v60  ;;  %v3375_v12 = vld [vmem:[%s9415_s11 + $0xf08] sm:$0xff] }
0x2d4d   :  { %5716 = vmatpush1.bf16.msra.mxu0 %v5715_v22  ;;  %v5733_v22 = vpack.c.bf16 %v3300_v62, %v3295_v17  ;;  %v3337_v17 = vld [vmem:[%s9415_s11 + $0xdd8] sm:$0xff]  ;;  %v3342_v62 = vld [vmem:[%s9415_s11 + $0xe00] sm:$0xff] }
0x2d4e   :  { %5940 = vmatpush1.bf16.msra.mxu1 %v5939_v48  ;;  %5718 = vmatprep.subr.bf16.mxu0 %v5717_v45  ;;  %v3294_v48 = vld [vmem:[%s9415_s11 + $0xc80] sm:$0xff]  ;;  %v3299_v45 = vld [vmem:[%s9415_s11 + $0xca8] sm:$0xff] }
0x2d4f   :  { %5942 = vmatprep.subr.bf16.mxu1 %v5941_v20  ;;  %v3305_v20 = vld [vmem:[%s9415_s11 + $0xcd8] sm:$0xff]  ;;  %v5735_v21 = vpack.c.bf16 %v3299_v45, %v3294_v48  ;;  %v3336_v48 = vld [vmem:[%s9415_s11 + $0xdd0] sm:$0xff]  ;;  %v5973_v45 = vpack.c.bf16 %v3342_v62, %v3337_v17  ;;  %v3382_v17 = vld [vmem:[%s9415_s11 + $0xf40] sm:$0xff] }
0x2d50   :  { %v5975_v33 = vpack.c.bf16 %v3341_v23, %v3336_v48  ;;  %v3379_v48 = vld [vmem:[%s9415_s11 + $0xf28] sm:$0xff] }
0x2d51   :  { %5720 = vmatpush1.bf16.msra.mxu0 %v5719_v47  ;;  %v5737_v47 = vpack.c.bf16 %v3310_v11, %v3305_v20  ;;  %v3347_v20 = vld [vmem:[%s9415_s11 + $0xe28] sm:$0xff]  ;;  %v3352_v11 = vld [vmem:[%s9415_s11 + $0xe50] sm:$0xff] }
0x2d52   :  { %5944 = vmatpush1.bf16.msra.mxu1 %v5943_v19  ;;  %5722 = vmatprep.subr.bf16.mxu0 %v5721_v52  ;;  %v3304_v19 = vld [vmem:[%s9415_s11 + $0xcd0] sm:$0xff]  ;;  %v3309_v52 = vld [vmem:[%s9415_s11 + $0xcf8] sm:$0xff] }
0x2d53   :  { %5946 = vmatprep.subr.bf16.mxu1 %v5945_v59  ;;  %v3315_v59 = vld [vmem:[%s9415_s11 + $0xd28] sm:$0xff]  ;;  %v5739_v61 = vpack.c.bf16 %v3309_v52, %v3304_v19  ;;  %v3346_v19 = vld [vmem:[%s9415_s11 + $0xe20] sm:$0xff]  ;;  %v5977_v52 = vpack.c.bf16 %v3352_v11, %v3347_v20 }
0x2d54   :  { %v5979_v16 = vpack.c.bf16 %v3351_v51, %v3346_v19  ;;  %v3390_v20 = vld [vmem:[%s9415_s11 + $0xf80] sm:$0xff]  ;;  %v3387_v11 = vld [vmem:[%s9415_s11 + $0xf68] sm:$0xff]  ;;  %v3384_v19 = vld [vmem:[%s9415_s11 + $0xf50] sm:$0xff] }
0x2d55   :  { %5724 = vmatpush1.bf16.msra.mxu0 %v5723_v49  ;;  %v5741_v49 = vpack.c.bf16 %v3320_v58, %v3315_v59  ;;  %v3357_v59 = vld [vmem:[%s9415_s11 + $0xe78] sm:$0xff]  ;;  %v3362_v58 = vld [vmem:[%s9415_s11 + $0xea0] sm:$0xff] }
0x2d56   :  { %5948 = vmatpush1.bf16.msra.mxu1 %v5947_v54  ;;  %5726 = vmatprep.subr.bf16.mxu0 %v5725_v25  ;;  %v3314_v54 = vld [vmem:[%s9415_s11 + $0xd20] sm:$0xff]  ;;  %v3319_v25 = vld [vmem:[%s9415_s11 + $0xd48] sm:$0xff] }
0x2d57   :  { %5950 = vmatprep.subr.bf16.mxu1 %v5949_v5  ;;  %v3325_v5 = vld [vmem:[%s9415_s11 + $0xd78] sm:$0xff]  ;;  %v5743_v1 = vpack.c.bf16 %v3319_v25, %v3314_v54  ;;  %v3356_v54 = vld [vmem:[%s9415_s11 + $0xe70] sm:$0xff]  ;;  %v5981_v25 = vpack.c.bf16 %v3362_v58, %v3357_v59  ;;  %v3386_v51 = vld [vmem:[%s9415_s11 + $0xf60] sm:$0xff] }
0x2d58   :  { %v3400_v59 = vld [vmem:[%s9415_s11 + $0xfd0] sm:$0xff]  ;;  %v3397_v58 = vld [vmem:[%s9415_s11 + $0xfb8] sm:$0xff] }
0x2d59   :  { %5728 = vmatpush1.bf16.msra.mxu0 %v5727_v7  ;;  %v5745_v7 = vpack.c.bf16 %v3330_v57, %v3325_v5  ;;  %v3367_v5 = vld [vmem:[%s9415_s11 + $0xec8] sm:$0xff]  ;;  %v3372_v57 = vld [vmem:[%s9415_s11 + $0xef0] sm:$0xff] }
0x2d5a   :  { %5952 = vmatpush1.bf16.msra.mxu1 %v5951_v8  ;;  %5730 = vmatprep.subr.bf16.mxu0 %v5729_v9  ;;  %v3324_v8 = vld [vmem:[%s9415_s11 + $0xd70] sm:$0xff]  ;;  %v3329_v9 = vld [vmem:[%s9415_s11 + $0xd98] sm:$0xff]  ;;  %v5985_v60 = vpack.c.bf16 %v3372_v57, %v3367_v5  ;;  %v3410_v5 = vld [vmem:[%s9415_s11 + $0x1020] sm:$0xff] }
0x2d5b   :  { %5954 = vmatprep.subr.bf16.mxu1 %v5953_v14  ;;  %v3335_v14 = vld [vmem:[%s9415_s11 + $0xdc8] sm:$0xff]  ;;  %v5747_v18 = vpack.c.bf16 %v3329_v9, %v3324_v8  ;;  %v3369_v8 = vld [vmem:[%s9415_s11 + $0xed8] sm:$0xff]  ;;  %v3366_v9 = vld [vmem:[%s9415_s11 + $0xec0] sm:$0xff] }
0x2d5c   :  { %v3407_v57 = vld [vmem:[%s9415_s11 + $0x1008] sm:$0xff] }
0x2d5d   :  { %5732 = vmatpush1.bf16.msra.mxu0 %v5731_v50  ;;  %v5749_v50 = vpack.c.bf16 %v3340_v0, %v3335_v14  ;;  %v3380_v14 = vld [vmem:[%s9415_s11 + $0xf30] sm:$0xff]  ;;  %v3377_v0 = vld [vmem:[%s9415_s11 + $0xf18] sm:$0xff] }
0x2d5e   :  { %5956 = vmatpush1.bf16.msra.mxu1 %v5955_v35  ;;  %5734 = vmatprep.subr.bf16.mxu0 %v5733_v22  ;;  %v3334_v35 = vld [vmem:[%s9415_s11 + $0xdc0] sm:$0xff]  ;;  %v3339_v22 = vld [vmem:[%s9415_s11 + $0xde8] sm:$0xff]  ;;  %v5989_v23 = vpack.c.bf16 %v3382_v17, %v3377_v0  ;;  %v3420_v0 = vld [vmem:[%s9415_s11 + $0x1070] sm:$0xff] }
0x2d5f   :  { %5958 = vmatprep.subr.bf16.mxu1 %v5957_v24  ;;  %v3345_v24 = vld [vmem:[%s9415_s11 + $0xe18] sm:$0xff]  ;;  %v5751_v27 = vpack.c.bf16 %v3339_v22, %v3334_v35  ;;  %v5765_v35 = vpack.c.bf16 %v3380_v14, %v3375_v12  ;;  %v3374_v22 = vld [vmem:[%s9415_s11 + $0xf00] sm:$0xff]  ;;  %v3411_v12 = vld [vmem:[%s9415_s11 + $0x1028] sm:$0xff] }
0x2d60   :  { %v3415_v14 = vld [vmem:[%s9415_s11 + $0x1048] sm:$0xff]  ;;  %v3417_v17 = vld [vmem:[%s9415_s11 + $0x1058] sm:$0xff] }
0x2d61   :  { %5736 = vmatpush1.bf16.msra.mxu0 %v5735_v21  ;;  %v5753_v21 = vpack.c.bf16 %v3350_v15, %v3345_v24  ;;  %v3381_v24 = vld [vmem:[%s9415_s11 + $0xf38] sm:$0xff] }
0x2d62   :  { %5960 = vmatpush1.bf16.msra.mxu1 %v5959_v34  ;;  %5738 = vmatprep.subr.bf16.mxu0 %v5737_v47  ;;  %v3344_v34 = vld [vmem:[%s9415_s11 + $0xe10] sm:$0xff]  ;;  %v3349_v47 = vld [vmem:[%s9415_s11 + $0xe38] sm:$0xff] }
0x2d63   :  { %5962 = vmatprep.subr.bf16.mxu1 %v5961_v53  ;;  %v3355_v53 = vld [vmem:[%s9415_s11 + $0xe68] sm:$0xff]  ;;  %v5755_v41 = vpack.c.bf16 %v3349_v47, %v3344_v34  ;;  %v3385_v15 = vld [vmem:[%s9415_s11 + $0xf58] sm:$0xff] }
0x2d64   :  { %v5769_v47 = vpack.c.bf16 %v3390_v20, %v3385_v15  ;;  %v3425_v15 = vld [vmem:[%s9415_s11 + $0x1098] sm:$0xff]  ;;  %v3430_v20 = vld [vmem:[%s9415_s11 + $0x10c0] sm:$0xff] }
0x2d65   :  { %5740 = vmatpush1.bf16.msra.mxu0 %v5739_v61  ;;  %v5757_v61 = vpack.c.bf16 %v3360_v42, %v3355_v53  ;;  %v3395_v42 = vld [vmem:[%s9415_s11 + $0xfa8] sm:$0xff] }
0x2d66   :  { %5964 = vmatpush1.bf16.msra.mxu1 %v5963_v63  ;;  %5742 = vmatprep.subr.bf16.mxu0 %v5741_v49  ;;  %v3354_v63 = vld [vmem:[%s9415_s11 + $0xe60] sm:$0xff]  ;;  %v3359_v49 = vld [vmem:[%s9415_s11 + $0xe88] sm:$0xff] }
0x2d67   :  { %5966 = vmatprep.subr.bf16.mxu1 %v5965_v2  ;;  %v3365_v2 = vld [vmem:[%s9415_s11 + $0xeb8] sm:$0xff]  ;;  %v5759_v6 = vpack.c.bf16 %v3359_v49, %v3354_v63  ;;  %v5773_v63 = vpack.c.bf16 %v3400_v59, %v3395_v42  ;;  %v3394_v49 = vld [vmem:[%s9415_s11 + $0xfa0] sm:$0xff]  ;;  %v3435_v42 = vld [vmem:[%s9415_s11 + $0x10e8] sm:$0xff] }
0x2d68   :  { %v3440_v59 = vld [vmem:[%s9415_s11 + $0x1110] sm:$0xff] }
0x2d69   :  { %5744 = vmatpush1.bf16.msra.mxu0 %v5743_v1  ;;  %v5983_v1 = vpack.c.bf16 %v3361_v56, %v3356_v54  ;;  %v3399_v54 = vld [vmem:[%s9415_s11 + $0xfc8] sm:$0xff] }
0x2d6a   :  { %5968 = vmatpush1.bf16.msra.mxu1 %v5967_v38  ;;  %5746 = vmatprep.subr.bf16.mxu0 %v5745_v7  ;;  %v5761_v38 = vpack.c.bf16 %v3370_v31, %v3365_v2  ;;  %v3364_v7 = vld [vmem:[%s9415_s11 + $0xeb0] sm:$0xff]  ;;  %v3401_v2 = vld [vmem:[%s9415_s11 + $0xfd8] sm:$0xff] }
0x2d6b   :  { %5970 = vmatprep.subr.bf16.mxu1 %v5969_v43  ;;  %v3371_v43 = vld [vmem:[%s9415_s11 + $0xee8] sm:$0xff]  ;;  %v5763_v62 = vpack.c.bf16 %v3369_v8, %v3364_v7  ;;  %v3405_v31 = vld [vmem:[%s9415_s11 + $0xff8] sm:$0xff]  ;;  %v3404_v8 = vld [vmem:[%s9415_s11 + $0xff0] sm:$0xff] }
0x2d6c   :  { %v5777_v7 = vpack.c.bf16 %v3410_v5, %v3405_v31  ;;  %v3445_v31 = vld [vmem:[%s9415_s11 + $0x1138] sm:$0xff]  ;;  %v3450_v5 = vld [vmem:[%s9415_s11 + $0x1160] sm:$0xff] }
0x2d6d   :  { %5748 = vmatpush1.bf16.msra.mxu0 %v5747_v18  ;;  %v8525_v18 = vld [vmem:[%s9416_s10] sm:$0xff] }
0x2d6e   :  { %5972 = vmatpush1.bf16.msra.mxu1 %v5971_v39  ;;  %5750 = vmatprep.subr.bf16.mxu0 %v5749_v50  ;;  %v2592_v39 = vrot.slane %v8525_v18, %v2591_v30  ;;  %v5987_v50 = vpack.c.bf16 %v3371_v43, %v3366_v9  ;;  %v3409_v9 = vld [vmem:[%s9415_s11 + $0x1018] sm:$0xff] }
0x2d6f   :  { %5974 = vmatprep.subr.bf16.mxu1 %v5973_v45  ;;  %v3376_v45 = vld [vmem:[%s9415_s11 + $0xf10] sm:$0xff] }
0x2d70   :  { %v5991_v34 = vpack.c.bf16 %v3381_v24, %v3376_v45  ;;  %v3416_v45 = vld [vmem:[%s9415_s11 + $0x1050] sm:$0xff]  ;;  %v3421_v24 = vld [vmem:[%s9415_s11 + $0x1078] sm:$0xff] }
0x2d71   :  { %5752 = vmatpush1.bf16.msra.mxu0 %v5751_v27  ;;  %v3392_v27 = vld [vmem:[%s9415_s11 + $0xf90] sm:$0xff] }
0x2d72   :  { %5976 = vmatpush1.bf16.msra.mxu1 %v5975_v33  ;;  %5754 = vmatprep.subr.bf16.mxu0 %v5753_v21  ;;  %v5767_v33 = vpack.c.bf16 %v3379_v48, %v3374_v22  ;;  %v8555_v21 = vadd.f32 %v7842_v36, %v2592_v39  ;;  %v5993_v53 = vpack.c.bf16 %v3392_v27, %v3387_v11  ;;  %v3391_v36 = vld [vmem:[%s9415_s11 + $0xf88] sm:$0xff]  ;;  %v3414_v22 = vld [vmem:[%s9415_s11 + $0x1040] sm:$0xff]  ;;  %v3432_v27 = vld [vmem:[%s9415_s11 + $0x10d0] sm:$0xff] }
0x2d73   :  { %5978 = vmatprep.subr.bf16.mxu1 %v5977_v52  ;;  %v3389_v52 = vld [vmem:[%s9415_s11 + $0xf78] sm:$0xff]  ;;  %v5779_v39 = vpack.c.bf16 %v3409_v9, %v3404_v8  ;;  %v3419_v48 = vld [vmem:[%s9415_s11 + $0x1068] sm:$0xff]  ;;  %v5793_v8 = vpack.c.bf16 %v3450_v5, %v3445_v31  ;;  %v3444_v9 = vld [vmem:[%s9415_s11 + $0x1130] sm:$0xff] }
0x2d74   :  { %v3427_v11 = vld [vmem:[%s9415_s11 + $0x10a8] sm:$0xff]  ;;  %v3008_v31 = vld [vmem:[%s9415_s11 + $0x390] sm:$0xff]  ;;  %v3013_v5 = vld [vmem:[%s9415_s11 + $0x3b8] sm:$0xff] }
0x2d75   :  { %5756 = vmatpush1.bf16.msra.mxu0 %v5755_v41  ;;  %v3402_v41 = vld [vmem:[%s9415_s11 + $0xfe0] sm:$0xff] }
0x2d76   :  { %5980 = vmatpush1.bf16.msra.mxu1 %v5979_v16  ;;  %5758 = vmatprep.subr.bf16.mxu0 %v5757_v61  ;;  %v5771_v16 = vpack.c.bf16 %v3389_v52, %v3384_v19  ;;  %v5995_v61 = vpack.c.bf16 %v3391_v36, %v3386_v51  ;;  %v5997_v56 = vpack.c.bf16 %v3402_v41, %v3397_v58  ;;  %v3424_v19 = vld [vmem:[%s9415_s11 + $0x1090] sm:$0xff]  ;;  %v3429_v52 = vld [vmem:[%s9415_s11 + $0x10b8] sm:$0xff]  ;;  %v3426_v51 = vld [vmem:[%s9415_s11 + $0x10a0] sm:$0xff] }
0x2d77   :  { %5982 = vmatprep.subr.bf16.mxu1 %v5981_v25  ;;  %v3396_v25 = vld [vmem:[%s9415_s11 + $0xfb0] sm:$0xff]  ;;  %v3431_v36 = vld [vmem:[%s9415_s11 + $0x10c8] sm:$0xff]  ;;  %v3437_v58 = vld [vmem:[%s9415_s11 + $0x10f8] sm:$0xff] }
0x2d78   :  { %v3442_v41 = vld [vmem:[%s9415_s11 + $0x1120] sm:$0xff] }
0x2d79   :  { %5760 = vmatpush1.bf16.msra.mxu0 %v5759_v6  ;;  %v3412_v6 = vld [vmem:[%s9415_s11 + $0x1030] sm:$0xff] }
0x2d7a   :  { %5984 = vmatpush1.bf16.msra.mxu1 %v5983_v1  ;;  %5762 = vmatprep.subr.bf16.mxu0 %v5761_v38  ;;  %v5775_v1 = vpack.c.bf16 %v3399_v54, %v3394_v49  ;;  %v5999_v38 = vpack.c.bf16 %v3401_v2, %v3396_v25  ;;  %v6001_v43 = vpack.c.bf16 %v3412_v6, %v3407_v57  ;;  %v3434_v49 = vld [vmem:[%s9415_s11 + $0x10e0] sm:$0xff]  ;;  %v3439_v54 = vld [vmem:[%s9415_s11 + $0x1108] sm:$0xff]  ;;  %v3436_v25 = vld [vmem:[%s9415_s11 + $0x10f0] sm:$0xff] }
0x2d7b   :  { %5986 = vmatprep.subr.bf16.mxu1 %v5985_v60  ;;  %v3406_v60 = vld [vmem:[%s9415_s11 + $0x1000] sm:$0xff]  ;;  %v3441_v2 = vld [vmem:[%s9415_s11 + $0x1118] sm:$0xff]  ;;  %v3447_v57 = vld [vmem:[%s9415_s11 + $0x1148] sm:$0xff] }
0x2d7c   :  { %v3452_v6 = vld [vmem:[%s9415_s11 + $0x1170] sm:$0xff] }
0x2d7d   :  { %5764 = vmatpush1.bf16.msra.mxu0 %v5763_v62  ;;  %v3422_v62 = vld [vmem:[%s9415_s11 + $0x1080] sm:$0xff] }
0x2d7e   :  { %5988 = vmatpush1.bf16.msra.mxu1 %v5987_v50  ;;  %5766 = vmatprep.subr.bf16.mxu0 %v5765_v35  ;;  %v6003_v50 = vpack.c.bf16 %v3411_v12, %v3406_v60  ;;  %v5781_v35 = vpack.c.bf16 %v3420_v0, %v3415_v14  ;;  %v3449_v60 = vld [vmem:[%s9415_s11 + $0x1158] sm:$0xff]  ;;  %v6017_v12 = vpack.c.bf16 %v3452_v6, %v3447_v57  ;;  %v3451_v14 = vld [vmem:[%s9415_s11 + $0x1168] sm:$0xff]  ;;  %v2978_v0 = vld [vmem:[%s9415_s11 + $0x2a0] sm:$0xff] }
0x2d7f   :  { %5990 = vmatprep.subr.bf16.mxu1 %v5989_v23  ;;  %v6005_v23 = vpack.c.bf16 %v3422_v62, %v3417_v17  ;;  %v2983_v17 = vld [vmem:[%s9415_s11 + $0x2c8] sm:$0xff]  ;;  %v3138_v62 = vld [vmem:[%s9415_s11 + $0x7a0] sm:$0xff]  ;;  %v3168_v57 = vld [vmem:[%s9415_s11 + $0x890] sm:$0xff] }
0x2d80   :  { %3688 = vmatmul.mubr.f32.vlgmr.msra.gmra.mrb[46].mxu0 %v8555_v21 }
0x2d81   :  { %3972 = vmatmul.mubr.f32.vlgmr.msra.gmra.mrb[36].mxu1 %v8555_v21  ;;  %5768 = vmatpush1.bf16.msra.mxu0 %v5767_v33  ;;  %v5783_v33 = vpack.c.bf16 %v3419_v48, %v3414_v22  ;;  %v6021_v48 = vpack.c.bf16 %v2983_v17, %v2978_v0  ;;  %v3178_v0 = vld [vmem:[%s9415_s11 + $0x8e0] sm:$0xff]  ;;  %v3183_v17 = vld [vmem:[%s9415_s11 + $0x908] sm:$0xff] }
0x2d82   :  { %5992 = vmatpush1.bf16.msra.mxu1 %v5991_v34  ;;  %5770 = vmatprep.subr.bf16.mxu0 %v5769_v47  ;;  %v6007_v34 = vpack.c.bf16 %v3421_v24, %v3416_v45  ;;  %v5785_v47 = vpack.c.bf16 %v3430_v20, %v3425_v15  ;;  %v2898_v45 = vld [vmem:[%s9415_s11 + $0x20] sm:$0xff]  ;;  %v2988_v20 = vld [vmem:[%s9415_s11 + $0x2f0] sm:$0xff] }
0x2d83   :  { %5994 = vmatprep.subr.bf16.mxu1 %v5993_v53  ;;  %3758 = vmatprep.mubr.f32.mxu0 %v6479_v3  ;;  %v6009_v53 = vpack.c.bf16 %v3432_v27, %v3427_v11  ;;  %v3058_v15 = vld [vmem:[%s9415_s11 + $0x520] sm:$0xff]  ;;  %v2993_v11 = vld [vmem:[%s9415_s11 + $0x318] sm:$0xff] }
0x2d84   :  { %4042 = vmatprep.mubr.f32.mxu1 %v6479_v3 }
0x2d85   :  { %5772 = vmatpush1.bf16.msra.mxu0 %v5771_v16  ;;  %v5787_v16 = vpack.c.bf16 %v3429_v52, %v3424_v19  ;;  %v2908_v52 = vld [vmem:[%s9415_s11 + $0x70] sm:$0xff] }
0x2d86   :  { %5996 = vmatpush1.bf16.msra.mxu1 %v5995_v61  ;;  %5774 = vmatprep.subr.bf16.mxu0 %v5773_v63  ;;  %v6011_v61 = vpack.c.bf16 %v3431_v36, %v3426_v51  ;;  %v5789_v63 = vpack.c.bf16 %v3440_v59, %v3435_v42  ;;  %v2913_v51 = vld [vmem:[%s9415_s11 + $0x98] sm:$0xff]  ;;  %v6025_v36 = vpack.c.bf16 %v2993_v11, %v2988_v20  ;;  %v2998_v42 = vld [vmem:[%s9415_s11 + $0x340] sm:$0xff]  ;;  %v3003_v59 = vld [vmem:[%s9415_s11 + $0x368] sm:$0xff] }
0x2d87   :  { %5998 = vmatprep.subr.bf16.mxu1 %v5997_v56  ;;  %v6013_v56 = vpack.c.bf16 %v3442_v41, %v3437_v58  ;;  %v3158_v41 = vld [vmem:[%s9415_s11 + $0x840] sm:$0xff]  ;;  %v3193_v20 = vld [vmem:[%s9415_s11 + $0x958] sm:$0xff] }
0x2d89   :  { %5776 = vmatpush1.bf16.msra.mxu0 %v5775_v1  ;;  %v5791_v1 = vpack.c.bf16 %v3439_v54, %v3434_v49  ;;  %v6029_v49 = vpack.c.bf16 %v3003_v59, %v2998_v42  ;;  %v2918_v54 = vld [vmem:[%s9415_s11 + $0xc0] sm:$0xff]  ;;  %v3203_v59 = vld [vmem:[%s9415_s11 + $0x9a8] sm:$0xff] }
0x2d8a   :  { %6000 = vmatpush1.bf16.msra.mxu1 %v5999_v38  ;;  %5778 = vmatprep.subr.bf16.mxu0 %v5777_v7  ;;  %v2599_v38 = vsub.s32 6, %v6678_v28  ;;  %v6015_v7 = vpack.c.bf16 %v3441_v2, %v3436_v25  ;;  %v2923_v25 = vld [vmem:[%s9415_s11 + $0xe8] sm:$0xff]  ;;  %v3198_v42 = vld [vmem:[%s9415_s11 + $0x980] sm:$0xff] }
0x2d8b   :  { %6002 = vmatprep.subr.bf16.mxu1 %v6001_v43  ;;  %v3446_v43 = vld [vmem:[%s9415_s11 + $0x1140] sm:$0xff]  ;;  %v6031_v6 = vpack.c.bf16 %v2923_v25, %v2918_v54  ;;  %v6077_v54 = vpack.c.bf16 %v3203_v59, %v3198_v42  ;;  %v3123_v25 = vld [vmem:[%s9415_s11 + $0x728] sm:$0xff]  ;;  %v3248_v42 = vld [vmem:[%s9415_s11 + $0xb10] sm:$0xff] }
0x2d8c   :  { %v6019_v22 = vpack.c.bf16 %v3451_v14, %v3446_v43  ;;  %v3093_v43 = vld [vmem:[%s9415_s11 + $0x638] sm:$0xff]  ;;  %v3023_v14 = vld [vmem:[%s9415_s11 + $0x408] sm:$0xff]  ;;  %v4626_v28 = vld [vmem:[%s9419_s15] sm:$0xff] }
0x2d8d   :  { %5780 = vmatpush1.bf16.msra.mxu0 %v5779_v39  ;;  %v3143_v39 = vld [vmem:[%s9415_s11 + $0x7c8] sm:$0xff]  ;;  %v3253_v59 = vld [vmem:[%s9415_s11 + $0xb38] sm:$0xff] }
0x2d8e   :  { %6004 = vmatpush1.bf16.msra.mxu1 %v6003_v50  ;;  %5782 = vmatprep.subr.bf16.mxu0 %v5781_v35  ;;  %v5795_v50 = vpack.c.bf16 %v3449_v60, %v3444_v9  ;;  %v2600_v35 = vrot.slane %v8525_v18, %v2599_v38  ;;  %v6053_v24 = vpack.c.bf16 %v3143_v39, %v3138_v62  ;;  %v3063_v18 = vld [vmem:[%s9415_s11 + $0x548] sm:$0xff]  ;;  %v3088_v9 = vld [vmem:[%s9415_s11 + $0x610] sm:$0xff] }
0x2d8f   :  { %6006 = vmatprep.subr.bf16.mxu1 %v6005_v23  ;;  %v2903_v23 = vld [vmem:[%s9415_s11 + $0x48] sm:$0xff]  ;;  %v6055_v19 = vpack.c.bf16 %v3063_v18, %v3058_v15  ;;  %v6033_v38 = vpack.c.bf16 %v3013_v5, %v3008_v31  ;;  %v6067_v39 = vpack.c.bf16 %v3093_v43, %v3088_v9  ;;  %v3033_v15 = vld [vmem:[%s9415_s11 + $0x458] sm:$0xff]  ;;  %v3188_v18 = vld [vmem:[%s9415_s11 + $0x930] sm:$0xff] }
0x2d90   :  { %v6023_v27 = vpack.c.bf16 %v2903_v23, %v2898_v45  ;;  %v6069_v45 = vpack.c.bf16 %v3183_v17, %v3178_v0  ;;  %v3103_v23 = vld [vmem:[%s9415_s11 + $0x688] sm:$0xff]  ;;  %v3213_v31 = vld [vmem:[%s9415_s11 + $0x9f8] sm:$0xff]  ;;  %v3298_v9 = vld [vmem:[%s9415_s11 + $0xca0] sm:$0xff] }
0x2d91   :  { %5784 = vmatpush1.bf16.msra.mxu0 %v5783_v33  ;;  %v3148_v33 = vld [vmem:[%s9415_s11 + $0x7f0] sm:$0xff]  ;;  %v3218_v0 = vld [vmem:[%s9415_s11 + $0xa20] sm:$0xff]  ;;  %v3223_v17 = vld [vmem:[%s9415_s11 + $0xa48] sm:$0xff] }
0x2d92   :  { %6008 = vmatpush1.bf16.msra.mxu1 %v6007_v34  ;;  %5786 = vmatprep.subr.bf16.mxu0 %v5785_v47  ;;  %v3153_v34 = vld [vmem:[%s9415_s11 + $0x818] sm:$0xff]  ;;  %v8756_v47 = vadd.f32 %v7844_v37, %v2600_v35  ;;  %v2938_v35 = vld [vmem:[%s9415_s11 + $0x160] sm:$0xff] }
0x2d93   :  { %6010 = vmatprep.subr.bf16.mxu1 %v6009_v53  ;;  %v3068_v53 = vld [vmem:[%s9415_s11 + $0x570] sm:$0xff]  ;;  %v3073_v37 = vld [vmem:[%s9415_s11 + $0x598] sm:$0xff]  ;;  %v6057_v58 = vpack.c.bf16 %v3153_v34, %v3148_v33 }
0x2d94   :  { %v2948_v34 = vld [vmem:[%s9415_s11 + $0x1b0] sm:$0xff] }
0x2d95   :  { %5788 = vmatpush1.bf16.msra.mxu0 %v5787_v16  ;;  %v3163_v16 = vld [vmem:[%s9415_s11 + $0x868] sm:$0xff] }
0x2d96   :  { %6012 = vmatpush1.bf16.msra.mxu1 %v6011_v61  ;;  %5790 = vmatprep.subr.bf16.mxu0 %v5789_v63  ;;  %v6027_v61 = vpack.c.bf16 %v2913_v51, %v2908_v52  ;;  %v6059_v63 = vpack.c.bf16 %v3073_v37, %v3068_v53  ;;  %v6061_v2 = vpack.c.bf16 %v3163_v16, %v3158_v41  ;;  %v3108_v52 = vld [vmem:[%s9415_s11 + $0x6b0] sm:$0xff]  ;;  %v3113_v53 = vld [vmem:[%s9415_s11 + $0x6d8] sm:$0xff]  ;;  %v3043_v37 = vld [vmem:[%s9415_s11 + $0x4a8] sm:$0xff] }
0x2d97   :  { %6014 = vmatprep.subr.bf16.mxu1 %v6013_v56  ;;  %v3078_v56 = vld [vmem:[%s9415_s11 + $0x5c0] sm:$0xff]  ;;  %v6073_v51 = vpack.c.bf16 %v3193_v20, %v3188_v18  ;;  %v6075_v41 = vpack.c.bf16 %v3113_v53, %v3108_v52  ;;  %v3393_v18 = vld [vmem:[%s9415_s11 + $0xf98] sm:$0xff]  ;;  %v3243_v52 = vld [vmem:[%s9415_s11 + $0xae8] sm:$0xff] }
0x2d98   :  { %v3318_v20 = vld [vmem:[%s9415_s11 + $0xd40] sm:$0xff] }
0x2d99   :  { %5792 = vmatpush1.bf16.msra.mxu0 %v5791_v1 }
0x2d9a   :  { %6016 = vmatpush1.bf16.msra.mxu1 %v6015_v7  ;;  %5794 = vmatprep.subr.bf16.mxu0 %v5793_v8  ;;  %v2928_v7 = vld [vmem:[%s9415_s11 + $0x110] sm:$0xff]  ;;  %v2933_v8 = vld [vmem:[%s9415_s11 + $0x138] sm:$0xff] }
0x2d9b   :  { %6018 = vmatprep.subr.bf16.mxu1 %v6017_v12  ;;  %v3018_v12 = vld [vmem:[%s9415_s11 + $0x3e0] sm:$0xff]  ;;  %v6035_v62 = vpack.c.bf16 %v2933_v8, %v2928_v7  ;;  %v3133_v8 = vld [vmem:[%s9415_s11 + $0x778] sm:$0xff] }
0x2d9d   :  { %5796 = vmatpush1.bf16.msra.mxu0 %v5795_v50  ;;  %v6037_v50 = vpack.c.bf16 %v3023_v14, %v3018_v12 }
0x2d9e   :  { %6020 = vmatpush1.bf16.msra.mxu1 %v6019_v22  ;;  %6022 = vmatprep.subr.bf16.mxu0 %v6021_v48  ;;  %v2943_v22 = vld [vmem:[%s9415_s11 + $0x188] sm:$0xff]  ;;  %v3098_v48 = vld [vmem:[%s9415_s11 + $0x660] sm:$0xff] }
0x2d9f   :  { %6054 = vmatprep.subr.bf16.mxu1 %v6053_v24  ;;  %v3028_v24 = vld [vmem:[%s9415_s11 + $0x430] sm:$0xff]  ;;  %v6039_v11 = vpack.c.bf16 %v2943_v22, %v2938_v35  ;;  %v3313_v35 = vld [vmem:[%s9415_s11 + $0xd18] sm:$0xff]  ;;  %v6087_v22 = vpack.c.bf16 %v3223_v17, %v3218_v0  ;;  %v3278_v0 = vld [vmem:[%s9415_s11 + $0xc00] sm:$0xff] }
0x2da0   :  { %3759 = vmatmul.mubr.f32.vlgmr.msra.gmra.mrb[46].mxu0 %v8756_v47  ;;  %v6041_v33 = vpack.c.bf16 %v3033_v15, %v3028_v24  ;;  %v3388_v24 = vld [vmem:[%s9415_s11 + $0xf70] sm:$0xff]  ;;  %v3283_v17 = vld [vmem:[%s9415_s11 + $0xc28] sm:$0xff] }
0x2da1   :  { %4043 = vmatmul.mubr.f32.vlgmr.msra.gmra.mrb[36].mxu1 %v8756_v47  ;;  %6024 = vmatpush3.bf16.msra.mxu0 %v6023_v27  ;;  %v6071_v27 = vpack.c.bf16 %v3103_v23, %v3098_v48  ;;  %v3233_v23 = vld [vmem:[%s9415_s11 + $0xa98] sm:$0xff] }
0x2da2   :  { %4113 = vmatprep.mubr.f32.mxu0 %v7743_v55  ;;  %6056 = vmatpush3.bf16.msra.mxu1 %v6055_v19  ;;  %v3083_v55 = vld [vmem:[%s9415_s11 + $0x5e8] sm:$0xff]  ;;  %v2953_v19 = vld [vmem:[%s9415_s11 + $0x1d8] sm:$0xff] }
0x2da3   :  { %4183 = vmatprep.mubr.f32.mxu1 %v7773_v44  ;;  %6026 = vmatprep.subr.bf16.mxu0 %v6025_v36  ;;  %v3173_v44 = vld [vmem:[%s9415_s11 + $0x8b8] sm:$0xff]  ;;  %v6063_v1 = vpack.c.bf16 %v3083_v55, %v3078_v56  ;;  %v3038_v36 = vld [vmem:[%s9415_s11 + $0x480] sm:$0xff]  ;;  %v3048_v56 = vld [vmem:[%s9415_s11 + $0x4d0] sm:$0xff] }
0x2da4   :  { %6058 = vmatprep.subr.bf16.mxu1 %v6057_v58  ;;  %v6065_v60 = vpack.c.bf16 %v3173_v44, %v3168_v57  ;;  %v6043_v58 = vpack.c.bf16 %v2953_v19, %v2948_v34  ;;  %v6045_v16 = vpack.c.bf16 %v3043_v37, %v3038_v36  ;;  %v3208_v55 = vld [vmem:[%s9415_s11 + $0x9d0] sm:$0xff]  ;;  %v3238_v19 = vld [vmem:[%s9415_s11 + $0xac0] sm:$0xff] }
0x2da5   :  { %6028 = vmatpush3.bf16.msra.mxu0 %v6027_v61  ;;  %v2958_v61 = vld [vmem:[%s9415_s11 + $0x200] sm:$0xff]  ;;  %v6081_v7 = vpack.c.bf16 %v3213_v31, %v3208_v55  ;;  %v6095_v53 = vpack.c.bf16 %v3243_v52, %v3238_v19  ;;  %v3423_v55 = vld [vmem:[%s9415_s11 + $0x1088] sm:$0xff]  ;;  %v3348_v31 = vld [vmem:[%s9415_s11 + $0xe30] sm:$0xff] }
0x2da6   :  { %6060 = vmatpush3.bf16.msra.mxu1 %v6059_v63  ;;  %6030 = vmatprep.subr.bf16.mxu0 %v6029_v49  ;;  %v2963_v63 = vld [vmem:[%s9415_s11 + $0x228] sm:$0xff]  ;;  %v3118_v49 = vld [vmem:[%s9415_s11 + $0x700] sm:$0xff] }
0x2da7   :  { %6062 = vmatprep.subr.bf16.mxu1 %v6061_v2  ;;  %v3053_v2 = vld [vmem:[%s9415_s11 + $0x4f8] sm:$0xff]  ;;  %v6047_v5 = vpack.c.bf16 %v2963_v63, %v2958_v61  ;;  %v6079_v57 = vpack.c.bf16 %v3123_v25, %v3118_v49  ;;  %v3343_v61 = vld [vmem:[%s9415_s11 + $0xe08] sm:$0xff]  ;;  %v6099_v63 = vpack.c.bf16 %v3253_v59, %v3248_v42  ;;  %v3258_v25 = vld [vmem:[%s9415_s11 + $0xb60] sm:$0xff] }
0x2da8   :  { %v6049_v44 = vpack.c.bf16 %v3053_v2, %v3048_v56  ;;  %v3263_v56 = vld [vmem:[%s9415_s11 + $0xb88] sm:$0xff]  ;;  %v3418_v2 = vld [vmem:[%s9415_s11 + $0x1060] sm:$0xff]  ;;  %v4379_v42 = vld [vmem:[%s9417_s13 + $0x190] sm:$0xff] }
0x2da9   :  { %6032 = vmatpush3.bf16.msra.mxu0 %v6031_v6  ;;  %v2968_v6 = vld [vmem:[%s9415_s11 + $0x250] sm:$0xff]  ;;  %v4380_v59 = vld [vmem:[%s9417_s13 + $0x198] sm:$0xff] }
0x2daa   :  { %6064 = vmatpush3.bf16.msra.mxu1 %v6063_v1  ;;  %6034 = vmatprep.subr.bf16.mxu0 %v6033_v38  ;;  %v2973_v1 = vld [vmem:[%s9415_s11 + $0x278] sm:$0xff]  ;;  %v3128_v38 = vld [vmem:[%s9415_s11 + $0x750] sm:$0xff] }
0x2dab   :  { %6066 = vmatprep.subr.bf16.mxu1 %v6065_v60  ;;  %v3303_v60 = vld [vmem:[%s9415_s11 + $0xcc8] sm:$0xff]  ;;  %v6051_v43 = vpack.c.bf16 %v2973_v1, %v2968_v6  ;;  %v6083_v12 = vpack.c.bf16 %v3133_v8, %v3128_v38  ;;  %v3268_v1 = vld [vmem:[%s9415_s11 + $0xbb0] sm:$0xff]  ;;  %v3273_v38 = vld [vmem:[%s9415_s11 + $0xbd8] sm:$0xff] }
0x2dac   :  { %v6085_v14 = vpack.c.bf16 %v3303_v60, %v3298_v9  ;;  %v3433_v8 = vld [vmem:[%s9415_s11 + $0x10d8] sm:$0xff]  ;;  %v3358_v9 = vld [vmem:[%s9415_s11 + $0xe80] sm:$0xff]  ;;  %v3363_v60 = vld [vmem:[%s9415_s11 + $0xea8] sm:$0xff] }
0x2dad   :  { %6036 = vmatpush3.bf16.msra.mxu0 %v6035_v62  ;;  %v3378_v62 = vld [vmem:[%s9415_s11 + $0xf20] sm:$0xff] }
0x2dae   :  { %6068 = vmatpush3.bf16.msra.mxu1 %v6067_v39  ;;  %6038 = vmatprep.subr.bf16.mxu0 %v6037_v50  ;;  %v3383_v39 = vld [vmem:[%s9415_s11 + $0xf48] sm:$0xff]  ;;  %v3308_v50 = vld [vmem:[%s9415_s11 + $0xcf0] sm:$0xff] }
0x2daf   :  { %6070 = vmatprep.subr.bf16.mxu1 %v6069_v45  ;;  %v6118_v48 = vpack.c.bf16 %v3383_v39, %v3378_v62  ;;  %v3228_v45 = vld [vmem:[%s9415_s11 + $0xa70] sm:$0xff]  ;;  %v6089_v15 = vpack.c.bf16 %v3313_v35, %v3308_v50  ;;  %v3438_v62 = vld [vmem:[%s9415_s11 + $0x1100] sm:$0xff]  ;;  %v3443_v39 = vld [vmem:[%s9415_s11 + $0x1128] sm:$0xff] }
0x2db0   :  { %v3368_v50 = vld [vmem:[%s9415_s11 + $0xed0] sm:$0xff]  ;;  %v3373_v35 = vld [vmem:[%s9415_s11 + $0xef8] sm:$0xff] }
0x2db1   :  { %6040 = vmatpush3.bf16.msra.mxu0 %v6039_v11  ;;  %v3323_v11 = vld [vmem:[%s9415_s11 + $0xd68] sm:$0xff] }
0x2db2   :  { %6072 = vmatpush3.bf16.msra.mxu1 %v6071_v27  ;;  %6042 = vmatprep.subr.bf16.mxu0 %v6041_v33  ;;  %v6091_v27 = vpack.c.bf16 %v3233_v23, %v3228_v45  ;;  %v6121_v33 = vpack.c.bf16 %v3393_v18, %v3388_v24  ;;  %v6093_v34 = vpack.c.bf16 %v3323_v11, %v3318_v20  ;;  %v3288_v23 = vld [vmem:[%s9415_s11 + $0xc50] sm:$0xff]  ;;  %v3293_v24 = vld [vmem:[%s9415_s11 + $0xc78] sm:$0xff]  ;;  %v4345_v20 = vld [vmem:[%s9417_s13 + $0x80] sm:$0xff] }
0x2db3   :  { %6074 = vmatprep.subr.bf16.mxu1 %v6073_v51  ;;  %v3333_v51 = vld [vmem:[%s9415_s11 + $0xdb8] sm:$0xff]  ;;  %v6113_v45 = vpack.c.bf16 %v3373_v35, %v3368_v50  ;;  %v4346_v11 = vld [vmem:[%s9417_s13 + $0x88] sm:$0xff]  ;;  %v4353_v35 = vld [vmem:[%s9417_s13 + $0xc0] sm:$0xff] }
0x2db4   :  { %v3453_v18 = vld [vmem:[%s9415_s11 + $0x1178] sm:$0xff]  ;;  %v6141_v52 = vpack.c.bf16 %v4346_v11, %v4345_v20  ;;  %v4338_v20 = vld [vmem:[%s9417_s13 + $0x48] sm:$0xff]  ;;  %v4369_v11 = vld [vmem:[%s9417_s13 + $0x140] sm:$0xff] }
0x2db5   :  { %6044 = vmatpush3.bf16.msra.mxu0 %v6043_v58  ;;  %v3408_v58 = vld [vmem:[%s9415_s11 + $0x1010] sm:$0xff]  ;;  %v4368_v50 = vld [vmem:[%s9417_s13 + $0x138] sm:$0xff] }
0x2db6   :  { %6076 = vmatpush3.bf16.msra.mxu1 %v6075_v41  ;;  %6046 = vmatprep.subr.bf16.mxu0 %v6045_v16  ;;  %v3413_v41 = vld [vmem:[%s9415_s11 + $0x1038] sm:$0xff]  ;;  %v3338_v16 = vld [vmem:[%s9415_s11 + $0xde0] sm:$0xff] }
0x2db7   :  { %6078 = vmatprep.subr.bf16.mxu1 %v6077_v54  ;;  %v6127_v49 = vpack.c.bf16 %v3413_v41, %v3408_v58  ;;  %v6101_v54 = vpack.c.bf16 %v3343_v61, %v3338_v16  ;;  %v4331_v61 = vld [vmem:[%s9417_s13 + $0x10] sm:$0xff] }
0x2db9   :  { %6048 = vmatpush3.bf16.msra.mxu0 %v6047_v5  ;;  %v3353_v5 = vld [vmem:[%s9415_s11 + $0xe58] sm:$0xff] }
0x2dba   :  { %6080 = vmatpush3.bf16.msra.mxu1 %v6079_v57  ;;  %6050 = vmatprep.subr.bf16.mxu0 %v6049_v44  ;;  %v6103_v57 = vpack.c.bf16 %v3263_v56, %v3258_v25  ;;  %v6130_v44 = vpack.c.bf16 %v3423_v55, %v3418_v2  ;;  %v6105_v6 = vpack.c.bf16 %v3353_v5, %v3348_v31  ;;  %v4364_v25 = vld [vmem:[%s9417_s13 + $0x118] sm:$0xff]  ;;  %v4349_v56 = vld [vmem:[%s9417_s13 + $0xa0] sm:$0xff]  ;;  %v4350_v2 = vld [vmem:[%s9417_s13 + $0xa8] sm:$0xff] }
0x2dbb   :  { %6082 = vmatprep.subr.bf16.mxu1 %v6081_v7  ;;  %v3428_v7 = vld [vmem:[%s9415_s11 + $0x10b0] sm:$0xff]  ;;  %v4381_v55 = vld [vmem:[%s9417_s13 + $0x1a0] sm:$0xff]  ;;  %v4382_v31 = vld [vmem:[%s9417_s13 + $0x1a8] sm:$0xff] }
0x2dbd   :  { %6052 = vmatpush3.bf16.msra.mxu0 %v6051_v43  ;;  %v6107_v43 = vpack.c.bf16 %v3273_v38, %v3268_v1  ;;  %v4365_v1 = vld [vmem:[%s9417_s13 + $0x120] sm:$0xff]  ;;  %v4366_v38 = vld [vmem:[%s9417_s13 + $0x128] sm:$0xff] }
0x2dbe   :  { %6084 = vmatpush3.bf16.msra.mxu1 %v6083_v12  ;;  %6086 = vmatprep.subr.bf16.mxu0 %v6085_v14  ;;  %v6133_v12 = vpack.c.bf16 %v3433_v8, %v3428_v7  ;;  %v6109_v14 = vpack.c.bf16 %v3363_v60, %v3358_v9  ;;  %v4351_v7 = vld [vmem:[%s9417_s13 + $0xb0] sm:$0xff]  ;;  %v4352_v8 = vld [vmem:[%s9417_s13 + $0xb8] sm:$0xff] }
0x2dbf   :  { %6117 = vmatprep.subr.bf16.mxu1 %v6482_v46  ;;  %v4383_v9 = vld [vmem:[%s9417_s13 + $0x1b0] sm:$0xff]  ;;  %v4384_v60 = vld [vmem:[%s9417_s13 + $0x1b8] sm:$0xff] }
0x2dc0   :  { %4114 = vmatmul.mubr.f32.vlgmr.msra.gmra.mrb[48].mxu0 %v7751_v4  ;;  %v3398_v4 = vld [vmem:[%s9415_s11 + $0xfc0] sm:$0xff] }
0x2dc1   :  { %4184 = vmatmul.mubr.f32.vlgmr.msra.gmra.mrb[38].mxu1 %v8152_v40  ;;  %6088 = vmatpush3.bf16.msra.mxu0 %v6087_v22  ;;  %v3403_v40 = vld [vmem:[%s9415_s11 + $0xfe8] sm:$0xff]  ;;  %v6111_v22 = vpack.c.bf16 %v3283_v17, %v3278_v0  ;;  %v4335_v0 = vld [vmem:[%s9417_s13 + $0x30] sm:$0xff]  ;;  %v4336_v17 = vld [vmem:[%s9417_s13 + $0x38] sm:$0xff] }
0x2dc2   :  { %4253 = vmatprep.mubr.f32.mxu0 %v8164_v13  ;;  %6119 = vmatpush3.bf16.msra.mxu1 %v6118_v48  ;;  %v3328_v13 = vld [vmem:[%s9415_s11 + $0xd90] sm:$0xff]  ;;  %v6124_v36 = vpack.c.bf16 %v3403_v40, %v3398_v4  ;;  %v6136_v48 = vpack.c.bf16 %v3443_v39, %v3438_v62  ;;  %v4329_v4 = vld [vmem:[%s9417_s13] sm:$0xff]  ;;  %v4330_v40 = vld [vmem:[%s9417_s13 + $0x8] sm:$0xff]  ;;  %v6185_v39 = vpack.c.bf16 %v4384_v60, %v4383_v9 }
0x2dc3   :  { %6090 = vmatprep.subr.bf16.mxu0 %v6089_v15  ;;  %6120 = vmatprep.subr.bf16.mxu1 %v6482_v46  ;;  %v6097_v37 = vpack.c.bf16 %v3333_v51, %v3328_v13  ;;  %v3448_v15 = vld [vmem:[%s9415_s11 + $0x1150] sm:$0xff]  ;;  %v4361_v13 = vld [vmem:[%s9417_s13 + $0x100] sm:$0xff]  ;;  %v6143_v58 = vpack.c.bf16 %v4330_v40, %v4329_v4  ;;  %v4388_v4 = vld [vmem:[%s9417_s13 + $0x1d8] sm:$0xff] }
0x2dc4   :  { %5296 = vmatprep.mubr.msk.f32.mxu1 %vm6483_vm2, %v6479_v3  ;;  %v6139_v19 = vpack.c.bf16 %v3453_v18, %v3448_v15  ;;  %v4367_v62 = vld [vmem:[%s9417_s13 + $0x130] sm:$0xff]  ;;  %v4337_v18 = vld [vmem:[%s9417_s13 + $0x40] sm:$0xff]  ;;  %v4376_v60 = vld [vmem:[%s9417_s13 + $0x178] sm:$0xff] }
0x2dc5   :  { %6092 = vmatpush3.bf16.msra.mxu0 %v6091_v27  ;;  %v4377_v27 = vld [vmem:[%s9417_s13 + $0x180] sm:$0xff]  ;;  %v6159_v40 = vpack.c.bf16 %v4338_v20, %v4337_v18  ;;  %v4375_v9 = vld [vmem:[%s9417_s13 + $0x170] sm:$0xff]  ;;  %v4396_v18 = vld [vmem:[%s9417_s13 + $0x218] sm:$0xff] }
0x2dc6   :  { %6122 = vmatpush3.bf16.msra.mxu1 %v6121_v33  ;;  %6094 = vmatprep.subr.bf16.mxu0 %v6093_v34  ;;  %v4378_v33 = vld [vmem:[%s9417_s13 + $0x188] sm:$0xff]  ;;  %v6115_v34 = vpack.c.bf16 %v3293_v24, %v3288_v23  ;;  %v6155_v23 = vpack.c.bf16 %v4336_v17, %v4335_v0  ;;  %v6187_v24 = vpack.c.bf16 %v4368_v50, %v4367_v62 }
0x2dc7   :  { %6123 = vmatprep.subr.bf16.mxu1 %v6482_v46  ;;  %v6173_v51 = vpack.c.bf16 %v4378_v33, %v4377_v27  ;;  %v4370_v33 = vld [vmem:[%s9417_s13 + $0x148] sm:$0xff] }
0x2dc8   :  { %v4394_v50 = vld [vmem:[%s9417_s13 + $0x208] sm:$0xff] }
0x2dc9   :  { %6096 = vmatpush3.bf16.msra.mxu0 %v6095_v53  ;;  %v4362_v53 = vld [vmem:[%s9417_s13 + $0x108] sm:$0xff] }
0x2dca   :  { %6125 = vmatpush3.bf16.msra.mxu1 %v6124_v36  ;;  %6098 = vmatprep.subr.bf16.mxu0 %v6097_v37  ;;  %v4347_v36 = vld [vmem:[%s9417_s13 + $0x90] sm:$0xff]  ;;  %v4348_v37 = vld [vmem:[%s9417_s13 + $0x98] sm:$0xff]  ;;  %v6175_v41 = vpack.c.bf16 %v4362_v53, %v4361_v13  ;;  %v6191_v13 = vpack.c.bf16 %v4370_v33, %v4369_v11  ;;  %v4397_v11 = vld [vmem:[%s9417_s13 + $0x220] sm:$0xff] }
0x2dcb   :  { %6126 = vmatprep.subr.bf16.mxu1 %v6482_v46  ;;  %v6145_v16 = vpack.c.bf16 %v4348_v37, %v4347_v36  ;;  %v4339_v53 = vld [vmem:[%s9417_s13 + $0x50] sm:$0xff]  ;;  %v4340_v36 = vld [vmem:[%s9417_s13 + $0x58] sm:$0xff] }
0x2dcc   :  { %v4371_v37 = vld [vmem:[%s9417_s13 + $0x150] sm:$0xff] }
0x2dcd   :  { %6100 = vmatpush3.bf16.msra.mxu0 %v6099_v63  ;;  %v4332_v63 = vld [vmem:[%s9417_s13 + $0x18] sm:$0xff] }
0x2dce   :  { %6128 = vmatpush3.bf16.msra.mxu1 %v6127_v49  ;;  %6102 = vmatprep.subr.bf16.mxu0 %v6101_v54  ;;  %v4363_v49 = vld [vmem:[%s9417_s13 + $0x110] sm:$0xff]  ;;  %v6177_v54 = vpack.c.bf16 %v4380_v59, %v4379_v42  ;;  %v6147_v5 = vpack.c.bf16 %v4332_v63, %v4331_v61  ;;  %v4372_v59 = vld [vmem:[%s9417_s13 + $0x158] sm:$0xff]  ;;  %v4390_v61 = vld [vmem:[%s9417_s13 + $0x1e8] sm:$0xff]  ;;  %v6163_v63 = vpack.c.bf16 %v4340_v36, %v4339_v53 }
0x2dcf   :  { %6129 = vmatprep.subr.bf16.mxu1 %v6482_v46  ;;  %v4405_v36 = vld [vmem:[%s9417_s13 + $0x260] sm:$0xff] }
0x2dd1   :  { %6104 = vmatpush3.bf16.msra.mxu0 %v6103_v57  ;;  %v6179_v57 = vpack.c.bf16 %v4364_v25, %v4363_v49  ;;  %v6195_v49 = vpack.c.bf16 %v4372_v59, %v4371_v37  ;;  %v4341_v25 = vld [vmem:[%s9417_s13 + $0x60] sm:$0xff]  ;;  %v4406_v37 = vld [vmem:[%s9417_s13 + $0x268] sm:$0xff]  ;;  %v4407_v59 = vld [vmem:[%s9417_s13 + $0x270] sm:$0xff] }
0x2dd2   :  { %6131 = vmatpush3.bf16.msra.mxu1 %v6130_v44  ;;  %6106 = vmatprep.subr.bf16.mxu0 %v6105_v6  ;;  %v6149_v44 = vpack.c.bf16 %v4350_v2, %v4349_v56  ;;  %v4334_v6 = vld [vmem:[%s9417_s13 + $0x28] sm:$0xff]  ;;  %v4373_v2 = vld [vmem:[%s9417_s13 + $0x160] sm:$0xff] }
0x2dd3   :  { %6132 = vmatprep.subr.bf16.mxu1 %v6482_v46  ;;  %v4342_v56 = vld [vmem:[%s9417_s13 + $0x68] sm:$0xff] }
0x2dd5   :  { %6108 = vmatpush3.bf16.msra.mxu0 %v6107_v43 }
0x2dd6   :  { %6134 = vmatpush3.bf16.msra.mxu1 %v6133_v12  ;;  %6110 = vmatprep.subr.bf16.mxu0 %v6109_v14  ;;  %v6183_v12 = vpack.c.bf16 %v4366_v38, %v4365_v1  ;;  %v6153_v14 = vpack.c.bf16 %v4352_v8, %v4351_v7  ;;  %v4343_v38 = vld [vmem:[%s9417_s13 + $0x70] sm:$0xff]  ;;  %v4344_v7 = vld [vmem:[%s9417_s13 + $0x78] sm:$0xff] }
0x2dd7   :  { %6135 = vmatprep.subr.bf16.mxu1 %v6482_v46 }
0x2dd9   :  { %6112 = vmatpush3.bf16.msra.mxu0 %v6111_v22  ;;  %v4354_v22 = vld [vmem:[%s9417_s13 + $0xc8] sm:$0xff] }
0x2dda   :  { %6137 = vmatpush3.bf16.msra.mxu1 %v6136_v48  ;;  %6114 = vmatprep.subr.bf16.mxu0 %v6113_v45  ;;  %v4385_v48 = vld [vmem:[%s9417_s13 + $0x1c0] sm:$0xff]  ;;  %v4386_v45 = vld [vmem:[%s9417_s13 + $0x1c8] sm:$0xff]  ;;  %v6157_v15 = vpack.c.bf16 %v4354_v22, %v4353_v35 }
0x2ddb   :  { %6138 = vmatprep.subr.bf16.mxu1 %v6482_v46  ;;  %v6189_v27 = vpack.c.bf16 %v4386_v45, %v4385_v48 }
0x2ddd   :  { %6116 = vmatpush3.bf16.msra.mxu0 %v6115_v34  ;;  %v4355_v34 = vld [vmem:[%s9417_s13 + $0xd0] sm:$0xff] }
0x2dde   :  { %6140 = vmatpush3.bf16.msra.mxu1 %v6139_v19  ;;  %6142 = vmatprep.subr.bf16.mxu0 %v6141_v52  ;;  %v4356_v19 = vld [vmem:[%s9417_s13 + $0xd8] sm:$0xff]  ;;  %v4387_v52 = vld [vmem:[%s9417_s13 + $0x1d0] sm:$0xff] }
0x2ddf   :  { %6174 = vmatprep.subr.bf16.mxu1 %v6173_v51  ;;  %v6161_v51 = vpack.c.bf16 %v4356_v19, %v4355_v34  ;;  %v6193_v42 = vpack.c.bf16 %v4388_v4, %v4387_v52  ;;  %v4399_v34 = vld [vmem:[%s9417_s13 + $0x230] sm:$0xff]  ;;  %v4400_v19 = vld [vmem:[%s9417_s13 + $0x238] sm:$0xff]  ;;  %v4402_v4 = vld [vmem:[%s9417_s13 + $0x248] sm:$0xff] }
0x2de0   :  { %4254 = vmatmul.mubr.f32.vlgmr.msra.gmra.mrb[50].mxu0 %v8555_v21  ;;  %v4333_v21 = vld [vmem:[%s9417_s13 + $0x20] sm:$0xff]  ;;  %v6215_v52 = vpack.c.bf16 %v4400_v19, %v4399_v34 }
0x2de1   :  { %5297 = vmatmul.mubr.f32.vlgmr.msra.gmra.mrb[40].mxu1 %v8756_v47  ;;  %6144 = vmatpush3.bf16.msra.mxu0 %v6143_v58  ;;  %v6181_v47 = vpack.c.bf16 %v4382_v31, %v4381_v55  ;;  %v6151_v43 = vpack.c.bf16 %v4334_v6, %v4333_v21  ;;  %v4357_v58 = vld [vmem:[%s9417_s13 + $0xe0] sm:$0xff]  ;;  %v4374_v31 = vld [vmem:[%s9417_s13 + $0x168] sm:$0xff]  ;;  %v4392_v21 = vld [vmem:[%s9417_s13 + $0x1f8] sm:$0xff]  ;;  %v6167_v6 = vpack.c.bf16 %v4342_v56, %v4341_v25 }
0x2de2   :  { %6176 = vmatpush3.bf16.msra.mxu1 %v6175_v41  ;;  %6146 = vmatprep.subr.bf16.mxu0 %v6145_v16  ;;  %v4358_v41 = vld [vmem:[%s9417_s13 + $0xe8] sm:$0xff]  ;;  %v4389_v16 = vld [vmem:[%s9417_s13 + $0x1e0] sm:$0xff]  ;;  %v6199_v1 = vpack.c.bf16 %v4374_v31, %v4373_v2 }
0x2de3   :  { %6178 = vmatprep.subr.bf16.mxu1 %v6177_v54  ;;  %v6165_v54 = vpack.c.bf16 %v4358_v41, %v4357_v58  ;;  %v6197_v55 = vpack.c.bf16 %v4390_v61, %v4389_v16  ;;  %v4408_v58 = vld [vmem:[%s9417_s13 + $0x278] sm:$0xff] }
0x2de4   :  { %v6227_v41 = vpack.c.bf16 %v4408_v58, %v4407_v59 }
0x2de5   :  { %6148 = vmatpush3.bf16.msra.mxu0 %v6147_v5  ;;  %v4359_v5 = vld [vmem:[%s9417_s13 + $0xf0] sm:$0xff] }
0x2de6   :  { %6180 = vmatpush3.bf16.msra.mxu1 %v6179_v57  ;;  %6150 = vmatprep.subr.bf16.mxu0 %v6149_v44  ;;  %v4360_v57 = vld [vmem:[%s9417_s13 + $0xf8] sm:$0xff]  ;;  %v4391_v44 = vld [vmem:[%s9417_s13 + $0x1f0] sm:$0xff] }
0x2de7   :  { %6182 = vmatprep.subr.bf16.mxu1 %v6181_v47  ;;  %v6169_v47 = vpack.c.bf16 %v4360_v57, %v4359_v5  ;;  %v6201_v8 = vpack.c.bf16 %v4392_v21, %v4391_v44 }
0x2de9   :  { %6152 = vmatpush3.bf16.msra.mxu0 %v6151_v43  ;;  %v6171_v43 = vpack.c.bf16 %v4344_v7, %v4343_v38  ;;  %v4629_v7 = vld [vmem:[%s9419_s15 + $0x18] sm:$0xff] }
0x2dea   :  { %6184 = vmatpush3.bf16.msra.mxu1 %v6183_v12  ;;  %6154 = vmatprep.subr.bf16.mxu0 %v6153_v14  ;;  %v6203_v12 = vpack.c.bf16 %v4376_v60, %v4375_v9  ;;  %v3454_v14 = vld [vmem:[%s9418_s12] sm:$0x1f]  ;;  %v4631_v60 = vld [vmem:[%s9419_s15 + $0x28] sm:$0xff] }
0x2deb   :  { %6186 = vmatprep.subr.bf16.mxu1 %v6185_v39  ;;  %v3463_v0 = vrot.slane %v3454_v14, %v6681_v29  ;;  %v3459_v17 = vrot.slane %v3454_v14, %v6688_v32  ;;  %v3471_v62 = vrot.slane %v3454_v14, %v2587_v26  ;;  %v4393_v39 = vld [vmem:[%s9417_s13 + $0x200] sm:$0xff]  ;;  %v3467_v22 = vrot.slane %v3454_v14, %v2583_v10  ;;  %v4395_v26 = vld [vmem:[%s9417_s13 + $0x210] sm:$0xff] }
0x2dec   :  { %v6206_v32 = vpack.c.bf16 %v4394_v50, %v4393_v39  ;;  %v6209_v10 = vpack.c.bf16 %v4396_v18, %v4395_v26  ;;  %v3475_v61 = vrot.slane %v3454_v14, %v2591_v30  ;;  %v4627_v30 = vld [vmem:[%s9419_s15 + $0x8] sm:$0xff]  ;;  %v4630_v9 = vld [vmem:[%s9419_s15 + $0x20] sm:$0xff]  ;;  %v4633_v14 = vld [vmem:[%s9419_s15 + $0x38] sm:$0xff] }
0x2ded   :  { %6156 = vmatpush3.bf16.msra.mxu0 %v6155_v23  ;;  %v6230_v38 = vpack.c.bf16 %v4627_v30, %v4626_v28  ;;  %v4636_v50 = vld [vmem:[%s9419_s15 + $0x50] sm:$0xff] }
0x2dee   :  { %6188 = vmatpush3.bf16.msra.mxu1 %v6187_v24  ;;  %6158 = vmatprep.subr.bf16.mxu0 %v6157_v15 }
0x2def   :  { %6190 = vmatprep.subr.bf16.mxu1 %v6189_v27  ;;  %v4398_v27 = vld [vmem:[%s9417_s13 + $0x228] sm:$0xff] }
0x2df0   :  { %v6212_v33 = vpack.c.bf16 %v4398_v27, %v4397_v11 }
0x2df1   :  { %6160 = vmatpush3.bf16.msra.mxu0 %v6159_v40 }
0x2df2   :  { %6192 = vmatpush3.bf16.msra.mxu1 %v6191_v13  ;;  %6162 = vmatprep.subr.bf16.mxu0 %v6161_v51  ;;  %v4403_v13 = vld [vmem:[%s9417_s13 + $0x250] sm:$0xff]  ;;  %v4404_v51 = vld [vmem:[%s9417_s13 + $0x258] sm:$0xff] }
0x2df3   :  { %6194 = vmatprep.subr.bf16.mxu1 %v6193_v42  ;;  %v6221_v53 = vpack.c.bf16 %v4404_v51, %v4403_v13  ;;  %v6224_v42 = vpack.c.bf16 %v4406_v37, %v4405_v36 }
0x2df5   :  { %6164 = vmatpush3.bf16.msra.mxu0 %v6163_v63 }
0x2df6   :  { %6196 = vmatpush3.bf16.msra.mxu1 %v6195_v49  ;;  %6166 = vmatprep.subr.bf16.mxu0 %v6165_v54 }
0x2df7   :  { %6198 = vmatprep.subr.bf16.mxu1 %v6197_v55 }
0x2df9   :  { %6168 = vmatpush3.bf16.msra.mxu0 %v6167_v6 }
0x2dfa   :  { %6200 = vmatpush3.bf16.msra.mxu1 %v6199_v1  ;;  %6170 = vmatprep.subr.bf16.mxu0 %v6169_v47  ;;  %v4628_v47 = vld [vmem:[%s9419_s15 + $0x10] sm:$0xff] }
0x2dfb   :  { %6202 = vmatprep.subr.bf16.mxu1 %v6201_v8  ;;  %v6233_v8 = vpack.c.bf16 %v4629_v7, %v4628_v47 }
0x2dfd   :  { %6172 = vmatpush3.bf16.msra.mxu0 %v6171_v43  ;;  %v6236_v43 = vpack.c.bf16 %v4631_v60, %v4630_v9 }
0x2dfe   :  { %6204 = vmatpush3.bf16.msra.mxu1 %v6203_v12  ;;  %6205 = vmatprep.subr.bf16.mxu0 %v6482_v46  ;;  %v4632_v12 = vld [vmem:[%s9419_s15 + $0x30] sm:$0xff] }
0x2dff   :  { %6229 = vmatprep.subr.bf16.mxu1 %v6482_v46 }
0x2e73   :  { %v3760_v35 = vpop.f32.mrb[46].mxu0 }
0x2e74   :  { %v4044_v48 = vpop.f32.mrb[36].mxu1  ;;  %v3762_v45 = vpop.f32.mrb[47].mxu0  ;;  %v6253_v24 = vadd.f32 %v3760_v35, %v3459_v17  ;;  %v4634_v17 = vld [vmem:[%s9419_s15 + $0x40] sm:$0xff]  ;;  %v4637_v35 = vld [vmem:[%s9419_s15 + $0x58] sm:$0xff] }
0x2e75   :  { %v6254_v29 = vadd.f32 %v3762_v45, %v3463_v0  ;;  %v4046_v23 = vpop.f32.mrb[37].mxu1  ;;  %v6255_v20 = vadd.f32 %v4044_v48, %v3467_v22  ;;  %v6239_v0 = vpack.c.bf16 %v4633_v14, %v4632_v12  ;;  %v6245_v22 = vpack.c.bf16 %v4637_v35, %v4636_v50  ;;  %v4638_v48 = vld [vmem:[%s9419_s15 + $0x60] sm:$0xff]  ;;  %v4639_v45 = vld [vmem:[%s9419_s15 + $0x68] sm:$0xff] }
0x2e76   :  { %v6256_v15 = vadd.f32 %v4046_v23, %v3471_v62  ;;  %v4635_v62 = vld [vmem:[%s9419_s15 + $0x48] sm:$0xff]  ;;  %v4640_v23 = vld [vmem:[%s9419_s15 + $0x70] sm:$0xff] }
0x2e77   :  { %4480 = vmatprep.mubr.f32.mxu0 %v6254_v29  ;;  %v6242_v39 = vpack.c.bf16 %v4635_v62, %v4634_v17  ;;  %v6248_v29 = vpack.c.bf16 %v4639_v45, %v4638_v48 }
0x2e78   :  { %4550 = vmatprep.mubr.f32.mxu1 %v6256_v15  ;;  %4481 = vmatmul.mubr.f32.vlgmr.msra.gmra.mrb[52].mxu0 %v6253_v24  ;;  %v22_v15 = vstv %s9420_s16 }
0x2e79   :  { %4551 = vmatmul.mubr.f32.vlgmr.msra.gmra.mrb[42].mxu1 %v6255_v20  ;;  %6207 = vmatpush3.bf16.msra.mxu0 %v6206_v32  ;;  %v4641_v32 = vld [vmem:[%s9419_s15 + $0x78] sm:$0xff]  ;;  %23 = vst [vmem:[#allocation5] sm:$0x1] %v22_v15 }
0x2e7a   :  { %6208 = vmatprep.subr.bf16.mxu0 %v6482_v46  ;;  %5331 = vmatprep.mubr.msk.f32.mxu0 %vm6483_vm2, %v6479_v3  ;;  %v6251_v24 = vpack.c.bf16 %v4641_v32, %v4640_v23 }
0x2e7b   :  { %5366 = vmatprep.mubr.msk.f32.mxu1 %vm6483_vm2, %v6479_v3  ;;  %v4401_v3 = vld [vmem:[%s9417_s13 + $0x240] sm:$0xff]  ;;  %6231 = vmatpush3.bf16.msra.mxu1 %v6230_v38 }
0x2e7c   :  { %v6218_v40 = vpack.c.bf16 %v4402_v4, %v4401_v3  ;;  %6232 = vmatprep.subr.bf16.mxu1 %v6482_v46 }
0x2e7d   :  { %6210 = vmatpush3.bf16.msra.mxu0 %v6209_v10 }
0x2e7e   :  { %6211 = vmatprep.subr.bf16.mxu0 %v6482_v46 }
0x2e7f   :  { %6234 = vmatpush3.bf16.msra.mxu1 %v6233_v8 }
0x2e80   :  { %6235 = vmatprep.subr.bf16.mxu1 %v6482_v46  ;;  %v4808_v4 = vld [vmem:[#allocation5] ss:$0 sm:$0xff] }
0x2e81   :  { %6213 = vmatpush3.bf16.msra.mxu0 %v6212_v33 }
0x2e82   :  { %6214 = vmatprep.subr.bf16.mxu0 %v6482_v46 }
0x2e83   :  { %6237 = vmatpush3.bf16.msra.mxu1 %v6236_v43 }
0x2e84   :  { %6238 = vmatprep.subr.bf16.mxu1 %v6482_v46 }
0x2e85   :  { %6216 = vmatpush3.bf16.msra.mxu0 %v6215_v52 }
0x2e86   :  { %6217 = vmatprep.subr.bf16.mxu0 %v6482_v46 }
0x2e87   :  { %6240 = vmatpush3.bf16.msra.mxu1 %v6239_v0 }
0x2e88   :  { %6241 = vmatprep.subr.bf16.mxu1 %v6482_v46 }
0x2e89   :  { %6219 = vmatpush3.bf16.msra.mxu0 %v6218_v40 }
0x2e8a   :  { %6220 = vmatprep.subr.bf16.mxu0 %v6482_v46 }
0x2e8b   :  { %6243 = vmatpush3.bf16.msra.mxu1 %v6242_v39 }
0x2e8c   :  { %6244 = vmatprep.subr.bf16.mxu1 %v6482_v46 }
0x2e8d   :  { %6222 = vmatpush3.bf16.msra.mxu0 %v6221_v53 }
0x2e8e   :  { %6223 = vmatprep.subr.bf16.mxu0 %v6482_v46 }
0x2e8f   :  { %6246 = vmatpush3.bf16.msra.mxu1 %v6245_v22 }
0x2e90   :  { %6247 = vmatprep.subr.bf16.mxu1 %v6482_v46 }
0x2e91   :  { %6225 = vmatpush3.bf16.msra.mxu0 %v6224_v42 }
0x2e92   :  { %6226 = vmatprep.subr.bf16.mxu0 %v6482_v46 }
0x2e93   :  { %v4916_v16 = vpop.f32.mrb[48].mxu0  ;;  %6249 = vmatpush3.bf16.msra.mxu1 %v6248_v29 }
0x2e94   :  { %v4951_v63 = vpop.f32.mrb[38].mxu1  ;;  %v4917_v49 = vpop.f32.mrb[49].mxu0  ;;  %6250 = vmatprep.subr.bf16.mxu1 %v6482_v46  ;;  %v4807_v46 = vld [vmem:[%s9421_s14] ss:$0 sm:$0xff] }
0x2e95   :  { %v4918_v54 = vadd.f32 %v4917_v49, %v4916_v16  ;;  %v4952_v25 = vpop.f32.mrb[39].mxu1  ;;  %6228 = vmatpush3.bf16.msra.mxu0 %v6227_v41 }
0x2e96   :  { %v4953_v56 = vadd.f32 %v4952_v25, %v4951_v63 }
0x2e97   :  { %v4116_v2 = vadd.f32 %v4918_v54, %v3475_v61  ;;  %6252 = vmatpush3.bf16.msra.mxu1 %v6251_v24 }
0x2e99   :  { %v4186_v55 = vadd.f32 %v4953_v56, %v4116_v2 }
0x2eb3   :  { %v4986_v31 = vpop.f32.mrb[50].mxu0 }
0x2eb4   :  { %v4325_v5 = vpop.f32.mrb[40].mxu1  ;;  %v4987_v57 = vpop.f32.mrb[51].mxu0 }
0x2eb5   :  { %v4988_v44 = vadd.f32 %v4987_v57, %v4986_v31  ;;  %v5298_v21 = vpop.f32.mrb[41].mxu1 }
0x2eb7   :  { %v4256_v6 = vadd.f32 %v4988_v44, %v4186_v55 }
0x2eb9   :  { %v4326_v1 = vadd.f32 %v4325_v5, %v4256_v6 }
0x2ebb   :  { %5332 = vmatmul.mubr.f32.vlgmr.msra.gmra.mrb[54].mxu0 %v4326_v1 }
0x2f4b   :  { %v5038_v26 = vpop.f32.mrb[52].mxu0 }
0x2f4c   :  { %v5073_v18 = vpop.f32.mrb[42].mxu1  ;;  %v5039_v20 = vpop.f32.mrb[53].mxu0 }
0x2f4d   :  { %v5040_v10 = vadd.f32 %v5039_v20, %v5038_v26  ;;  %v5074_v11 = vpop.f32.mrb[43].mxu1 }
0x2f4e   :  { %v5075_v27 = vadd.f32 %v5074_v11, %v5073_v18 }
0x2f4f   :  { %v4483_v33 = vadd.f32 %v5040_v10, %v4807_v46 }
0x2f51   :  { %v4553_v34 = vadd.f32 %v5075_v27, %v4483_v33 }
0x2f8e   :  { %v4622_v19 = vpop.f32.mrb[54].mxu0 }
0x2f8f   :  { %v4623_v52 = vadd.f32 %v4622_v19, %v4553_v34  ;;  %v5333_v3 = vpop.f32.mrb[55].mxu0 }
0x2f91   :  { %5367 = vmatmul.mubr.f32.vlgmr.msra.gmra.mrb[44].mxu1 %v4623_v52 }
0x3064   :  { %v4715_v40 = vpop.f32.mrb[44].mxu1 }
0x3065   :  { %v4716_v13 = vadd.f32 %v4808_v4, %v4715_v40  ;;  %v5368_v51 = vpop.f32.mrb[45].mxu1 }
0x3067   :  { %v4809_v53 = vmul.f32 -1.442695, %v4716_v13 }
0x3069   :  { %6474 = vpow2.f32 %v4809_v53 }
0x3073   :  { %v6475_v36 = vpop.eup %6474 }
0x3074   :  { %v4722_v37 = vadd.f32 1.0, %v6475_v36 }
0x3076   :  { %6476 = vrcp.f32 %v4722_v37 }
0x3080   :  { %v6477_v42 = vpop.eup %6476 }
0x3081   :  { %4726 = vst.msk [vmem:[%s9422_s17] sm:$0xff] %vm4725_vm5, %v6477_v42 }

</bundles_post_ra>
